<compile_context>
chip_gen: v7x
topology: tpu7x:2x2x1
jax: 0.10.0
libtpu: 0.0.40
codegen_flags: <defaults>
</compile_context>

<pallas_src>
from functools import partial

import jax
import jax.numpy as jnp
from jax.experimental import pallas as pl
from jax.experimental.pallas import tpu as pltpu

NUM_BLOCKS = 3
NUM_CLASSES = 10
_KP = 128           # classifier output padded to a full lane tile


# -----------------------------------------------------------------------------
# Fused kernel: conv3x3+ReLU chain (VMEM-resident activation) + sampled head
# -----------------------------------------------------------------------------
def _nn_online_fused_kernel(idx_ref, x_ref, wband_ref, bconv_ref, whead_ref,
                            bhead_ref, o_ref, act_ref):
    """One grid step = BT images; activation rows are y-major / image-minor.

    idx_ref  : SMEM (1,) int32                  sampled block index (scalar prefetch)
    x_ref    : VMEM (1, BT*H, W*C) f32          row y*BT + j  <->  image j, row y
    wband_ref: VMEM (L, 3, W*C, W*C) bf16       banded conv weights, one per kernel row
    bconv_ref: VMEM (L, 1, W*C) f32             conv bias broadcast over W
    whead_ref: VMEM (1, H, W*C, KP) bf16        selected classifier weight (prefetch-indexed)
    bhead_ref: VMEM (1, 1, KP) f32              selected classifier bias
    o_ref    : VMEM (1, BT, KP) f32             padded predictions
    act_ref  : VMEM scratch (BT*(H+2), W*C) f32 activation with BT-row zero halo blocks
    """
    m, wc = x_ref.shape[1], x_ref.shape[2]       # m = BT * H
    bt, kp = o_ref.shape[1], o_ref.shape[2]
    h = m // bt
    idx = idx_ref[0]

    # Zero only the two BT-row halo blocks; the interior is overwritten right below.
    act_ref[pl.ds(0, bt), :] = jnp.zeros((bt, wc), jnp.float32)
    act_ref[pl.ds(m + bt, bt), :] = jnp.zeros((bt, wc), jnp.float32)
    act_ref[pl.ds(bt, m), :] = x_ref[0]

    for i in range(NUM_BLOCKS):
        # 3x3 'same' conv as 3 y-shifted lane-dense (BT*H, W*C) @ (W*C, W*C) matmuls.
        # With BT=8 the shift offsets (0, BT, 2*BT) are sublane-aligned.
        up = act_ref[pl.ds(0, m), :].astype(jnp.bfloat16)          # in[y-1]
        mid = act_ref[pl.ds(bt, m), :].astype(jnp.bfloat16)        # in[y]
        dn = act_ref[pl.ds(2 * bt, m), :].astype(jnp.bfloat16)     # in[y+1]
        acc = jnp.dot(up, wband_ref[i, 0], preferred_element_type=jnp.float32)
        acc = acc + jnp.dot(mid, wband_ref[i, 1], preferred_element_type=jnp.float32)
        acc = acc + jnp.dot(dn, wband_ref[i, 2], preferred_element_type=jnp.float32)
        act_new = jnp.maximum(acc + bconv_ref[i], 0.0)             # f32, (BT*H, W*C)

        # Only the multinomially-sampled block's classifier is materialized.
        @pl.when(idx == i)
        def _(act_new=act_new):
            n_acc = min(4, h)
            accs = [jnp.zeros((bt, kp), jnp.float32) for _ in range(n_acc)]
            for y in range(h):
                lhs = act_new[y * bt:(y + 1) * bt, :].astype(jnp.bfloat16)
                accs[y % n_acc] = accs[y % n_acc] + jnp.dot(
                    lhs, whead_ref[0, y], preferred_element_type=jnp.float32)
            pred = accs[0]
            for extra in accs[1:]:
                pred = pred + extra
            o_ref[0] = pred + bhead_ref[0]

        if i + 1 < NUM_BLOCKS:
            act_ref[pl.ds(bt, m), :] = act_new   # next layer input (halos stay zero)


# -----------------------------------------------------------------------------
# One-time parameter packing (outside the per-call jitted path)
# -----------------------------------------------------------------------------
def _build_band(wconv, w):
    """(3,3,Cin,Cout) HWIO conv weight -> (3, W*Cin, W*Cout) banded matrices.

    band[dy][xi*Cin+ci, xo*Cout+co] = wconv[dy, xi-xo+1, ci, co] if |xi-xo|<=1 else 0,
    so `y_shifted_act @ band[dy]` realizes the 1-D conv along W with zero padding.
    """
    kh, kw, cin, cout = wconv.shape
    xi = jnp.arange(w)[:, None]
    xo = jnp.arange(w)[None, :]
    rel = xi - xo + (kw // 2)
    valid = ((rel >= 0) & (rel < kw)).astype(wconv.dtype)
    rel_c = jnp.clip(rel, 0, kw - 1)
    band = wconv[:, rel_c] * valid[None, :, :, None, None]   # (3, W, W, cin, cout)
    band = jnp.transpose(band, (0, 1, 3, 2, 4))               # (3, W, cin, W, cout)
    return band.reshape(kh, w * cin, w * cout)


def prepack_params(params, h, w, c):
    """Pack torch-layout params into kernel layout ONCE (call outside the hot path)."""
    wc_lanes = w * c
    wband = jnp.stack([_build_band(wcv, w) for (wcv, _, _, _) in params])
    bconv = jnp.stack([jnp.tile(bcv, w).reshape(1, wc_lanes)
                       for (_, bcv, _, _) in params]).astype(jnp.float32)
    wh, bh = [], []
    for (_, _, wl, bl) in params:
        # torch Linear weight (K, C*H*W) over NCHW flatten -> (H, W*C, K) NHWC lanes.
        wperm = wl.reshape(NUM_CLASSES, c, h, w).transpose(2, 3, 1, 0)
        wperm = wperm.reshape(h, wc_lanes, NUM_CLASSES)
        wh.append(jnp.pad(wperm, ((0, 0), (0, 0), (0, _KP - NUM_CLASSES))))
        bh.append(jnp.pad(bl, (0, _KP - NUM_CLASSES)).reshape(1, _KP))
    return {
        "wband": wband.astype(jnp.bfloat16),                    # (L, 3, W*C, W*C)
        "bconv": bconv,                                          # (L, 1, W*C) f32
        "whead": jnp.stack(wh).astype(jnp.bfloat16),             # (L, H, W*C, KP)
        "bhead": jnp.stack(bh).astype(jnp.float32),              # (L, 1, KP)
    }


# -----------------------------------------------------------------------------
# Forward (matches NN_Online.forward semantics)
# -----------------------------------------------------------------------------
@partial(jax.jit, static_argnames=("batch_tile",))
def nn_online_forward(packed, alpha, x_nchw, sample_key, batch_tile=8):
    assert x_nchw.ndim == 4, "The input should be a batched 2D image"
    b, c, h, w = x_nchw.shape
    wc_lanes = w * c

    # torch.multinomial(alpha, 1) -- the index stays on device (no host sync).
    idx = jax.random.categorical(sample_key, jnp.log(alpha))
    idx = jnp.clip(idx.astype(jnp.int32), 0, NUM_BLOCKS - 1).reshape(1)

    # Batch tiling: up to `batch_tile` images per grid step (fills MXU M = BT*H),
    # but keep >= 2 grid steps when b allows so v7x's two TensorCores share work.
    n_tiles = max(2, -(-b // batch_tile)) if b >= 2 else 1
    bt = -(-b // n_tiles)
    n_tiles = -(-b // bt)
    b_pad = bt * n_tiles
    m = h * bt

    # NCHW -> NHWC, lanes = W*C; rows within a tile are y-major / image-minor.
    xh = jnp.transpose(x_nchw, (0, 2, 3, 1)).astype(jnp.float32).reshape(b, h, wc_lanes)
    if b_pad != b:
        xh = jnp.pad(xh, ((0, b_pad - b), (0, 0), (0, 0)))
    xh = (xh.reshape(n_tiles, bt, h, wc_lanes)
            .transpose(0, 2, 1, 3)
            .reshape(n_tiles, m, wc_lanes))

    grid_spec = pltpu.PrefetchScalarGridSpec(
        num_scalar_prefetch=1,
        grid=(n_tiles,),
        in_specs=[
            pl.BlockSpec((1, m, wc_lanes), lambda t, s: (t, 0, 0)),
            pl.BlockSpec((NUM_BLOCKS, 3, wc_lanes, wc_lanes),
                         lambda t, s: (0, 0, 0, 0)),
            pl.BlockSpec((NUM_BLOCKS, 1, wc_lanes), lambda t, s: (0, 0, 0)),
            # Scalar-prefetched index selects which head weight is DMA'd.
            pl.BlockSpec((1, h, wc_lanes, _KP), lambda t, s: (s[0], 0, 0, 0)),
            pl.BlockSpec((1, 1, _KP), lambda t, s: (s[0], 0, 0)),
        ],
        out_specs=pl.BlockSpec((1, bt, _KP), lambda t, s: (t, 0, 0)),
        scratch_shapes=[pltpu.VMEM((m + 2 * bt, wc_lanes), jnp.float32)],
    )

    out = pl.pallas_call(
        _nn_online_fused_kernel,
        out_shape=jax.ShapeDtypeStruct((n_tiles, bt, _KP), jnp.float32),
        grid_spec=grid_spec,
        compiler_params=pltpu.CompilerParams(
            dimension_semantics=("parallel",)),
    )(idx, xh, packed["wband"], packed["bconv"], packed["whead"], packed["bhead"])

    return out.reshape(b_pad, _KP)[:b, :NUM_CLASSES]


# -----------------------------------------------------------------------------
# Synthetic parameters + pure-JAX reference
# -----------------------------------------------------------------------------
def init_params(key, c, h, w):
    params = []
    for _ in range(NUM_BLOCKS):
        key, k1, k2, k3, k4 = jax.random.split(key, 5)
        wc = 0.1 * jax.random.normal(k1, (3, 3, c, c), jnp.float32)   # HWIO
        bc = 0.1 * jax.random.normal(k2, (c,), jnp.float32)
        # torch-style Linear weight: (out, in) over NCHW flatten.
        wl = 0.02 * jax.random.normal(k3, (NUM_CLASSES, c * h * w), jnp.float32)
        bl = 0.02 * jax.random.normal(k4, (NUM_CLASSES,), jnp.float32)
        params.append((wc, bc, wl, bl))
    alpha = jnp.ones((NUM_BLOCKS,), jnp.float32) / NUM_BLOCKS
    return params, alpha


def _reference_forward(params, alpha, x_nchw, sample_key):
    """Pure-JAX reference of the torch forward (same sampled index)."""
    idx = int(jax.random.categorical(sample_key, jnp.log(alpha)))
    x = jnp.transpose(x_nchw, (0, 2, 3, 1)).astype(jnp.float32)   # NHWC
    pred = None
    for i, (wc, bc, wl, bl) in enumerate(params):
        x = jax.lax.conv_general_dilated(
            x, wc, window_strides=(1, 1), padding="SAME",
            dimension_numbers=("NHWC", "HWIO", "NHWC"),
            precision=jax.lax.Precision.HIGHEST)
        x = jnp.maximum(x + bc, 0.0)
        if i == idx:
            feat = jnp.transpose(x, (0, 3, 1, 2)).reshape(x.shape[0], -1)  # NCHW flatten
            pred = jnp.dot(feat, wl.T, precision=jax.lax.Precision.HIGHEST) + bl
    return pred


if __name__ == "__main__":
    B, C, H, W = 2, 4, 16, 16
    root = jax.random.PRNGKey(0)
    k_data, k_params, k_sample = jax.random.split(root, 3)

    x = jax.random.normal(k_data, (B, C, H, W), jnp.float32)   # NCHW like torch
    params, alpha = init_params(k_params, C, H, W)
    packed = prepack_params(params, H, W, C)                   # one-time prepack

    pred = nn_online_forward(packed, alpha, x, k_sample)
    pred = jax.block_until_ready(pred)
    assert pred.shape == (B, NUM_CLASSES) and pred.dtype == jnp.float32

    pred_ref = _reference_forward(params, alpha, x, k_sample)
    assert jnp.allclose(pred, pred_ref, atol=2e-2, rtol=2e-2), (
        "max abs err = %f" % float(jnp.max(jnp.abs(pred - pred_ref))))
    print("KERNEL_OK")
</pallas_src>

<mosaic_0001>
module attributes {stable_mosaic.version = 11 : i64} {
  func.func @_nn_online_fused_kernel(%arg0: i32, %arg1: memref<1xi32, #tpu.memory_space<smem>>, %arg2: memref<1x16x64xf32, #tpu.memory_space<vmem>>, %arg3: memref<3x3x64x64xbf16, #tpu.memory_space<vmem>>, %arg4: memref<3x1x64xf32, #tpu.memory_space<vmem>>, %arg5: memref<1x16x64x128xbf16, #tpu.memory_space<vmem>>, %arg6: memref<1x1x128xf32, #tpu.memory_space<vmem>>, %arg7: memref<1x1x128xf32, #tpu.memory_space<vmem>>, %arg8: memref<18x64xf32, #tpu.memory_space<vmem>>) attributes {dimension_semantics = [#tpu.dimension_semantics<parallel>], iteration_bounds = array<i64: 2>, scalar_prefetch = 1 : i64, scratch_operands = 1 : i64, tpu.core_type = #tpu.core_type<tc>, window_params = [{transform_indices = @transform_0, window_bounds = array<i64: 1, 16, 64>}, {pipeline_mode = #tpu.pipeline_mode<synchronous>, transform_indices = @transform_1, window_bounds = array<i64: 3, 3, 64, 64>}, {pipeline_mode = #tpu.pipeline_mode<synchronous>, transform_indices = @transform_2, window_bounds = array<i64: 3, 1, 64>}, {transform_indices = @transform_3, window_bounds = array<i64: 1, 16, 64, 128>}, {transform_indices = @transform_4, window_bounds = array<i64: 1, 1, 128>}, {transform_indices = @transform_5, window_bounds = array<i64: 1, 1, 128>}]} {
    %c0 = arith.constant 0 : index
    %0 = memref.load %arg1[%c0] : memref<1xi32, #tpu.memory_space<smem>>
    %cst = arith.constant 0.000000e+00 : f32
    %1 = vector.broadcast %cst : f32 to vector<1x64xf32>
    %c0_0 = arith.constant 0 : index
    %c0_1 = arith.constant 0 : index
    %2 = vector.load %arg8[%c0_0, %c0_1] : memref<18x64xf32, #tpu.memory_space<vmem>>, vector<1x64xf32>
    tpu.vector_store %arg8[%c0_0, %c0_1], %1 {strides = array<i32>} : memref<18x64xf32, #tpu.memory_space<vmem>>, vector<1x64xf32>,
    %cst_2 = arith.constant 0.000000e+00 : f32
    %3 = vector.broadcast %cst_2 : f32 to vector<1x64xf32>
    %c17 = arith.constant 17 : index
    %c0_3 = arith.constant 0 : index
    %4 = vector.load %arg8[%c17, %c0_3] : memref<18x64xf32, #tpu.memory_space<vmem>>, vector<1x64xf32>
    tpu.vector_store %arg8[%c17, %c0_3], %3 {strides = array<i32>} : memref<18x64xf32, #tpu.memory_space<vmem>>, vector<1x64xf32>,
    %c0_4 = arith.constant 0 : index
    %c0_5 = arith.constant 0 : index
    %c0_6 = arith.constant 0 : index
    %5 = vector.load %arg2[%c0_4, %c0_5, %c0_6] : memref<1x16x64xf32, #tpu.memory_space<vmem>>, vector<1x16x64xf32>
    %6 = vector.shape_cast %5 : vector<1x16x64xf32> to vector<16x64xf32>
    %c1 = arith.constant 1 : index
    %c0_7 = arith.constant 0 : index
    %7 = vector.load %arg8[%c1, %c0_7] : memref<18x64xf32, #tpu.memory_space<vmem>>, vector<16x64xf32>
    tpu.vector_store %arg8[%c1, %c0_7], %6 {strides = array<i32>} : memref<18x64xf32, #tpu.memory_space<vmem>>, vector<16x64xf32>,
    %c0_8 = arith.constant 0 : index
    %c0_9 = arith.constant 0 : index
    %8 = vector.load %arg8[%c0_8, %c0_9] : memref<18x64xf32, #tpu.memory_space<vmem>>, vector<16x64xf32>
    %9 = arith.truncf %8 : vector<16x64xf32> to vector<16x64xbf16>
    %c1_10 = arith.constant 1 : index
    %c0_11 = arith.constant 0 : index
    %10 = vector.load %arg8[%c1_10, %c0_11] : memref<18x64xf32, #tpu.memory_space<vmem>>, vector<16x64xf32>
    %11 = arith.truncf %10 : vector<16x64xf32> to vector<16x64xbf16>
    %c2 = arith.constant 2 : index
    %c0_12 = arith.constant 0 : index
    %12 = vector.load %arg8[%c2, %c0_12] : memref<18x64xf32, #tpu.memory_space<vmem>>, vector<16x64xf32>
    %13 = arith.truncf %12 : vector<16x64xf32> to vector<16x64xbf16>
    %c0_13 = arith.constant 0 : index
    %c0_14 = arith.constant 0 : index
    %c0_15 = arith.constant 0 : index
    %c0_16 = arith.constant 0 : index
    %14 = vector.load %arg3[%c0_13, %c0_14, %c0_15, %c0_16] : memref<3x3x64x64xbf16, #tpu.memory_space<vmem>>, vector<1x1x64x64xbf16>
    %15 = vector.shape_cast %14 : vector<1x1x64x64xbf16> to vector<64x64xbf16>
    %cst_17 = arith.constant dense<0.000000e+00> : vector<16x64xf32>
    %16 = tpu.matmul %9, %15, %cst_17 {dimension_numbers = #tpu.dot_dimension_numbers<[1], [0], [0], [1], [0, 0, 1, 1], [], []>} : vector<16x64xbf16>, vector<64x64xbf16>, vector<16x64xf32> -> vector<16x64xf32>
    %c0_18 = arith.constant 0 : index
    %c1_19 = arith.constant 1 : index
    %c0_20 = arith.constant 0 : index
    %c0_21 = arith.constant 0 : index
    %17 = vector.load %arg3[%c0_18, %c1_19, %c0_20, %c0_21] : memref<3x3x64x64xbf16, #tpu.memory_space<vmem>>, vector<1x1x64x64xbf16>
    %18 = vector.shape_cast %17 : vector<1x1x64x64xbf16> to vector<64x64xbf16>
    %cst_22 = arith.constant dense<0.000000e+00> : vector<16x64xf32>
    %19 = tpu.matmul %11, %18, %cst_22 {dimension_numbers = #tpu.dot_dimension_numbers<[1], [0], [0], [1], [0, 0, 1, 1], [], []>} : vector<16x64xbf16>, vector<64x64xbf16>, vector<16x64xf32> -> vector<16x64xf32>
    %20 = arith.addf %16, %19 : vector<16x64xf32>
    %c0_23 = arith.constant 0 : index
    %c2_24 = arith.constant 2 : index
    %c0_25 = arith.constant 0 : index
    %c0_26 = arith.constant 0 : index
    %21 = vector.load %arg3[%c0_23, %c2_24, %c0_25, %c0_26] : memref<3x3x64x64xbf16, #tpu.memory_space<vmem>>, vector<1x1x64x64xbf16>
    %22 = vector.shape_cast %21 : vector<1x1x64x64xbf16> to vector<64x64xbf16>
    %cst_27 = arith.constant dense<0.000000e+00> : vector<16x64xf32>
    %23 = tpu.matmul %13, %22, %cst_27 {dimension_numbers = #tpu.dot_dimension_numbers<[1], [0], [0], [1], [0, 0, 1, 1], [], []>} : vector<16x64xbf16>, vector<64x64xbf16>, vector<16x64xf32> -> vector<16x64xf32>
    %24 = arith.addf %20, %23 : vector<16x64xf32>
    %c0_28 = arith.constant 0 : index
    %c0_29 = arith.constant 0 : index
    %c0_30 = arith.constant 0 : index
    %25 = vector.load %arg4[%c0_28, %c0_29, %c0_30] : memref<3x1x64xf32, #tpu.memory_space<vmem>>, vector<1x1x64xf32>
    %26 = vector.shape_cast %25 : vector<1x1x64xf32> to vector<1x64xf32>
    %27 = vector.broadcast %26 : vector<1x64xf32> to vector<16x64xf32>
    %28 = arith.addf %24, %27 : vector<16x64xf32>
    %cst_31 = arith.constant 0.000000e+00 : f32
    %29 = vector.broadcast %cst_31 : f32 to vector<16x64xf32>
    %30 = arith.maximumf %28, %29 : vector<16x64xf32>
    %c0_i32 = arith.constant 0 : i32
    %31 = arith.cmpi eq, %0, %c0_i32 : i32
    %32 = arith.extui %31 : i1 to i32
    %c0_i32_32 = arith.constant 0 : i32
    %33 = arith.cmpi ne, %32, %c0_i32_32 : i32
    scf.if %33 {
      %cst_89 = arith.constant 0.000000e+00 : f32
      %88 = vector.broadcast %cst_89 : f32 to vector<1x128xf32>
      %cst_90 = arith.constant 0.000000e+00 : f32
      %89 = vector.broadcast %cst_90 : f32 to vector<1x128xf32>
      %cst_91 = arith.constant 0.000000e+00 : f32
      %90 = vector.broadcast %cst_91 : f32 to vector<1x128xf32>
      %cst_92 = arith.constant 0.000000e+00 : f32
      %91 = vector.broadcast %cst_92 : f32 to vector<1x128xf32>
      %92 = vector.extract_strided_slice %30 {offsets = [0, 0], sizes = [1, 64], strides = [1, 1]} : vector<16x64xf32> to vector<1x64xf32>
      %93 = arith.truncf %92 : vector<1x64xf32> to vector<1x64xbf16>
      %c0_93 = arith.constant 0 : index
      %c0_94 = arith.constant 0 : index
      %c0_95 = arith.constant 0 : index
      %c0_96 = arith.constant 0 : index
      %94 = vector.load %arg5[%c0_93, %c0_94, %c0_95, %c0_96] : memref<1x16x64x128xbf16, #tpu.memory_space<vmem>>, vector<1x1x64x128xbf16>
      %95 = vector.shape_cast %94 : vector<1x1x64x128xbf16> to vector<64x128xbf16>
      %cst_97 = arith.constant dense<0.000000e+00> : vector<1x128xf32>
      %96 = tpu.matmul %93, %95, %cst_97 {dimension_numbers = #tpu.dot_dimension_numbers<[1], [0], [0], [1], [0, 0, 1, 1], [], []>} : vector<1x64xbf16>, vector<64x128xbf16>, vector<1x128xf32> -> vector<1x128xf32>
      %97 = arith.addf %88, %96 : vector<1x128xf32>
      %98 = vector.extract_strided_slice %30 {offsets = [1, 0], sizes = [1, 64], strides = [1, 1]} : vector<16x64xf32> to vector<1x64xf32>
      %99 = arith.truncf %98 : vector<1x64xf32> to vector<1x64xbf16>
      %c0_98 = arith.constant 0 : index
      %c1_99 = arith.constant 1 : index
      %c0_100 = arith.constant 0 : index
      %c0_101 = arith.constant 0 : index
      %100 = vector.load %arg5[%c0_98, %c1_99, %c0_100, %c0_101] : memref<1x16x64x128xbf16, #tpu.memory_space<vmem>>, vector<1x1x64x128xbf16>
      %101 = vector.shape_cast %100 : vector<1x1x64x128xbf16> to vector<64x128xbf16>
      %cst_102 = arith.constant dense<0.000000e+00> : vector<1x128xf32>
      %102 = tpu.matmul %99, %101, %cst_102 {dimension_numbers = #tpu.dot_dimension_numbers<[1], [0], [0], [1], [0, 0, 1, 1], [], []>} : vector<1x64xbf16>, vector<64x128xbf16>, vector<1x128xf32> -> vector<1x128xf32>
      %103 = arith.addf %89, %102 : vector<1x128xf32>
      %104 = vector.extract_strided_slice %30 {offsets = [2, 0], sizes = [1, 64], strides = [1, 1]} : vector<16x64xf32> to vector<1x64xf32>
      %105 = arith.truncf %104 : vector<1x64xf32> to vector<1x64xbf16>
      %c0_103 = arith.constant 0 : index
      %c2_104 = arith.constant 2 : index
      %c0_105 = arith.constant 0 : index
      %c0_106 = arith.constant 0 : index
      %106 = vector.load %arg5[%c0_103, %c2_104, %c0_105, %c0_106] : memref<1x16x64x128xbf16, #tpu.memory_space<vmem>>, vector<1x1x64x128xbf16>
      %107 = vector.shape_cast %106 : vector<1x1x64x128xbf16> to vector<64x128xbf16>
      %cst_107 = arith.constant dense<0.000000e+00> : vector<1x128xf32>
      %108 = tpu.matmul %105, %107, %cst_107 {dimension_numbers = #tpu.dot_dimension_numbers<[1], [0], [0], [1], [0, 0, 1, 1], [], []>} : vector<1x64xbf16>, vector<64x128xbf16>, vector<1x128xf32> -> vector<1x128xf32>
      %109 = arith.addf %90, %108 : vector<1x128xf32>
      %110 = vector.extract_strided_slice %30 {offsets = [3, 0], sizes = [1, 64], strides = [1, 1]} : vector<16x64xf32> to vector<1x64xf32>
      %111 = arith.truncf %110 : vector<1x64xf32> to vector<1x64xbf16>
      %c0_108 = arith.constant 0 : index
      %c3 = arith.constant 3 : index
      %c0_109 = arith.constant 0 : index
      %c0_110 = arith.constant 0 : index
      %112 = vector.load %arg5[%c0_108, %c3, %c0_109, %c0_110] : memref<1x16x64x128xbf16, #tpu.memory_space<vmem>>, vector<1x1x64x128xbf16>
      %113 = vector.shape_cast %112 : vector<1x1x64x128xbf16> to vector<64x128xbf16>
      %cst_111 = arith.constant dense<0.000000e+00> : vector<1x128xf32>
      %114 = tpu.matmul %111, %113, %cst_111 {dimension_numbers = #tpu.dot_dimension_numbers<[1], [0], [0], [1], [0, 0, 1, 1], [], []>} : vector<1x64xbf16>, vector<64x128xbf16>, vector<1x128xf32> -> vector<1x128xf32>
      %115 = arith.addf %91, %114 : vector<1x128xf32>
      %116 = vector.extract_strided_slice %30 {offsets = [4, 0], sizes = [1, 64], strides = [1, 1]} : vector<16x64xf32> to vector<1x64xf32>
      %117 = arith.truncf %116 : vector<1x64xf32> to vector<1x64xbf16>
      %c0_112 = arith.constant 0 : index
      %c4 = arith.constant 4 : index
      %c0_113 = arith.constant 0 : index
      %c0_114 = arith.constant 0 : index
      %118 = vector.load %arg5[%c0_112, %c4, %c0_113, %c0_114] : memref<1x16x64x128xbf16, #tpu.memory_space<vmem>>, vector<1x1x64x128xbf16>
      %119 = vector.shape_cast %118 : vector<1x1x64x128xbf16> to vector<64x128xbf16>
      %cst_115 = arith.constant dense<0.000000e+00> : vector<1x128xf32>
      %120 = tpu.matmul %117, %119, %cst_115 {dimension_numbers = #tpu.dot_dimension_numbers<[1], [0], [0], [1], [0, 0, 1, 1], [], []>} : vector<1x64xbf16>, vector<64x128xbf16>, vector<1x128xf32> -> vector<1x128xf32>
      %121 = arith.addf %97, %120 : vector<1x128xf32>
      %122 = vector.extract_strided_slice %30 {offsets = [5, 0], sizes = [1, 64], strides = [1, 1]} : vector<16x64xf32> to vector<1x64xf32>
      %123 = arith.truncf %122 : vector<1x64xf32> to vector<1x64xbf16>
      %c0_116 = arith.constant 0 : index
      %c5 = arith.constant 5 : index
      %c0_117 = arith.constant 0 : index
      %c0_118 = arith.constant 0 : index
      %124 = vector.load %arg5[%c0_116, %c5, %c0_117, %c0_118] : memref<1x16x64x128xbf16, #tpu.memory_space<vmem>>, vector<1x1x64x128xbf16>
      %125 = vector.shape_cast %124 : vector<1x1x64x128xbf16> to vector<64x128xbf16>
      %cst_119 = arith.constant dense<0.000000e+00> : vector<1x128xf32>
      %126 = tpu.matmul %123, %125, %cst_119 {dimension_numbers = #tpu.dot_dimension_numbers<[1], [0], [0], [1], [0, 0, 1, 1], [], []>} : vector<1x64xbf16>, vector<64x128xbf16>, vector<1x128xf32> -> vector<1x128xf32>
      %127 = arith.addf %103, %126 : vector<1x128xf32>
      %128 = vector.extract_strided_slice %30 {offsets = [6, 0], sizes = [1, 64], strides = [1, 1]} : vector<16x64xf32> to vector<1x64xf32>
      %129 = arith.truncf %128 : vector<1x64xf32> to vector<1x64xbf16>
      %c0_120 = arith.constant 0 : index
      %c6 = arith.constant 6 : index
      %c0_121 = arith.constant 0 : index
      %c0_122 = arith.constant 0 : index
      %130 = vector.load %arg5[%c0_120, %c6, %c0_121, %c0_122] : memref<1x16x64x128xbf16, #tpu.memory_space<vmem>>, vector<1x1x64x128xbf16>
      %131 = vector.shape_cast %130 : vector<1x1x64x128xbf16> to vector<64x128xbf16>
      %cst_123 = arith.constant dense<0.000000e+00> : vector<1x128xf32>
      %132 = tpu.matmul %129, %131, %cst_123 {dimension_numbers = #tpu.dot_dimension_numbers<[1], [0], [0], [1], [0, 0, 1, 1], [], []>} : vector<1x64xbf16>, vector<64x128xbf16>, vector<1x128xf32> -> vector<1x128xf32>
      %133 = arith.addf %109, %132 : vector<1x128xf32>
      %134 = vector.extract_strided_slice %30 {offsets = [7, 0], sizes = [1, 64], strides = [1, 1]} : vector<16x64xf32> to vector<1x64xf32>
      %135 = arith.truncf %134 : vector<1x64xf32> to vector<1x64xbf16>
      %c0_124 = arith.constant 0 : index
      %c7 = arith.constant 7 : index
      %c0_125 = arith.constant 0 : index
      %c0_126 = arith.constant 0 : index
      %136 = vector.load %arg5[%c0_124, %c7, %c0_125, %c0_126] : memref<1x16x64x128xbf16, #tpu.memory_space<vmem>>, vector<1x1x64x128xbf16>
      %137 = vector.shape_cast %136 : vector<1x1x64x128xbf16> to vector<64x128xbf16>
      %cst_127 = arith.constant dense<0.000000e+00> : vector<1x128xf32>
      %138 = tpu.matmul %135, %137, %cst_127 {dimension_numbers = #tpu.dot_dimension_numbers<[1], [0], [0], [1], [0, 0, 1, 1], [], []>} : vector<1x64xbf16>, vector<64x128xbf16>, vector<1x128xf32> -> vector<1x128xf32>
      %139 = arith.addf %115, %138 : vector<1x128xf32>
      %140 = vector.extract_strided_slice %30 {offsets = [8, 0], sizes = [1, 64], strides = [1, 1]} : vector<16x64xf32> to vector<1x64xf32>
      %141 = arith.truncf %140 : vector<1x64xf32> to vector<1x64xbf16>
      %c0_128 = arith.constant 0 : index
      %c8 = arith.constant 8 : index
      %c0_129 = arith.constant 0 : index
      %c0_130 = arith.constant 0 : index
      %142 = vector.load %arg5[%c0_128, %c8, %c0_129, %c0_130] : memref<1x16x64x128xbf16, #tpu.memory_space<vmem>>, vector<1x1x64x128xbf16>
      %143 = vector.shape_cast %142 : vector<1x1x64x128xbf16> to vector<64x128xbf16>
      %cst_131 = arith.constant dense<0.000000e+00> : vector<1x128xf32>
      %144 = tpu.matmul %141, %143, %cst_131 {dimension_numbers = #tpu.dot_dimension_numbers<[1], [0], [0], [1], [0, 0, 1, 1], [], []>} : vector<1x64xbf16>, vector<64x128xbf16>, vector<1x128xf32> -> vector<1x128xf32>
      %145 = arith.addf %121, %144 : vector<1x128xf32>
      %146 = vector.extract_strided_slice %30 {offsets = [9, 0], sizes = [1, 64], strides = [1, 1]} : vector<16x64xf32> to vector<1x64xf32>
      %147 = arith.truncf %146 : vector<1x64xf32> to vector<1x64xbf16>
      %c0_132 = arith.constant 0 : index
      %c9 = arith.constant 9 : index
      %c0_133 = arith.constant 0 : index
      %c0_134 = arith.constant 0 : index
      %148 = vector.load %arg5[%c0_132, %c9, %c0_133, %c0_134] : memref<1x16x64x128xbf16, #tpu.memory_space<vmem>>, vector<1x1x64x128xbf16>
      %149 = vector.shape_cast %148 : vector<1x1x64x128xbf16> to vector<64x128xbf16>
      %cst_135 = arith.constant dense<0.000000e+00> : vector<1x128xf32>
      %150 = tpu.matmul %147, %149, %cst_135 {dimension_numbers = #tpu.dot_dimension_numbers<[1], [0], [0], [1], [0, 0, 1, 1], [], []>} : vector<1x64xbf16>, vector<64x128xbf16>, vector<1x128xf32> -> vector<1x128xf32>
      %151 = arith.addf %127, %150 : vector<1x128xf32>
      %152 = vector.extract_strided_slice %30 {offsets = [10, 0], sizes = [1, 64], strides = [1, 1]} : vector<16x64xf32> to vector<1x64xf32>
      %153 = arith.truncf %152 : vector<1x64xf32> to vector<1x64xbf16>
      %c0_136 = arith.constant 0 : index
      %c10 = arith.constant 10 : index
      %c0_137 = arith.constant 0 : index
      %c0_138 = arith.constant 0 : index
      %154 = vector.load %arg5[%c0_136, %c10, %c0_137, %c0_138] : memref<1x16x64x128xbf16, #tpu.memory_space<vmem>>, vector<1x1x64x128xbf16>
      %155 = vector.shape_cast %154 : vector<1x1x64x128xbf16> to vector<64x128xbf16>
      %cst_139 = arith.constant dense<0.000000e+00> : vector<1x128xf32>
      %156 = tpu.matmul %153, %155, %cst_139 {dimension_numbers = #tpu.dot_dimension_numbers<[1], [0], [0], [1], [0, 0, 1, 1], [], []>} : vector<1x64xbf16>, vector<64x128xbf16>, vector<1x128xf32> -> vector<1x128xf32>
      %157 = arith.addf %133, %156 : vector<1x128xf32>
      %158 = vector.extract_strided_slice %30 {offsets = [11, 0], sizes = [1, 64], strides = [1, 1]} : vector<16x64xf32> to vector<1x64xf32>
      %159 = arith.truncf %158 : vector<1x64xf32> to vector<1x64xbf16>
      %c0_140 = arith.constant 0 : index
      %c11 = arith.constant 11 : index
      %c0_141 = arith.constant 0 : index
      %c0_142 = arith.constant 0 : index
      %160 = vector.load %arg5[%c0_140, %c11, %c0_141, %c0_142] : memref<1x16x64x128xbf16, #tpu.memory_space<vmem>>, vector<1x1x64x128xbf16>
      %161 = vector.shape_cast %160 : vector<1x1x64x128xbf16> to vector<64x128xbf16>
      %cst_143 = arith.constant dense<0.000000e+00> : vector<1x128xf32>
      %162 = tpu.matmul %159, %161, %cst_143 {dimension_numbers = #tpu.dot_dimension_numbers<[1], [0], [0], [1], [0, 0, 1, 1], [], []>} : vector<1x64xbf16>, vector<64x128xbf16>, vector<1x128xf32> -> vector<1x128xf32>
      %163 = arith.addf %139, %162 : vector<1x128xf32>
      %164 = vector.extract_strided_slice %30 {offsets = [12, 0], sizes = [1, 64], strides = [1, 1]} : vector<16x64xf32> to vector<1x64xf32>
      %165 = arith.truncf %164 : vector<1x64xf32> to vector<1x64xbf16>
      %c0_144 = arith.constant 0 : index
      %c12 = arith.constant 12 : index
      %c0_145 = arith.constant 0 : index
      %c0_146 = arith.constant 0 : index
      %166 = vector.load %arg5[%c0_144, %c12, %c0_145, %c0_146] : memref<1x16x64x128xbf16, #tpu.memory_space<vmem>>, vector<1x1x64x128xbf16>
      %167 = vector.shape_cast %166 : vector<1x1x64x128xbf16> to vector<64x128xbf16>
      %cst_147 = arith.constant dense<0.000000e+00> : vector<1x128xf32>
      %168 = tpu.matmul %165, %167, %cst_147 {dimension_numbers = #tpu.dot_dimension_numbers<[1], [0], [0], [1], [0, 0, 1, 1], [], []>} : vector<1x64xbf16>, vector<64x128xbf16>, vector<1x128xf32> -> vector<1x128xf32>
      %169 = arith.addf %145, %168 : vector<1x128xf32>
      %170 = vector.extract_strided_slice %30 {offsets = [13, 0], sizes = [1, 64], strides = [1, 1]} : vector<16x64xf32> to vector<1x64xf32>
      %171 = arith.truncf %170 : vector<1x64xf32> to vector<1x64xbf16>
      %c0_148 = arith.constant 0 : index
      %c13 = arith.constant 13 : index
      %c0_149 = arith.constant 0 : index
      %c0_150 = arith.constant 0 : index
      %172 = vector.load %arg5[%c0_148, %c13, %c0_149, %c0_150] : memref<1x16x64x128xbf16, #tpu.memory_space<vmem>>, vector<1x1x64x128xbf16>
      %173 = vector.shape_cast %172 : vector<1x1x64x128xbf16> to vector<64x128xbf16>
      %cst_151 = arith.constant dense<0.000000e+00> : vector<1x128xf32>
      %174 = tpu.matmul %171, %173, %cst_151 {dimension_numbers = #tpu.dot_dimension_numbers<[1], [0], [0], [1], [0, 0, 1, 1], [], []>} : vector<1x64xbf16>, vector<64x128xbf16>, vector<1x128xf32> -> vector<1x128xf32>
      %175 = arith.addf %151, %174 : vector<1x128xf32>
      %176 = vector.extract_strided_slice %30 {offsets = [14, 0], sizes = [1, 64], strides = [1, 1]} : vector<16x64xf32> to vector<1x64xf32>
      %177 = arith.truncf %176 : vector<1x64xf32> to vector<1x64xbf16>
      %c0_152 = arith.constant 0 : index
      %c14 = arith.constant 14 : index
      %c0_153 = arith.constant 0 : index
      %c0_154 = arith.constant 0 : index
      %178 = vector.load %arg5[%c0_152, %c14, %c0_153, %c0_154] : memref<1x16x64x128xbf16, #tpu.memory_space<vmem>>, vector<1x1x64x128xbf16>
      %179 = vector.shape_cast %178 : vector<1x1x64x128xbf16> to vector<64x128xbf16>
      %cst_155 = arith.constant dense<0.000000e+00> : vector<1x128xf32>
      %180 = tpu.matmul %177, %179, %cst_155 {dimension_numbers = #tpu.dot_dimension_numbers<[1], [0], [0], [1], [0, 0, 1, 1], [], []>} : vector<1x64xbf16>, vector<64x128xbf16>, vector<1x128xf32> -> vector<1x128xf32>
      %181 = arith.addf %157, %180 : vector<1x128xf32>
      %182 = vector.extract_strided_slice %30 {offsets = [15, 0], sizes = [1, 64], strides = [1, 1]} : vector<16x64xf32> to vector<1x64xf32>
      %183 = arith.truncf %182 : vector<1x64xf32> to vector<1x64xbf16>
      %c0_156 = arith.constant 0 : index
      %c15 = arith.constant 15 : index
      %c0_157 = arith.constant 0 : index
      %c0_158 = arith.constant 0 : index
      %184 = vector.load %arg5[%c0_156, %c15, %c0_157, %c0_158] : memref<1x16x64x128xbf16, #tpu.memory_space<vmem>>, vector<1x1x64x128xbf16>
      %185 = vector.shape_cast %184 : vector<1x1x64x128xbf16> to vector<64x128xbf16>
      %cst_159 = arith.constant dense<0.000000e+00> : vector<1x128xf32>
      %186 = tpu.matmul %183, %185, %cst_159 {dimension_numbers = #tpu.dot_dimension_numbers<[1], [0], [0], [1], [0, 0, 1, 1], [], []>} : vector<1x64xbf16>, vector<64x128xbf16>, vector<1x128xf32> -> vector<1x128xf32>
      %187 = arith.addf %163, %186 : vector<1x128xf32>
      %188 = arith.addf %169, %175 : vector<1x128xf32>
      %189 = arith.addf %188, %181 : vector<1x128xf32>
      %190 = arith.addf %189, %187 : vector<1x128xf32>
      %c0_160 = arith.constant 0 : index
      %c0_161 = arith.constant 0 : index
      %c0_162 = arith.constant 0 : index
      %191 = vector.load %arg6[%c0_160, %c0_161, %c0_162] : memref<1x1x128xf32, #tpu.memory_space<vmem>>, vector<1x1x128xf32>
      %192 = vector.shape_cast %191 : vector<1x1x128xf32> to vector<1x128xf32>
      %193 = arith.addf %190, %192 : vector<1x128xf32>
      %c0_163 = arith.constant 0 : index
      %c0_164 = arith.constant 0 : index
      %c0_165 = arith.constant 0 : index
      %194 = vector.load %arg7[%c0_163, %c0_164, %c0_165] : memref<1x1x128xf32, #tpu.memory_space<vmem>>, vector<1x1x128xf32>
      %195 = vector.shape_cast %194 : vector<1x1x128xf32> to vector<1x128xf32>
      %196 = vector.shape_cast %193 : vector<1x128xf32> to vector<1x1x128xf32>
      tpu.vector_store %arg7[%c0_163, %c0_164, %c0_165], %196 {strides = array<i32>} : memref<1x1x128xf32, #tpu.memory_space<vmem>>, vector<1x1x128xf32>,
    } else {
    }
    %c1_33 = arith.constant 1 : index
    %c0_34 = arith.constant 0 : index
    %34 = vector.load %arg8[%c1_33, %c0_34] : memref<18x64xf32, #tpu.memory_space<vmem>>, vector<16x64xf32>
    tpu.vector_store %arg8[%c1_33, %c0_34], %30 {strides = array<i32>} : memref<18x64xf32, #tpu.memory_space<vmem>>, vector<16x64xf32>,
    %c0_35 = arith.constant 0 : index
    %c0_36 = arith.constant 0 : index
    %35 = vector.load %arg8[%c0_35, %c0_36] : memref<18x64xf32, #tpu.memory_space<vmem>>, vector<16x64xf32>
    %36 = arith.truncf %35 : vector<16x64xf32> to vector<16x64xbf16>
    %c1_37 = arith.constant 1 : index
    %c0_38 = arith.constant 0 : index
    %37 = vector.load %arg8[%c1_37, %c0_38] : memref<18x64xf32, #tpu.memory_space<vmem>>, vector<16x64xf32>
    %38 = arith.truncf %37 : vector<16x64xf32> to vector<16x64xbf16>
    %c2_39 = arith.constant 2 : index
    %c0_40 = arith.constant 0 : index
    %39 = vector.load %arg8[%c2_39, %c0_40] : memref<18x64xf32, #tpu.memory_space<vmem>>, vector<16x64xf32>
    %40 = arith.truncf %39 : vector<16x64xf32> to vector<16x64xbf16>
    %c1_41 = arith.constant 1 : index
    %c0_42 = arith.constant 0 : index
    %c0_43 = arith.constant 0 : index
    %c0_44 = arith.constant 0 : index
    %41 = vector.load %arg3[%c1_41, %c0_42, %c0_43, %c0_44] : memref<3x3x64x64xbf16, #tpu.memory_space<vmem>>, vector<1x1x64x64xbf16>
    %42 = vector.shape_cast %41 : vector<1x1x64x64xbf16> to vector<64x64xbf16>
    %cst_45 = arith.constant dense<0.000000e+00> : vector<16x64xf32>
    %43 = tpu.matmul %36, %42, %cst_45 {dimension_numbers = #tpu.dot_dimension_numbers<[1], [0], [0], [1], [0, 0, 1, 1], [], []>} : vector<16x64xbf16>, vector<64x64xbf16>, vector<16x64xf32> -> vector<16x64xf32>
    %c1_46 = arith.constant 1 : index
    %c1_47 = arith.constant 1 : index
    %c0_48 = arith.constant 0 : index
    %c0_49 = arith.constant 0 : index
    %44 = vector.load %arg3[%c1_46, %c1_47, %c0_48, %c0_49] : memref<3x3x64x64xbf16, #tpu.memory_space<vmem>>, vector<1x1x64x64xbf16>
    %45 = vector.shape_cast %44 : vector<1x1x64x64xbf16> to vector<64x64xbf16>
    %cst_50 = arith.constant dense<0.000000e+00> : vector<16x64xf32>
    %46 = tpu.matmul %38, %45, %cst_50 {dimension_numbers = #tpu.dot_dimension_numbers<[1], [0], [0], [1], [0, 0, 1, 1], [], []>} : vector<16x64xbf16>, vector<64x64xbf16>, vector<16x64xf32> -> vector<16x64xf32>
    %47 = arith.addf %43, %46 : vector<16x64xf32>
    %c1_51 = arith.constant 1 : index
    %c2_52 = arith.constant 2 : index
    %c0_53 = arith.constant 0 : index
    %c0_54 = arith.constant 0 : index
    %48 = vector.load %arg3[%c1_51, %c2_52, %c0_53, %c0_54] : memref<3x3x64x64xbf16, #tpu.memory_space<vmem>>, vector<1x1x64x64xbf16>
    %49 = vector.shape_cast %48 : vector<1x1x64x64xbf16> to vector<64x64xbf16>
    %cst_55 = arith.constant dense<0.000000e+00> : vector<16x64xf32>
    %50 = tpu.matmul %40, %49, %cst_55 {dimension_numbers = #tpu.dot_dimension_numbers<[1], [0], [0], [1], [0, 0, 1, 1], [], []>} : vector<16x64xbf16>, vector<64x64xbf16>, vector<16x64xf32> -> vector<16x64xf32>
    %51 = arith.addf %47, %50 : vector<16x64xf32>
    %c1_56 = arith.constant 1 : index
    %c0_57 = arith.constant 0 : index
    %c0_58 = arith.constant 0 : index
    %52 = vector.load %arg4[%c1_56, %c0_57, %c0_58] : memref<3x1x64xf32, #tpu.memory_space<vmem>>, vector<1x1x64xf32>
    %53 = vector.shape_cast %52 : vector<1x1x64xf32> to vector<1x64xf32>
    %54 = vector.broadcast %53 : vector<1x64xf32> to vector<16x64xf32>
    %55 = arith.addf %51, %54 : vector<16x64xf32>
    %cst_59 = arith.constant 0.000000e+00 : f32
    %56 = vector.broadcast %cst_59 : f32 to vector<16x64xf32>
    %57 = arith.maximumf %55, %56 : vector<16x64xf32>
    %c1_i32 = arith.constant 1 : i32
    %58 = arith.cmpi eq, %0, %c1_i32 : i32
    %59 = arith.extui %58 : i1 to i32
    %c0_i32_60 = arith.constant 0 : i32
    %60 = arith.cmpi ne, %59, %c0_i32_60 : i32
    scf.if %60 {
      %cst_89 = arith.constant 0.000000e+00 : f32
      %88 = vector.broadcast %cst_89 : f32 to vector<1x128xf32>
      %cst_90 = arith.constant 0.000000e+00 : f32
      %89 = vector.broadcast %cst_90 : f32 to vector<1x128xf32>
      %cst_91 = arith.constant 0.000000e+00 : f32
      %90 = vector.broadcast %cst_91 : f32 to vector<1x128xf32>
      %cst_92 = arith.constant 0.000000e+00 : f32
      %91 = vector.broadcast %cst_92 : f32 to vector<1x128xf32>
      %92 = vector.extract_strided_slice %57 {offsets = [0, 0], sizes = [1, 64], strides = [1, 1]} : vector<16x64xf32> to vector<1x64xf32>
      %93 = arith.truncf %92 : vector<1x64xf32> to vector<1x64xbf16>
      %c0_93 = arith.constant 0 : index
      %c0_94 = arith.constant 0 : index
      %c0_95 = arith.constant 0 : index
      %c0_96 = arith.constant 0 : index
      %94 = vector.load %arg5[%c0_93, %c0_94, %c0_95, %c0_96] : memref<1x16x64x128xbf16, #tpu.memory_space<vmem>>, vector<1x1x64x128xbf16>
      %95 = vector.shape_cast %94 : vector<1x1x64x128xbf16> to vector<64x128xbf16>
      %cst_97 = arith.constant dense<0.000000e+00> : vector<1x128xf32>
      %96 = tpu.matmul %93, %95, %cst_97 {dimension_numbers = #tpu.dot_dimension_numbers<[1], [0], [0], [1], [0, 0, 1, 1], [], []>} : vector<1x64xbf16>, vector<64x128xbf16>, vector<1x128xf32> -> vector<1x128xf32>
      %97 = arith.addf %88, %96 : vector<1x128xf32>
      %98 = vector.extract_strided_slice %57 {offsets = [1, 0], sizes = [1, 64], strides = [1, 1]} : vector<16x64xf32> to vector<1x64xf32>
      %99 = arith.truncf %98 : vector<1x64xf32> to vector<1x64xbf16>
      %c0_98 = arith.constant 0 : index
      %c1_99 = arith.constant 1 : index
      %c0_100 = arith.constant 0 : index
      %c0_101 = arith.constant 0 : index
      %100 = vector.load %arg5[%c0_98, %c1_99, %c0_100, %c0_101] : memref<1x16x64x128xbf16, #tpu.memory_space<vmem>>, vector<1x1x64x128xbf16>
      %101 = vector.shape_cast %100 : vector<1x1x64x128xbf16> to vector<64x128xbf16>
      %cst_102 = arith.constant dense<0.000000e+00> : vector<1x128xf32>
      %102 = tpu.matmul %99, %101, %cst_102 {dimension_numbers = #tpu.dot_dimension_numbers<[1], [0], [0], [1], [0, 0, 1, 1], [], []>} : vector<1x64xbf16>, vector<64x128xbf16>, vector<1x128xf32> -> vector<1x128xf32>
      %103 = arith.addf %89, %102 : vector<1x128xf32>
      %104 = vector.extract_strided_slice %57 {offsets = [2, 0], sizes = [1, 64], strides = [1, 1]} : vector<16x64xf32> to vector<1x64xf32>
      %105 = arith.truncf %104 : vector<1x64xf32> to vector<1x64xbf16>
      %c0_103 = arith.constant 0 : index
      %c2_104 = arith.constant 2 : index
      %c0_105 = arith.constant 0 : index
      %c0_106 = arith.constant 0 : index
      %106 = vector.load %arg5[%c0_103, %c2_104, %c0_105, %c0_106] : memref<1x16x64x128xbf16, #tpu.memory_space<vmem>>, vector<1x1x64x128xbf16>
      %107 = vector.shape_cast %106 : vector<1x1x64x128xbf16> to vector<64x128xbf16>
      %cst_107 = arith.constant dense<0.000000e+00> : vector<1x128xf32>
      %108 = tpu.matmul %105, %107, %cst_107 {dimension_numbers = #tpu.dot_dimension_numbers<[1], [0], [0], [1], [0, 0, 1, 1], [], []>} : vector<1x64xbf16>, vector<64x128xbf16>, vector<1x128xf32> -> vector<1x128xf32>
      %109 = arith.addf %90, %108 : vector<1x128xf32>
      %110 = vector.extract_strided_slice %57 {offsets = [3, 0], sizes = [1, 64], strides = [1, 1]} : vector<16x64xf32> to vector<1x64xf32>
      %111 = arith.truncf %110 : vector<1x64xf32> to vector<1x64xbf16>
      %c0_108 = arith.constant 0 : index
      %c3 = arith.constant 3 : index
      %c0_109 = arith.constant 0 : index
      %c0_110 = arith.constant 0 : index
      %112 = vector.load %arg5[%c0_108, %c3, %c0_109, %c0_110] : memref<1x16x64x128xbf16, #tpu.memory_space<vmem>>, vector<1x1x64x128xbf16>
      %113 = vector.shape_cast %112 : vector<1x1x64x128xbf16> to vector<64x128xbf16>
      %cst_111 = arith.constant dense<0.000000e+00> : vector<1x128xf32>
      %114 = tpu.matmul %111, %113, %cst_111 {dimension_numbers = #tpu.dot_dimension_numbers<[1], [0], [0], [1], [0, 0, 1, 1], [], []>} : vector<1x64xbf16>, vector<64x128xbf16>, vector<1x128xf32> -> vector<1x128xf32>
      %115 = arith.addf %91, %114 : vector<1x128xf32>
      %116 = vector.extract_strided_slice %57 {offsets = [4, 0], sizes = [1, 64], strides = [1, 1]} : vector<16x64xf32> to vector<1x64xf32>
      %117 = arith.truncf %116 : vector<1x64xf32> to vector<1x64xbf16>
      %c0_112 = arith.constant 0 : index
      %c4 = arith.constant 4 : index
      %c0_113 = arith.constant 0 : index
      %c0_114 = arith.constant 0 : index
      %118 = vector.load %arg5[%c0_112, %c4, %c0_113, %c0_114] : memref<1x16x64x128xbf16, #tpu.memory_space<vmem>>, vector<1x1x64x128xbf16>
      %119 = vector.shape_cast %118 : vector<1x1x64x128xbf16> to vector<64x128xbf16>
      %cst_115 = arith.constant dense<0.000000e+00> : vector<1x128xf32>
      %120 = tpu.matmul %117, %119, %cst_115 {dimension_numbers = #tpu.dot_dimension_numbers<[1], [0], [0], [1], [0, 0, 1, 1], [], []>} : vector<1x64xbf16>, vector<64x128xbf16>, vector<1x128xf32> -> vector<1x128xf32>
      %121 = arith.addf %97, %120 : vector<1x128xf32>
      %122 = vector.extract_strided_slice %57 {offsets = [5, 0], sizes = [1, 64], strides = [1, 1]} : vector<16x64xf32> to vector<1x64xf32>
      %123 = arith.truncf %122 : vector<1x64xf32> to vector<1x64xbf16>
      %c0_116 = arith.constant 0 : index
      %c5 = arith.constant 5 : index
      %c0_117 = arith.constant 0 : index
      %c0_118 = arith.constant 0 : index
      %124 = vector.load %arg5[%c0_116, %c5, %c0_117, %c0_118] : memref<1x16x64x128xbf16, #tpu.memory_space<vmem>>, vector<1x1x64x128xbf16>
      %125 = vector.shape_cast %124 : vector<1x1x64x128xbf16> to vector<64x128xbf16>
      %cst_119 = arith.constant dense<0.000000e+00> : vector<1x128xf32>
      %126 = tpu.matmul %123, %125, %cst_119 {dimension_numbers = #tpu.dot_dimension_numbers<[1], [0], [0], [1], [0, 0, 1, 1], [], []>} : vector<1x64xbf16>, vector<64x128xbf16>, vector<1x128xf32> -> vector<1x128xf32>
      %127 = arith.addf %103, %126 : vector<1x128xf32>
      %128 = vector.extract_strided_slice %57 {offsets = [6, 0], sizes = [1, 64], strides = [1, 1]} : vector<16x64xf32> to vector<1x64xf32>
      %129 = arith.truncf %128 : vector<1x64xf32> to vector<1x64xbf16>
      %c0_120 = arith.constant 0 : index
      %c6 = arith.constant 6 : index
      %c0_121 = arith.constant 0 : index
      %c0_122 = arith.constant 0 : index
      %130 = vector.load %arg5[%c0_120, %c6, %c0_121, %c0_122] : memref<1x16x64x128xbf16, #tpu.memory_space<vmem>>, vector<1x1x64x128xbf16>
      %131 = vector.shape_cast %130 : vector<1x1x64x128xbf16> to vector<64x128xbf16>
      %cst_123 = arith.constant dense<0.000000e+00> : vector<1x128xf32>
      %132 = tpu.matmul %129, %131, %cst_123 {dimension_numbers = #tpu.dot_dimension_numbers<[1], [0], [0], [1], [0, 0, 1, 1], [], []>} : vector<1x64xbf16>, vector<64x128xbf16>, vector<1x128xf32> -> vector<1x128xf32>
      %133 = arith.addf %109, %132 : vector<1x128xf32>
      %134 = vector.extract_strided_slice %57 {offsets = [7, 0], sizes = [1, 64], strides = [1, 1]} : vector<16x64xf32> to vector<1x64xf32>
      %135 = arith.truncf %134 : vector<1x64xf32> to vector<1x64xbf16>
      %c0_124 = arith.constant 0 : index
      %c7 = arith.constant 7 : index
      %c0_125 = arith.constant 0 : index
      %c0_126 = arith.constant 0 : index
      %136 = vector.load %arg5[%c0_124, %c7, %c0_125, %c0_126] : memref<1x16x64x128xbf16, #tpu.memory_space<vmem>>, vector<1x1x64x128xbf16>
      %137 = vector.shape_cast %136 : vector<1x1x64x128xbf16> to vector<64x128xbf16>
      %cst_127 = arith.constant dense<0.000000e+00> : vector<1x128xf32>
      %138 = tpu.matmul %135, %137, %cst_127 {dimension_numbers = #tpu.dot_dimension_numbers<[1], [0], [0], [1], [0, 0, 1, 1], [], []>} : vector<1x64xbf16>, vector<64x128xbf16>, vector<1x128xf32> -> vector<1x128xf32>
      %139 = arith.addf %115, %138 : vector<1x128xf32>
      %140 = vector.extract_strided_slice %57 {offsets = [8, 0], sizes = [1, 64], strides = [1, 1]} : vector<16x64xf32> to vector<1x64xf32>
      %141 = arith.truncf %140 : vector<1x64xf32> to vector<1x64xbf16>
      %c0_128 = arith.constant 0 : index
      %c8 = arith.constant 8 : index
      %c0_129 = arith.constant 0 : index
      %c0_130 = arith.constant 0 : index
      %142 = vector.load %arg5[%c0_128, %c8, %c0_129, %c0_130] : memref<1x16x64x128xbf16, #tpu.memory_space<vmem>>, vector<1x1x64x128xbf16>
      %143 = vector.shape_cast %142 : vector<1x1x64x128xbf16> to vector<64x128xbf16>
      %cst_131 = arith.constant dense<0.000000e+00> : vector<1x128xf32>
      %144 = tpu.matmul %141, %143, %cst_131 {dimension_numbers = #tpu.dot_dimension_numbers<[1], [0], [0], [1], [0, 0, 1, 1], [], []>} : vector<1x64xbf16>, vector<64x128xbf16>, vector<1x128xf32> -> vector<1x128xf32>
      %145 = arith.addf %121, %144 : vector<1x128xf32>
      %146 = vector.extract_strided_slice %57 {offsets = [9, 0], sizes = [1, 64], strides = [1, 1]} : vector<16x64xf32> to vector<1x64xf32>
      %147 = arith.truncf %146 : vector<1x64xf32> to vector<1x64xbf16>
      %c0_132 = arith.constant 0 : index
      %c9 = arith.constant 9 : index
      %c0_133 = arith.constant 0 : index
      %c0_134 = arith.constant 0 : index
      %148 = vector.load %arg5[%c0_132, %c9, %c0_133, %c0_134] : memref<1x16x64x128xbf16, #tpu.memory_space<vmem>>, vector<1x1x64x128xbf16>
      %149 = vector.shape_cast %148 : vector<1x1x64x128xbf16> to vector<64x128xbf16>
      %cst_135 = arith.constant dense<0.000000e+00> : vector<1x128xf32>
      %150 = tpu.matmul %147, %149, %cst_135 {dimension_numbers = #tpu.dot_dimension_numbers<[1], [0], [0], [1], [0, 0, 1, 1], [], []>} : vector<1x64xbf16>, vector<64x128xbf16>, vector<1x128xf32> -> vector<1x128xf32>
      %151 = arith.addf %127, %150 : vector<1x128xf32>
      %152 = vector.extract_strided_slice %57 {offsets = [10, 0], sizes = [1, 64], strides = [1, 1]} : vector<16x64xf32> to vector<1x64xf32>
      %153 = arith.truncf %152 : vector<1x64xf32> to vector<1x64xbf16>
      %c0_136 = arith.constant 0 : index
      %c10 = arith.constant 10 : index
      %c0_137 = arith.constant 0 : index
      %c0_138 = arith.constant 0 : index
      %154 = vector.load %arg5[%c0_136, %c10, %c0_137, %c0_138] : memref<1x16x64x128xbf16, #tpu.memory_space<vmem>>, vector<1x1x64x128xbf16>
      %155 = vector.shape_cast %154 : vector<1x1x64x128xbf16> to vector<64x128xbf16>
      %cst_139 = arith.constant dense<0.000000e+00> : vector<1x128xf32>
      %156 = tpu.matmul %153, %155, %cst_139 {dimension_numbers = #tpu.dot_dimension_numbers<[1], [0], [0], [1], [0, 0, 1, 1], [], []>} : vector<1x64xbf16>, vector<64x128xbf16>, vector<1x128xf32> -> vector<1x128xf32>
      %157 = arith.addf %133, %156 : vector<1x128xf32>
      %158 = vector.extract_strided_slice %57 {offsets = [11, 0], sizes = [1, 64], strides = [1, 1]} : vector<16x64xf32> to vector<1x64xf32>
      %159 = arith.truncf %158 : vector<1x64xf32> to vector<1x64xbf16>
      %c0_140 = arith.constant 0 : index
      %c11 = arith.constant 11 : index
      %c0_141 = arith.constant 0 : index
      %c0_142 = arith.constant 0 : index
      %160 = vector.load %arg5[%c0_140, %c11, %c0_141, %c0_142] : memref<1x16x64x128xbf16, #tpu.memory_space<vmem>>, vector<1x1x64x128xbf16>
      %161 = vector.shape_cast %160 : vector<1x1x64x128xbf16> to vector<64x128xbf16>
      %cst_143 = arith.constant dense<0.000000e+00> : vector<1x128xf32>
      %162 = tpu.matmul %159, %161, %cst_143 {dimension_numbers = #tpu.dot_dimension_numbers<[1], [0], [0], [1], [0, 0, 1, 1], [], []>} : vector<1x64xbf16>, vector<64x128xbf16>, vector<1x128xf32> -> vector<1x128xf32>
      %163 = arith.addf %139, %162 : vector<1x128xf32>
      %164 = vector.extract_strided_slice %57 {offsets = [12, 0], sizes = [1, 64], strides = [1, 1]} : vector<16x64xf32> to vector<1x64xf32>
      %165 = arith.truncf %164 : vector<1x64xf32> to vector<1x64xbf16>
      %c0_144 = arith.constant 0 : index
      %c12 = arith.constant 12 : index
      %c0_145 = arith.constant 0 : index
      %c0_146 = arith.constant 0 : index
      %166 = vector.load %arg5[%c0_144, %c12, %c0_145, %c0_146] : memref<1x16x64x128xbf16, #tpu.memory_space<vmem>>, vector<1x1x64x128xbf16>
      %167 = vector.shape_cast %166 : vector<1x1x64x128xbf16> to vector<64x128xbf16>
      %cst_147 = arith.constant dense<0.000000e+00> : vector<1x128xf32>
      %168 = tpu.matmul %165, %167, %cst_147 {dimension_numbers = #tpu.dot_dimension_numbers<[1], [0], [0], [1], [0, 0, 1, 1], [], []>} : vector<1x64xbf16>, vector<64x128xbf16>, vector<1x128xf32> -> vector<1x128xf32>
      %169 = arith.addf %145, %168 : vector<1x128xf32>
      %170 = vector.extract_strided_slice %57 {offsets = [13, 0], sizes = [1, 64], strides = [1, 1]} : vector<16x64xf32> to vector<1x64xf32>
      %171 = arith.truncf %170 : vector<1x64xf32> to vector<1x64xbf16>
      %c0_148 = arith.constant 0 : index
      %c13 = arith.constant 13 : index
      %c0_149 = arith.constant 0 : index
      %c0_150 = arith.constant 0 : index
      %172 = vector.load %arg5[%c0_148, %c13, %c0_149, %c0_150] : memref<1x16x64x128xbf16, #tpu.memory_space<vmem>>, vector<1x1x64x128xbf16>
      %173 = vector.shape_cast %172 : vector<1x1x64x128xbf16> to vector<64x128xbf16>
      %cst_151 = arith.constant dense<0.000000e+00> : vector<1x128xf32>
      %174 = tpu.matmul %171, %173, %cst_151 {dimension_numbers = #tpu.dot_dimension_numbers<[1], [0], [0], [1], [0, 0, 1, 1], [], []>} : vector<1x64xbf16>, vector<64x128xbf16>, vector<1x128xf32> -> vector<1x128xf32>
      %175 = arith.addf %151, %174 : vector<1x128xf32>
      %176 = vector.extract_strided_slice %57 {offsets = [14, 0], sizes = [1, 64], strides = [1, 1]} : vector<16x64xf32> to vector<1x64xf32>
      %177 = arith.truncf %176 : vector<1x64xf32> to vector<1x64xbf16>
      %c0_152 = arith.constant 0 : index
      %c14 = arith.constant 14 : index
      %c0_153 = arith.constant 0 : index
      %c0_154 = arith.constant 0 : index
      %178 = vector.load %arg5[%c0_152, %c14, %c0_153, %c0_154] : memref<1x16x64x128xbf16, #tpu.memory_space<vmem>>, vector<1x1x64x128xbf16>
      %179 = vector.shape_cast %178 : vector<1x1x64x128xbf16> to vector<64x128xbf16>
      %cst_155 = arith.constant dense<0.000000e+00> : vector<1x128xf32>
      %180 = tpu.matmul %177, %179, %cst_155 {dimension_numbers = #tpu.dot_dimension_numbers<[1], [0], [0], [1], [0, 0, 1, 1], [], []>} : vector<1x64xbf16>, vector<64x128xbf16>, vector<1x128xf32> -> vector<1x128xf32>
      %181 = arith.addf %157, %180 : vector<1x128xf32>
      %182 = vector.extract_strided_slice %57 {offsets = [15, 0], sizes = [1, 64], strides = [1, 1]} : vector<16x64xf32> to vector<1x64xf32>
      %183 = arith.truncf %182 : vector<1x64xf32> to vector<1x64xbf16>
      %c0_156 = arith.constant 0 : index
      %c15 = arith.constant 15 : index
      %c0_157 = arith.constant 0 : index
      %c0_158 = arith.constant 0 : index
      %184 = vector.load %arg5[%c0_156, %c15, %c0_157, %c0_158] : memref<1x16x64x128xbf16, #tpu.memory_space<vmem>>, vector<1x1x64x128xbf16>
      %185 = vector.shape_cast %184 : vector<1x1x64x128xbf16> to vector<64x128xbf16>
      %cst_159 = arith.constant dense<0.000000e+00> : vector<1x128xf32>
      %186 = tpu.matmul %183, %185, %cst_159 {dimension_numbers = #tpu.dot_dimension_numbers<[1], [0], [0], [1], [0, 0, 1, 1], [], []>} : vector<1x64xbf16>, vector<64x128xbf16>, vector<1x128xf32> -> vector<1x128xf32>
      %187 = arith.addf %163, %186 : vector<1x128xf32>
      %188 = arith.addf %169, %175 : vector<1x128xf32>
      %189 = arith.addf %188, %181 : vector<1x128xf32>
      %190 = arith.addf %189, %187 : vector<1x128xf32>
      %c0_160 = arith.constant 0 : index
      %c0_161 = arith.constant 0 : index
      %c0_162 = arith.constant 0 : index
      %191 = vector.load %arg6[%c0_160, %c0_161, %c0_162] : memref<1x1x128xf32, #tpu.memory_space<vmem>>, vector<1x1x128xf32>
      %192 = vector.shape_cast %191 : vector<1x1x128xf32> to vector<1x128xf32>
      %193 = arith.addf %190, %192 : vector<1x128xf32>
      %c0_163 = arith.constant 0 : index
      %c0_164 = arith.constant 0 : index
      %c0_165 = arith.constant 0 : index
      %194 = vector.load %arg7[%c0_163, %c0_164, %c0_165] : memref<1x1x128xf32, #tpu.memory_space<vmem>>, vector<1x1x128xf32>
      %195 = vector.shape_cast %194 : vector<1x1x128xf32> to vector<1x128xf32>
      %196 = vector.shape_cast %193 : vector<1x128xf32> to vector<1x1x128xf32>
      tpu.vector_store %arg7[%c0_163, %c0_164, %c0_165], %196 {strides = array<i32>} : memref<1x1x128xf32, #tpu.memory_space<vmem>>, vector<1x1x128xf32>,
    } else {
    }
    %c1_61 = arith.constant 1 : index
    %c0_62 = arith.constant 0 : index
    %61 = vector.load %arg8[%c1_61, %c0_62] : memref<18x64xf32, #tpu.memory_space<vmem>>, vector<16x64xf32>
    tpu.vector_store %arg8[%c1_61, %c0_62], %57 {strides = array<i32>} : memref<18x64xf32, #tpu.memory_space<vmem>>, vector<16x64xf32>,
    %c0_63 = arith.constant 0 : index
    %c0_64 = arith.constant 0 : index
    %62 = vector.load %arg8[%c0_63, %c0_64] : memref<18x64xf32, #tpu.memory_space<vmem>>, vector<16x64xf32>
    %63 = arith.truncf %62 : vector<16x64xf32> to vector<16x64xbf16>
    %c1_65 = arith.constant 1 : index
    %c0_66 = arith.constant 0 : index
    %64 = vector.load %arg8[%c1_65, %c0_66] : memref<18x64xf32, #tpu.memory_space<vmem>>, vector<16x64xf32>
    %65 = arith.truncf %64 : vector<16x64xf32> to vector<16x64xbf16>
    %c2_67 = arith.constant 2 : index
    %c0_68 = arith.constant 0 : index
    %66 = vector.load %arg8[%c2_67, %c0_68] : memref<18x64xf32, #tpu.memory_space<vmem>>, vector<16x64xf32>
    %67 = arith.truncf %66 : vector<16x64xf32> to vector<16x64xbf16>
    %c2_69 = arith.constant 2 : index
    %c0_70 = arith.constant 0 : index
    %c0_71 = arith.constant 0 : index
    %c0_72 = arith.constant 0 : index
    %68 = vector.load %arg3[%c2_69, %c0_70, %c0_71, %c0_72] : memref<3x3x64x64xbf16, #tpu.memory_space<vmem>>, vector<1x1x64x64xbf16>
    %69 = vector.shape_cast %68 : vector<1x1x64x64xbf16> to vector<64x64xbf16>
    %cst_73 = arith.constant dense<0.000000e+00> : vector<16x64xf32>
    %70 = tpu.matmul %63, %69, %cst_73 {dimension_numbers = #tpu.dot_dimension_numbers<[1], [0], [0], [1], [0, 0, 1, 1], [], []>} : vector<16x64xbf16>, vector<64x64xbf16>, vector<16x64xf32> -> vector<16x64xf32>
    %c2_74 = arith.constant 2 : index
    %c1_75 = arith.constant 1 : index
    %c0_76 = arith.constant 0 : index
    %c0_77 = arith.constant 0 : index
    %71 = vector.load %arg3[%c2_74, %c1_75, %c0_76, %c0_77] : memref<3x3x64x64xbf16, #tpu.memory_space<vmem>>, vector<1x1x64x64xbf16>
    %72 = vector.shape_cast %71 : vector<1x1x64x64xbf16> to vector<64x64xbf16>
    %cst_78 = arith.constant dense<0.000000e+00> : vector<16x64xf32>
    %73 = tpu.matmul %65, %72, %cst_78 {dimension_numbers = #tpu.dot_dimension_numbers<[1], [0], [0], [1], [0, 0, 1, 1], [], []>} : vector<16x64xbf16>, vector<64x64xbf16>, vector<16x64xf32> -> vector<16x64xf32>
    %74 = arith.addf %70, %73 : vector<16x64xf32>
    %c2_79 = arith.constant 2 : index
    %c2_80 = arith.constant 2 : index
    %c0_81 = arith.constant 0 : index
    %c0_82 = arith.constant 0 : index
    %75 = vector.load %arg3[%c2_79, %c2_80, %c0_81, %c0_82] : memref<3x3x64x64xbf16, #tpu.memory_space<vmem>>, vector<1x1x64x64xbf16>
    %76 = vector.shape_cast %75 : vector<1x1x64x64xbf16> to vector<64x64xbf16>
    %cst_83 = arith.constant dense<0.000000e+00> : vector<16x64xf32>
    %77 = tpu.matmul %67, %76, %cst_83 {dimension_numbers = #tpu.dot_dimension_numbers<[1], [0], [0], [1], [0, 0, 1, 1], [], []>} : vector<16x64xbf16>, vector<64x64xbf16>, vector<16x64xf32> -> vector<16x64xf32>
    %78 = arith.addf %74, %77 : vector<16x64xf32>
    %c2_84 = arith.constant 2 : index
    %c0_85 = arith.constant 0 : index
    %c0_86 = arith.constant 0 : index
    %79 = vector.load %arg4[%c2_84, %c0_85, %c0_86] : memref<3x1x64xf32, #tpu.memory_space<vmem>>, vector<1x1x64xf32>
    %80 = vector.shape_cast %79 : vector<1x1x64xf32> to vector<1x64xf32>
    %81 = vector.broadcast %80 : vector<1x64xf32> to vector<16x64xf32>
    %82 = arith.addf %78, %81 : vector<16x64xf32>
    %cst_87 = arith.constant 0.000000e+00 : f32
    %83 = vector.broadcast %cst_87 : f32 to vector<16x64xf32>
    %84 = arith.maximumf %82, %83 : vector<16x64xf32>
    %c2_i32 = arith.constant 2 : i32
    %85 = arith.cmpi eq, %0, %c2_i32 : i32
    %86 = arith.extui %85 : i1 to i32
    %c0_i32_88 = arith.constant 0 : i32
    %87 = arith.cmpi ne, %86, %c0_i32_88 : i32
    scf.if %87 {
      %cst_89 = arith.constant 0.000000e+00 : f32
      %88 = vector.broadcast %cst_89 : f32 to vector<1x128xf32>
      %cst_90 = arith.constant 0.000000e+00 : f32
      %89 = vector.broadcast %cst_90 : f32 to vector<1x128xf32>
      %cst_91 = arith.constant 0.000000e+00 : f32
      %90 = vector.broadcast %cst_91 : f32 to vector<1x128xf32>
      %cst_92 = arith.constant 0.000000e+00 : f32
      %91 = vector.broadcast %cst_92 : f32 to vector<1x128xf32>
      %92 = vector.extract_strided_slice %84 {offsets = [0, 0], sizes = [1, 64], strides = [1, 1]} : vector<16x64xf32> to vector<1x64xf32>
      %93 = arith.truncf %92 : vector<1x64xf32> to vector<1x64xbf16>
      %c0_93 = arith.constant 0 : index
      %c0_94 = arith.constant 0 : index
      %c0_95 = arith.constant 0 : index
      %c0_96 = arith.constant 0 : index
      %94 = vector.load %arg5[%c0_93, %c0_94, %c0_95, %c0_96] : memref<1x16x64x128xbf16, #tpu.memory_space<vmem>>, vector<1x1x64x128xbf16>
      %95 = vector.shape_cast %94 : vector<1x1x64x128xbf16> to vector<64x128xbf16>
      %cst_97 = arith.constant dense<0.000000e+00> : vector<1x128xf32>
      %96 = tpu.matmul %93, %95, %cst_97 {dimension_numbers = #tpu.dot_dimension_numbers<[1], [0], [0], [1], [0, 0, 1, 1], [], []>} : vector<1x64xbf16>, vector<64x128xbf16>, vector<1x128xf32> -> vector<1x128xf32>
      %97 = arith.addf %88, %96 : vector<1x128xf32>
      %98 = vector.extract_strided_slice %84 {offsets = [1, 0], sizes = [1, 64], strides = [1, 1]} : vector<16x64xf32> to vector<1x64xf32>
      %99 = arith.truncf %98 : vector<1x64xf32> to vector<1x64xbf16>
      %c0_98 = arith.constant 0 : index
      %c1_99 = arith.constant 1 : index
      %c0_100 = arith.constant 0 : index
      %c0_101 = arith.constant 0 : index
      %100 = vector.load %arg5[%c0_98, %c1_99, %c0_100, %c0_101] : memref<1x16x64x128xbf16, #tpu.memory_space<vmem>>, vector<1x1x64x128xbf16>
      %101 = vector.shape_cast %100 : vector<1x1x64x128xbf16> to vector<64x128xbf16>
      %cst_102 = arith.constant dense<0.000000e+00> : vector<1x128xf32>
      %102 = tpu.matmul %99, %101, %cst_102 {dimension_numbers = #tpu.dot_dimension_numbers<[1], [0], [0], [1], [0, 0, 1, 1], [], []>} : vector<1x64xbf16>, vector<64x128xbf16>, vector<1x128xf32> -> vector<1x128xf32>
      %103 = arith.addf %89, %102 : vector<1x128xf32>
      %104 = vector.extract_strided_slice %84 {offsets = [2, 0], sizes = [1, 64], strides = [1, 1]} : vector<16x64xf32> to vector<1x64xf32>
      %105 = arith.truncf %104 : vector<1x64xf32> to vector<1x64xbf16>
      %c0_103 = arith.constant 0 : index
      %c2_104 = arith.constant 2 : index
      %c0_105 = arith.constant 0 : index
      %c0_106 = arith.constant 0 : index
      %106 = vector.load %arg5[%c0_103, %c2_104, %c0_105, %c0_106] : memref<1x16x64x128xbf16, #tpu.memory_space<vmem>>, vector<1x1x64x128xbf16>
      %107 = vector.shape_cast %106 : vector<1x1x64x128xbf16> to vector<64x128xbf16>
      %cst_107 = arith.constant dense<0.000000e+00> : vector<1x128xf32>
      %108 = tpu.matmul %105, %107, %cst_107 {dimension_numbers = #tpu.dot_dimension_numbers<[1], [0], [0], [1], [0, 0, 1, 1], [], []>} : vector<1x64xbf16>, vector<64x128xbf16>, vector<1x128xf32> -> vector<1x128xf32>
      %109 = arith.addf %90, %108 : vector<1x128xf32>
      %110 = vector.extract_strided_slice %84 {offsets = [3, 0], sizes = [1, 64], strides = [1, 1]} : vector<16x64xf32> to vector<1x64xf32>
      %111 = arith.truncf %110 : vector<1x64xf32> to vector<1x64xbf16>
      %c0_108 = arith.constant 0 : index
      %c3 = arith.constant 3 : index
      %c0_109 = arith.constant 0 : index
      %c0_110 = arith.constant 0 : index
      %112 = vector.load %arg5[%c0_108, %c3, %c0_109, %c0_110] : memref<1x16x64x128xbf16, #tpu.memory_space<vmem>>, vector<1x1x64x128xbf16>
      %113 = vector.shape_cast %112 : vector<1x1x64x128xbf16> to vector<64x128xbf16>
      %cst_111 = arith.constant dense<0.000000e+00> : vector<1x128xf32>
      %114 = tpu.matmul %111, %113, %cst_111 {dimension_numbers = #tpu.dot_dimension_numbers<[1], [0], [0], [1], [0, 0, 1, 1], [], []>} : vector<1x64xbf16>, vector<64x128xbf16>, vector<1x128xf32> -> vector<1x128xf32>
      %115 = arith.addf %91, %114 : vector<1x128xf32>
      %116 = vector.extract_strided_slice %84 {offsets = [4, 0], sizes = [1, 64], strides = [1, 1]} : vector<16x64xf32> to vector<1x64xf32>
      %117 = arith.truncf %116 : vector<1x64xf32> to vector<1x64xbf16>
      %c0_112 = arith.constant 0 : index
      %c4 = arith.constant 4 : index
      %c0_113 = arith.constant 0 : index
      %c0_114 = arith.constant 0 : index
      %118 = vector.load %arg5[%c0_112, %c4, %c0_113, %c0_114] : memref<1x16x64x128xbf16, #tpu.memory_space<vmem>>, vector<1x1x64x128xbf16>
      %119 = vector.shape_cast %118 : vector<1x1x64x128xbf16> to vector<64x128xbf16>
      %cst_115 = arith.constant dense<0.000000e+00> : vector<1x128xf32>
      %120 = tpu.matmul %117, %119, %cst_115 {dimension_numbers = #tpu.dot_dimension_numbers<[1], [0], [0], [1], [0, 0, 1, 1], [], []>} : vector<1x64xbf16>, vector<64x128xbf16>, vector<1x128xf32> -> vector<1x128xf32>
      %121 = arith.addf %97, %120 : vector<1x128xf32>
      %122 = vector.extract_strided_slice %84 {offsets = [5, 0], sizes = [1, 64], strides = [1, 1]} : vector<16x64xf32> to vector<1x64xf32>
      %123 = arith.truncf %122 : vector<1x64xf32> to vector<1x64xbf16>
      %c0_116 = arith.constant 0 : index
      %c5 = arith.constant 5 : index
      %c0_117 = arith.constant 0 : index
      %c0_118 = arith.constant 0 : index
      %124 = vector.load %arg5[%c0_116, %c5, %c0_117, %c0_118] : memref<1x16x64x128xbf16, #tpu.memory_space<vmem>>, vector<1x1x64x128xbf16>
      %125 = vector.shape_cast %124 : vector<1x1x64x128xbf16> to vector<64x128xbf16>
      %cst_119 = arith.constant dense<0.000000e+00> : vector<1x128xf32>
      %126 = tpu.matmul %123, %125, %cst_119 {dimension_numbers = #tpu.dot_dimension_numbers<[1], [0], [0], [1], [0, 0, 1, 1], [], []>} : vector<1x64xbf16>, vector<64x128xbf16>, vector<1x128xf32> -> vector<1x128xf32>
      %127 = arith.addf %103, %126 : vector<1x128xf32>
      %128 = vector.extract_strided_slice %84 {offsets = [6, 0], sizes = [1, 64], strides = [1, 1]} : vector<16x64xf32> to vector<1x64xf32>
      %129 = arith.truncf %128 : vector<1x64xf32> to vector<1x64xbf16>
      %c0_120 = arith.constant 0 : index
      %c6 = arith.constant 6 : index
      %c0_121 = arith.constant 0 : index
      %c0_122 = arith.constant 0 : index
      %130 = vector.load %arg5[%c0_120, %c6, %c0_121, %c0_122] : memref<1x16x64x128xbf16, #tpu.memory_space<vmem>>, vector<1x1x64x128xbf16>
      %131 = vector.shape_cast %130 : vector<1x1x64x128xbf16> to vector<64x128xbf16>
      %cst_123 = arith.constant dense<0.000000e+00> : vector<1x128xf32>
      %132 = tpu.matmul %129, %131, %cst_123 {dimension_numbers = #tpu.dot_dimension_numbers<[1], [0], [0], [1], [0, 0, 1, 1], [], []>} : vector<1x64xbf16>, vector<64x128xbf16>, vector<1x128xf32> -> vector<1x128xf32>
      %133 = arith.addf %109, %132 : vector<1x128xf32>
      %134 = vector.extract_strided_slice %84 {offsets = [7, 0], sizes = [1, 64], strides = [1, 1]} : vector<16x64xf32> to vector<1x64xf32>
      %135 = arith.truncf %134 : vector<1x64xf32> to vector<1x64xbf16>
      %c0_124 = arith.constant 0 : index
      %c7 = arith.constant 7 : index
      %c0_125 = arith.constant 0 : index
      %c0_126 = arith.constant 0 : index
      %136 = vector.load %arg5[%c0_124, %c7, %c0_125, %c0_126] : memref<1x16x64x128xbf16, #tpu.memory_space<vmem>>, vector<1x1x64x128xbf16>
      %137 = vector.shape_cast %136 : vector<1x1x64x128xbf16> to vector<64x128xbf16>
      %cst_127 = arith.constant dense<0.000000e+00> : vector<1x128xf32>
      %138 = tpu.matmul %135, %137, %cst_127 {dimension_numbers = #tpu.dot_dimension_numbers<[1], [0], [0], [1], [0, 0, 1, 1], [], []>} : vector<1x64xbf16>, vector<64x128xbf16>, vector<1x128xf32> -> vector<1x128xf32>
      %139 = arith.addf %115, %138 : vector<1x128xf32>
      %140 = vector.extract_strided_slice %84 {offsets = [8, 0], sizes = [1, 64], strides = [1, 1]} : vector<16x64xf32> to vector<1x64xf32>
      %141 = arith.truncf %140 : vector<1x64xf32> to vector<1x64xbf16>
      %c0_128 = arith.constant 0 : index
      %c8 = arith.constant 8 : index
      %c0_129 = arith.constant 0 : index
      %c0_130 = arith.constant 0 : index
      %142 = vector.load %arg5[%c0_128, %c8, %c0_129, %c0_130] : memref<1x16x64x128xbf16, #tpu.memory_space<vmem>>, vector<1x1x64x128xbf16>
      %143 = vector.shape_cast %142 : vector<1x1x64x128xbf16> to vector<64x128xbf16>
      %cst_131 = arith.constant dense<0.000000e+00> : vector<1x128xf32>
      %144 = tpu.matmul %141, %143, %cst_131 {dimension_numbers = #tpu.dot_dimension_numbers<[1], [0], [0], [1], [0, 0, 1, 1], [], []>} : vector<1x64xbf16>, vector<64x128xbf16>, vector<1x128xf32> -> vector<1x128xf32>
      %145 = arith.addf %121, %144 : vector<1x128xf32>
      %146 = vector.extract_strided_slice %84 {offsets = [9, 0], sizes = [1, 64], strides = [1, 1]} : vector<16x64xf32> to vector<1x64xf32>
      %147 = arith.truncf %146 : vector<1x64xf32> to vector<1x64xbf16>
      %c0_132 = arith.constant 0 : index
      %c9 = arith.constant 9 : index
      %c0_133 = arith.constant 0 : index
      %c0_134 = arith.constant 0 : index
      %148 = vector.load %arg5[%c0_132, %c9, %c0_133, %c0_134] : memref<1x16x64x128xbf16, #tpu.memory_space<vmem>>, vector<1x1x64x128xbf16>
      %149 = vector.shape_cast %148 : vector<1x1x64x128xbf16> to vector<64x128xbf16>
      %cst_135 = arith.constant dense<0.000000e+00> : vector<1x128xf32>
      %150 = tpu.matmul %147, %149, %cst_135 {dimension_numbers = #tpu.dot_dimension_numbers<[1], [0], [0], [1], [0, 0, 1, 1], [], []>} : vector<1x64xbf16>, vector<64x128xbf16>, vector<1x128xf32> -> vector<1x128xf32>
      %151 = arith.addf %127, %150 : vector<1x128xf32>
      %152 = vector.extract_strided_slice %84 {offsets = [10, 0], sizes = [1, 64], strides = [1, 1]} : vector<16x64xf32> to vector<1x64xf32>
      %153 = arith.truncf %152 : vector<1x64xf32> to vector<1x64xbf16>
      %c0_136 = arith.constant 0 : index
      %c10 = arith.constant 10 : index
      %c0_137 = arith.constant 0 : index
      %c0_138 = arith.constant 0 : index
      %154 = vector.load %arg5[%c0_136, %c10, %c0_137, %c0_138] : memref<1x16x64x128xbf16, #tpu.memory_space<vmem>>, vector<1x1x64x128xbf16>
      %155 = vector.shape_cast %154 : vector<1x1x64x128xbf16> to vector<64x128xbf16>
      %cst_139 = arith.constant dense<0.000000e+00> : vector<1x128xf32>
      %156 = tpu.matmul %153, %155, %cst_139 {dimension_numbers = #tpu.dot_dimension_numbers<[1], [0], [0], [1], [0, 0, 1, 1], [], []>} : vector<1x64xbf16>, vector<64x128xbf16>, vector<1x128xf32> -> vector<1x128xf32>
      %157 = arith.addf %133, %156 : vector<1x128xf32>
      %158 = vector.extract_strided_slice %84 {offsets = [11, 0], sizes = [1, 64], strides = [1, 1]} : vector<16x64xf32> to vector<1x64xf32>
      %159 = arith.truncf %158 : vector<1x64xf32> to vector<1x64xbf16>
      %c0_140 = arith.constant 0 : index
      %c11 = arith.constant 11 : index
      %c0_141 = arith.constant 0 : index
      %c0_142 = arith.constant 0 : index
      %160 = vector.load %arg5[%c0_140, %c11, %c0_141, %c0_142] : memref<1x16x64x128xbf16, #tpu.memory_space<vmem>>, vector<1x1x64x128xbf16>
      %161 = vector.shape_cast %160 : vector<1x1x64x128xbf16> to vector<64x128xbf16>
      %cst_143 = arith.constant dense<0.000000e+00> : vector<1x128xf32>
      %162 = tpu.matmul %159, %161, %cst_143 {dimension_numbers = #tpu.dot_dimension_numbers<[1], [0], [0], [1], [0, 0, 1, 1], [], []>} : vector<1x64xbf16>, vector<64x128xbf16>, vector<1x128xf32> -> vector<1x128xf32>
      %163 = arith.addf %139, %162 : vector<1x128xf32>
      %164 = vector.extract_strided_slice %84 {offsets = [12, 0], sizes = [1, 64], strides = [1, 1]} : vector<16x64xf32> to vector<1x64xf32>
      %165 = arith.truncf %164 : vector<1x64xf32> to vector<1x64xbf16>
      %c0_144 = arith.constant 0 : index
      %c12 = arith.constant 12 : index
      %c0_145 = arith.constant 0 : index
      %c0_146 = arith.constant 0 : index
      %166 = vector.load %arg5[%c0_144, %c12, %c0_145, %c0_146] : memref<1x16x64x128xbf16, #tpu.memory_space<vmem>>, vector<1x1x64x128xbf16>
      %167 = vector.shape_cast %166 : vector<1x1x64x128xbf16> to vector<64x128xbf16>
      %cst_147 = arith.constant dense<0.000000e+00> : vector<1x128xf32>
      %168 = tpu.matmul %165, %167, %cst_147 {dimension_numbers = #tpu.dot_dimension_numbers<[1], [0], [0], [1], [0, 0, 1, 1], [], []>} : vector<1x64xbf16>, vector<64x128xbf16>, vector<1x128xf32> -> vector<1x128xf32>
      %169 = arith.addf %145, %168 : vector<1x128xf32>
      %170 = vector.extract_strided_slice %84 {offsets = [13, 0], sizes = [1, 64], strides = [1, 1]} : vector<16x64xf32> to vector<1x64xf32>
      %171 = arith.truncf %170 : vector<1x64xf32> to vector<1x64xbf16>
      %c0_148 = arith.constant 0 : index
      %c13 = arith.constant 13 : index
      %c0_149 = arith.constant 0 : index
      %c0_150 = arith.constant 0 : index
      %172 = vector.load %arg5[%c0_148, %c13, %c0_149, %c0_150] : memref<1x16x64x128xbf16, #tpu.memory_space<vmem>>, vector<1x1x64x128xbf16>
      %173 = vector.shape_cast %172 : vector<1x1x64x128xbf16> to vector<64x128xbf16>
      %cst_151 = arith.constant dense<0.000000e+00> : vector<1x128xf32>
      %174 = tpu.matmul %171, %173, %cst_151 {dimension_numbers = #tpu.dot_dimension_numbers<[1], [0], [0], [1], [0, 0, 1, 1], [], []>} : vector<1x64xbf16>, vector<64x128xbf16>, vector<1x128xf32> -> vector<1x128xf32>
      %175 = arith.addf %151, %174 : vector<1x128xf32>
      %176 = vector.extract_strided_slice %84 {offsets = [14, 0], sizes = [1, 64], strides = [1, 1]} : vector<16x64xf32> to vector<1x64xf32>
      %177 = arith.truncf %176 : vector<1x64xf32> to vector<1x64xbf16>
      %c0_152 = arith.constant 0 : index
      %c14 = arith.constant 14 : index
      %c0_153 = arith.constant 0 : index
      %c0_154 = arith.constant 0 : index
      %178 = vector.load %arg5[%c0_152, %c14, %c0_153, %c0_154] : memref<1x16x64x128xbf16, #tpu.memory_space<vmem>>, vector<1x1x64x128xbf16>
      %179 = vector.shape_cast %178 : vector<1x1x64x128xbf16> to vector<64x128xbf16>
      %cst_155 = arith.constant dense<0.000000e+00> : vector<1x128xf32>
      %180 = tpu.matmul %177, %179, %cst_155 {dimension_numbers = #tpu.dot_dimension_numbers<[1], [0], [0], [1], [0, 0, 1, 1], [], []>} : vector<1x64xbf16>, vector<64x128xbf16>, vector<1x128xf32> -> vector<1x128xf32>
      %181 = arith.addf %157, %180 : vector<1x128xf32>
      %182 = vector.extract_strided_slice %84 {offsets = [15, 0], sizes = [1, 64], strides = [1, 1]} : vector<16x64xf32> to vector<1x64xf32>
      %183 = arith.truncf %182 : vector<1x64xf32> to vector<1x64xbf16>
      %c0_156 = arith.constant 0 : index
      %c15 = arith.constant 15 : index
      %c0_157 = arith.constant 0 : index
      %c0_158 = arith.constant 0 : index
      %184 = vector.load %arg5[%c0_156, %c15, %c0_157, %c0_158] : memref<1x16x64x128xbf16, #tpu.memory_space<vmem>>, vector<1x1x64x128xbf16>
      %185 = vector.shape_cast %184 : vector<1x1x64x128xbf16> to vector<64x128xbf16>
      %cst_159 = arith.constant dense<0.000000e+00> : vector<1x128xf32>
      %186 = tpu.matmul %183, %185, %cst_159 {dimension_numbers = #tpu.dot_dimension_numbers<[1], [0], [0], [1], [0, 0, 1, 1], [], []>} : vector<1x64xbf16>, vector<64x128xbf16>, vector<1x128xf32> -> vector<1x128xf32>
      %187 = arith.addf %163, %186 : vector<1x128xf32>
      %188 = arith.addf %169, %175 : vector<1x128xf32>
      %189 = arith.addf %188, %181 : vector<1x128xf32>
      %190 = arith.addf %189, %187 : vector<1x128xf32>
      %c0_160 = arith.constant 0 : index
      %c0_161 = arith.constant 0 : index
      %c0_162 = arith.constant 0 : index
      %191 = vector.load %arg6[%c0_160, %c0_161, %c0_162] : memref<1x1x128xf32, #tpu.memory_space<vmem>>, vector<1x1x128xf32>
      %192 = vector.shape_cast %191 : vector<1x1x128xf32> to vector<1x128xf32>
      %193 = arith.addf %190, %192 : vector<1x128xf32>
      %c0_163 = arith.constant 0 : index
      %c0_164 = arith.constant 0 : index
      %c0_165 = arith.constant 0 : index
      %194 = vector.load %arg7[%c0_163, %c0_164, %c0_165] : memref<1x1x128xf32, #tpu.memory_space<vmem>>, vector<1x1x128xf32>
      %195 = vector.shape_cast %194 : vector<1x1x128xf32> to vector<1x128xf32>
      %196 = vector.shape_cast %193 : vector<1x128xf32> to vector<1x1x128xf32>
      tpu.vector_store %arg7[%c0_163, %c0_164, %c0_165], %196 {strides = array<i32>} : memref<1x1x128xf32, #tpu.memory_space<vmem>>, vector<1x1x128xf32>,
    } else {
    }
    return
  }
  func.func @transform_0(%arg0: i32, %arg1: memref<1xi32, #tpu.memory_space<smem>>) -> (i32, i32, i32) {
    %c0_i32 = arith.constant 0 : i32
    %c0_i32_0 = arith.constant 0 : i32
    %c0_i32_1 = arith.constant 0 : i32
    return %arg0, %c0_i32, %c0_i32_0 : i32, i32, i32
  }
  func.func @transform_1(%arg0: i32, %arg1: memref<1xi32, #tpu.memory_space<smem>>) -> (i32, i32, i32, i32) {
    %c0_i32 = arith.constant 0 : i32
    %c0_i32_0 = arith.constant 0 : i32
    %c0_i32_1 = arith.constant 0 : i32
    %c0_i32_2 = arith.constant 0 : i32
    %c0_i32_3 = arith.constant 0 : i32
    return %c0_i32, %c0_i32_0, %c0_i32_1, %c0_i32_2 : i32, i32, i32, i32
  }
  func.func @transform_2(%arg0: i32, %arg1: memref<1xi32, #tpu.memory_space<smem>>) -> (i32, i32, i32) {
    %c0_i32 = arith.constant 0 : i32
    %c0_i32_0 = arith.constant 0 : i32
    %c0_i32_1 = arith.constant 0 : i32
    %c0_i32_2 = arith.constant 0 : i32
    return %c0_i32, %c0_i32_0, %c0_i32_1 : i32, i32, i32
  }
  func.func @transform_3(%arg0: i32, %arg1: memref<1xi32, #tpu.memory_space<smem>>) -> (i32, i32, i32, i32) {
    %c0 = arith.constant 0 : index
    %0 = memref.load %arg1[%c0] : memref<1xi32, #tpu.memory_space<smem>>
    %c0_i32 = arith.constant 0 : i32
    %c0_i32_0 = arith.constant 0 : i32
    %c0_i32_1 = arith.constant 0 : i32
    %c0_i32_2 = arith.constant 0 : i32
    return %0, %c0_i32, %c0_i32_0, %c0_i32_1 : i32, i32, i32, i32
  }
  func.func @transform_4(%arg0: i32, %arg1: memref<1xi32, #tpu.memory_space<smem>>) -> (i32, i32, i32) {
    %c0 = arith.constant 0 : index
    %0 = memref.load %arg1[%c0] : memref<1xi32, #tpu.memory_space<smem>>
    %c0_i32 = arith.constant 0 : i32
    %c0_i32_0 = arith.constant 0 : i32
    %c0_i32_1 = arith.constant 0 : i32
    return %0, %c0_i32, %c0_i32_0 : i32, i32, i32
  }
  func.func @transform_5(%arg0: i32, %arg1: memref<1xi32, #tpu.memory_space<smem>>) -> (i32, i32, i32) {
    %c0_i32 = arith.constant 0 : i32
    %c0_i32_0 = arith.constant 0 : i32
    %c0_i32_1 = arith.constant 0 : i32
    return %arg0, %c0_i32, %c0_i32_0 : i32, i32, i32
  }
}

</mosaic_0001>

<bundles_post_ra>
// kernel: nn_online_forward.1
= control target key start
LH: loop header
LB: loop body
LE: loop exit
PB: predicated region body
PF: predicated region fallthrough
CT: control target
= control target key end

     0   :  { %s7533_s0 = inlined_call_operand.<no memory space> [shape: s32[1], index: 0, kind: input, shape index: {}]   ;;  %s7534_s1 = inlined_call_operand.vmem [shape: f32[2,16,64], index: 1, kind: input, shape index: {}]   ;;  %s7535_s2 = inlined_call_operand.vmem [shape: bf16[3,3,64,64], index: 2, kind: input, shape index: {}]   ;;  %s7536_s3 = inlined_call_operand.vmem [shape: f32[3,1,64], index: 3, kind: input, shape index: {}]   ;;  %s7537_s4 = inlined_call_operand.hbm [shape: bf16[3,16,64,128], index: 4, kind: input, shape index: {}]   ;;  %s7538_s5 = inlined_call_operand.vmem [shape: f32[3,1,128], index: 5, kind: input, shape index: {}]   ;;  %s7539_s6 = inlined_call_operand.hbm [shape: f32[2,1,128], index: 6, kind: output, shape index: {}]  }
   0x1   :  { %11 = sst [smem:[#allocation4]] %s7533_s0 }
   0x2   :  { %12 = vsyncpa [#allocation6], 0 }
   0x3   :  { %13 = vsyncpa [#allocation7], 0 }
   0x4   :  { %15 = vsyncpa [#allocation7 + $0x1], 0  ;;  %s6714_s23 = smov 0   ;;  %s6716_s24 = smov 0  }
   0x5   :  { %s6718_s25 = smov 0   ;;  %s6720_s26 = smov 0  }
   0x6   :  { %s6722_s27 = smov 0   ;;  %s6724_s28 = smov 0  }
   0x7 LB: > { %s6743_s0 = sadd.s32 4294967295, %s6662_s28   ;;  %s6746_s29 = sadd.s32 1, %s6662_s28   ;;  %s6662_s28 = sphi %s6724_s28, %s7557_s28   ;;  %s6658_s27 = sphi %s6722_s27, %s7528_s27   ;;  %s6654_s26 = sphi %s6720_s26, %s7556_s26   ;;  %s6650_s25 = sphi %s6718_s25, %s7555_s25   ;;  %s6646_s24 = sphi %s6716_s24, %s7554_s24   ;;  %s6642_s23 = sphi %s6714_s23, %s7553_s23  }
   0x8   : > { %s93_s30 = sld [smem:[#allocation4]]  ;;  %s4899_s7 = sadd.s32 4294967294, %s6662_s28  }
   0x9   : > { %p111_p0 = scmp.ne.s32.totalorder %s6658_s27, %s6654_s26  ;;  %s149_s8 = ssub.s32 %s6662_s28, %s6746_s29 }
   0xa   : > { %p150_p1 = scmp.eq.s32.totalorder %s149_s8, 0  ;;  %s152_s9 = sadd.s32 1, %s6650_s25 }
   0xb   : > { %p112_p2 = scmp.eq.s32.totalorder %s6743_s0, 0  ;;  %p162_p3 = scmp.ne.s32.totalorder %s6650_s25, %s6646_s24 }
   0xc   : > { %s6757_s10 = scalar_select %p150_p1, %s6650_s25, %s152_s9  }
   0xd   : > { %p163_p4 = scmp.eq.s32.totalorder %s6743_s0, 1  ;;  %p168_p5 = scmp.ne.s32.totalorder %s6646_s24, %s6642_s23 }
   0xe   : > { %p169_p7 = scmp.eq.s32.totalorder %s4899_s7, 1  ;;  %p4900_p9 = scmp.ge.s32.totalorder %s6662_s28, 1 }
   0xf   : > { %p6762_p6 = por %p163_p4, %p162_p3  ;;  %p6773_p10 = por %p112_p2, %p111_p0 }
  0x10   : > { %p6766_p8 = por %p169_p7, %p168_p5  ;;  %p176_p11 = scmp.lt.s32.totalorder %s6662_s28, 3 }
  0x11   : > { %s7544_s11 = scalar_select %p6762_p6, 1, 0 }
  0x12   : > { %s7545_s12 = scalar_select %p6766_p8, 1, 0 }
  0x13   : > { %s7546_s13 = scalar_select %p6773_p10, 1, 0 }
  0x14   : > { %s5267_s14 = sshll.u32 %s93_s30, 13  ;;  %p6778_p12 = pnand %p4900_p9, %p176_p11 }
  0x15   : > { %s6664_s16 = smov [#allocation5]   ;;  %s6787_s20 = scalar_lea.hbm %s7537_s4, %s5267_s14 }
  0x16   : > { %s7547_s15 = scalar_select %p6778_p12, 1, 0 }
  0x17   : > { %s198_s17 = sshll.u32 %s6664_s16, 4  ;;  %p6242_p13 = pneg %p6778_p12  ;;  %s6789_s17 = int_to_ptr.vmem [resolvable:$true] %s198_s17 }
  0x18   : > { %s6546_s22 = scalar_lea.hbm %s6787_s20, 8192  ;;  %s6551_s7 = scalar_lea.hbm %s7537_s4, 24576 }
  0x19   : > { %p6793_p0 = pnand %p6242_p13, %p6773_p10  ;;  %p6547_p1 = scmp.ne.s32.totalorder %s6787_s20, %s6546_s22 }
  0x1a   : > { %p6552_p5 = scmp.lt.u32.totalorder %s6787_s20, %s7537_s4  ;;  %p6553_p7 = scmp.lt.u32.totalorder %s6551_s7, %s6546_s22 }
  0x1b   : > { %p6548_p2 = pneg %p6793_p0  ;;  %p6555_p11 = scmp.lt.u32.totalorder %s6546_s22, %s6787_s20 }
  0x1c   : > { %p6554_p9 = por %p6553_p7, %p6552_p5 }
  0x1d   : > { %p6549_p3 = pnand %p6548_p2, %p6547_p1 }
  0x1e   : > { %p6556_p13 = por %p6555_p11, %p6554_p9 }
  0x1f   : > { %p6550_p4 = pneg %p6549_p3 }
  0x21   : > { %p6557_p8 = pnand %p6556_p13, %p6550_p4 }
  0x23   : > { %6560 = shalt.err (!%p6557_p8)
}
  0x24   : > { %s6561_s14 = scalar_lea.vmem %s6789_s17, 8192  ;;  %p6569_p10 = scmp.lt.s32.totalorder %s6789_s17, %s6789_s17 }
  0x25   : > { %p6562_p1 = scmp.ne.s32.totalorder %s6789_s17, %s6561_s14  ;;  %p6570_p12 = scmp.lt.s32.totalorder %s6561_s14, %s6561_s14 }
  0x27   : > { %p6564_p3 = pnand %p6562_p1, %p6548_p2  ;;  %p6571_p5 = por %p6570_p12, %p6569_p10 }
  0x29   : > { %p6565_p6 = pneg %p6564_p3 }
  0x2b   : > { %p6572_p7 = pnand %p6571_p5, %p6565_p6 }
  0x2d   : > { %6575 = shalt.err (!%p6572_p7)
}
  0x2e   : > { %s6665_s16 = smov 64   ;;  %s6666_s18 = smov 4  }
  0x2f   : > { %6245 = dma.hbm_to_vmem [thread:$0]  (!%p6793_p0), %s6787_s20, 8192, %s6789_s17, [#allocation6], %s6665_s16, %s6665_s16, %s6666_s18  }
  0x30   : > { %p7549_p8 = scmp.ne.s32.totalorder %s7547_s15, 0 }
  0x31   : > { %p7550_p4 = scmp.ne.s32.totalorder (!%p7549_p8), %s7546_s13, 0 }
  0x32   : > { %230 = sbr.rel (%p7549_p8) target bundleno = 1848 (0x738), region = 40 }
  0x39   : > { %6633 = dma.done.wait (%p7550_p4), [#allocation6], 8192  }
  0x3a   : > { %6635 = vsyncadd (%p7550_p4), [#allocation6], 4294959104  ;;  %s259_s19 = sand.u32 1, %s6646_s24   ;;  %p261_p6 = scmp.lt.s32.totalorder %s6743_s0, 1  ;;  %v6667_v0 = vmov 0.0   ;;  %vm274_vm0 = vcmask 516096  }
  0x3b   : > { %s6831_s22 = sld [smem:[#allocation4]]  ;;  %5554 = vmatprep.subr.bf16.mxu0 %v6667_v0  ;;  %5566 = vmatprep.subr.bf16.mxu1 %v6667_v0  ;;  %vm6668_vm1 = vmmov 0   ;;  %275 = vst.msk [vmem:[#allocation2] sm:$0x1] %vm274_vm0, %v6667_v0  ;;  %276 = vst.msk [vmem:[#allocation2 + $0x11] sm:$0x1] %vm274_vm0, %v6667_v0 }
  0x3c   : > { %5562 = vmatprep.mubr.msk.bf16.mxu0 %vm6668_vm1, %v6667_v0  ;;  %5574 = vmatprep.mubr.msk.bf16.mxu1 %vm6668_vm1, %v6667_v0  ;;  %s262_s13 = scalar_select %p261_p6, %s6743_s0, 1  ;;  %v6318_v1 = vld [vmem:[%s7535_s2 + $0x20] sm:$0xff]   ;;  %v6320_v3 = vld [vmem:[%s7535_s2 + $0x28] sm:$0xff]   ;;  %v6322_v5 = vld [vmem:[%s7535_s2 + $0x30] sm:$0xff]   ;;  %vm279_vm2 = vcmask 523264  }
  0x3d   : > { %v6319_v2 = vld [vmem:[%s7535_s2] sm:$0xff]   ;;  %5555 = vmatpush3.bf16.msra.mxu0 %v6318_v1  ;;  %v6321_v4 = vld [vmem:[%s7535_s2 + $0x8] sm:$0xff]   ;;  %v6323_v6 = vld [vmem:[%s7535_s2 + $0x10] sm:$0xff]   ;;  %s6914_s14 = scalar_lea.vmem [#allocation8], %s259_s19 }
  0x3e   : > { %s5268_s26 = sshll.u32 %s262_s13, 4  ;;  %5567 = vmatpush3.bf16.msra.mxu1 %v6319_v2  ;;  %5556 = vmatprep.subr.bf16.mxu0 %v6667_v0  ;;  %v6324_v9 = vld [vmem:[%s7535_s2 + $0x38] sm:$0xff]   ;;  %v6326_v11 = vld [vmem:[%s7535_s2 + $0x40] sm:$0xff]   ;;  %v6327_v18 = vld [vmem:[%s7535_s2 + $0x48] sm:$0xff]  }
  0x3f   : > { %5568 = vmatprep.subr.bf16.mxu1 %v6667_v0  ;;  %s265_s20 = scalar_lea.vmem %s7534_s1, %s5268_s26  ;;  %v6325_v10 = vld [vmem:[%s7535_s2 + $0x18] sm:$0xff]   ;;  %v6328_v19 = vld [vmem:[%s7535_s2 + $0x50] sm:$0xff]   ;;  %v4938_v35 = vld [vmem:[%s7536_s3] ss:$0 sm:$0xff] }
  0x40   : > { %v277_v7 = vld [vmem:[%s265_s20] sm:$0xff]  ;;  %v278_v8 = vld [vmem:[%s265_s20 + $0x8] sm:$0xff]  ;;  %v6329_v20 = vld [vmem:[%s7535_s2 + $0x58] sm:$0xff]  }
  0x41   : > { %p268_p10 = scmp.lt.s32.totalorder %s6831_s22, 2  ;;  %5557 = vmatpush3.bf16.msra.mxu0 %v6320_v3  ;;  %280 = vst.msk [vmem:[#allocation2 + $0x1] sm:$0xff] %vm279_vm2, %v277_v7  ;;  %281 = vst.msk [vmem:[#allocation2 + $0x9] sm:$0xff] %vm279_vm2, %v278_v8  ;;  %p4939_p12 = scmp.ne.s32.totalorder %s6831_s22, 0 }
  0x42   : > { %5569 = vmatpush3.bf16.msra.mxu1 %v6321_v4  ;;  %5558 = vmatprep.subr.bf16.mxu0 %v6667_v0  ;;  %v6330_v45 = vld [vmem:[#allocation5 + $0x80] sm:$0xff] (!%p4939_p12)   ;;  %v6669_v46 = vmov (!%p4939_p12), 0.0   ;;  %v6332_v48 = vld [vmem:[#allocation5 + $0x88] sm:$0xff] (!%p4939_p12)   ;;  %vm6670_vm3 = vmmov (!%p4939_p12), 0   ;;  %v6334_v50 = vld [vmem:[#allocation5 + $0x90] sm:$0xff] (!%p4939_p12)  }
  0x43   : > { %s269_s30 = scalar_select %p268_p10, %s6831_s22, 2  ;;  %5570 = vmatprep.subr.bf16.mxu1 %v6667_v0 }
  0x44   : > { %v6331_v47 = vld [vmem:[#allocation5] sm:$0xff] (!%p4939_p12)   ;;  %v6333_v49 = vld [vmem:[#allocation5 + $0x8] sm:$0xff] (!%p4939_p12)   ;;  %v6335_v51 = vld [vmem:[#allocation5 + $0x10] sm:$0xff] (!%p4939_p12)  }
  0x45   : > { %s6860_s15 = scalar_lea.vmem %s7538_s5, %s269_s30  ;;  %5559 = vmatpush3.bf16.msra.mxu0 %v6322_v5  ;;  %v6336_v53 = vld [vmem:[#allocation5 + $0x98] sm:$0xff] (!%p4939_p12)   ;;  %v6338_v56 = vld [vmem:[#allocation5 + $0xa0] sm:$0xff] (!%p4939_p12)   ;;  %v6340_v58 = vld [vmem:[#allocation5 + $0xa8] sm:$0xff] (!%p4939_p12)  }
  0x46   : > { %5571 = vmatpush3.bf16.msra.mxu1 %v6323_v6  ;;  %5560 = vmatprep.subr.bf16.mxu0 %v6667_v0  ;;  %v6337_v54 = vld [vmem:[#allocation5 + $0x18] sm:$0xff] (!%p4939_p12)   ;;  %v6339_v57 = vld [vmem:[#allocation5 + $0x20] sm:$0xff] (!%p4939_p12)   ;;  %v6341_v59 = vld [vmem:[#allocation5 + $0x28] sm:$0xff] (!%p4939_p12)  }
  0x47   : > { %5572 = vmatprep.subr.bf16.mxu1 %v6667_v0  ;;  %v6342_v60 = vld [vmem:[#allocation5 + $0xb0] sm:$0xff] (!%p4939_p12)   ;;  %v6344_v63 = vld [vmem:[#allocation5 + $0xb8] sm:$0xff] (!%p4939_p12)   ;;  %v6346_v3 = vld [vmem:[#allocation5 + $0xc0] sm:$0xff] (!%p4939_p12)  }
  0x48   : > { %v285_v12 = vld [vmem:[#allocation2 + $0x1] sm:$0xff]  ;;  %v286_v13 = vld [vmem:[#allocation2 + $0x9] sm:$0xff]  ;;  %v6347_v4 = vld [vmem:[#allocation5 + $0x40] sm:$0xff] (!%p4939_p12)  }
  0x49   : > { %5561 = vmatpush3.bf16.msra.mxu0 %v6324_v9  ;;  %v282_v14 = vld [vmem:[#allocation2] sm:$0xff]  ;;  %v287_v15 = vpack.c.bf16 %v286_v13, %v285_v12  ;;  %v283_v16 = vld [vmem:[#allocation2 + $0x8] sm:$0xff]  ;;  %v6345_v1 = vld [vmem:[#allocation5 + $0x38] sm:$0xff] (!%p4939_p12)  }
  0x4a   : > { %5573 = vmatpush3.bf16.msra.mxu1 %v6325_v10  ;;  %5578 = vmatprep.subr.bf16.mxu0 %v6667_v0  ;;  %v284_v17 = vpack.c.bf16 %v283_v16, %v282_v14  ;;  %v288_v21 = vld [vmem:[#allocation2 + $0x2] sm:$0xff]  ;;  %v289_v22 = vld [vmem:[#allocation2 + $0xa] sm:$0xff]  ;;  %v6354_v13 = vld [vmem:[#allocation5 + $0xe0] sm:$0xff] (!%p4939_p12)  }
  0x4b   : > { %v290_v23 = vpack.c.bf16 %v289_v22, %v288_v21  ;;  %5602 = vmatprep.subr.bf16.mxu1 (!%p4939_p12), %v6669_v46  ;;  %v6343_v61 = vld [vmem:[#allocation5 + $0x30] sm:$0xff] (!%p4939_p12)   ;;  %v6348_v5 = vld [vmem:[#allocation5 + $0xc8] sm:$0xff] (!%p4939_p12)   ;;  %v6352_v9 = vld [vmem:[#allocation5 + $0xd8] sm:$0xff] (!%p4939_p12)  }
  0x4c   : > { %5563 = vmatmul.mubr.msk.bf16.vlgmr.msra.gmra.mrb[0].mxu0 %vm279_vm2, %v287_v15  ;;  %v6349_v6 = vld [vmem:[#allocation5 + $0x48] sm:$0xff] (!%p4939_p12)   ;;  %v6350_v7 = vld [vmem:[#allocation5 + $0xd0] sm:$0xff] (!%p4939_p12)   ;;  %v6353_v10 = vld [vmem:[#allocation5 + $0x58] sm:$0xff] (!%p4939_p12)  }
  0x4d   : > { %5575 = vmatmul.mubr.msk.bf16.vlgmr.msra.gmra.mrb[0].mxu1 %vm279_vm2, %v284_v17  ;;  %5579 = vmatpush3.bf16.msra.mxu0 %v6326_v11  ;;  %v6351_v8 = vld [vmem:[#allocation5 + $0x50] sm:$0xff] (!%p4939_p12)   ;;  %v6355_v14 = vld [vmem:[#allocation5 + $0x60] sm:$0xff] (!%p4939_p12)   ;;  %v6356_v15 = vld [vmem:[#allocation5 + $0xe8] sm:$0xff] (!%p4939_p12)  }
  0x4e   : > { %5580 = vmatprep.subr.bf16.mxu0 %v6667_v0  ;;  %5586 = vmatprep.mubr.msk.bf16.mxu0 %vm6668_vm1, %v6667_v0  ;;  %v6357_v16 = vld [vmem:[#allocation5 + $0x68] sm:$0xff] (!%p4939_p12)   ;;  %v6358_v17 = vld [vmem:[#allocation5 + $0xf0] sm:$0xff] (!%p4939_p12)  }
  0x4f   : > { %5603 = vmatpush3.bf16.msra.mxu1 (!%p4939_p12), %v6331_v47  ;;  %5610 = vmatprep.mubr.msk.bf16.mxu1 (!%p4939_p12), %vm6670_vm3, %v6669_v46  ;;  %v6379_v47 = vld [vmem:[#allocation5 + $0x1a0] sm:$0xff] (!%p4939_p12)  }
  0x50   : > { %5604 = vmatprep.subr.bf16.mxu1 (!%p4939_p12), %v6669_v46 }
  0x51   : > { %5581 = vmatpush3.bf16.msra.mxu0 %v6327_v18  ;;  %v6359_v18 = vld [vmem:[#allocation5 + $0x70] sm:$0xff] (!%p4939_p12)  }
  0x52   : > { %5582 = vmatprep.subr.bf16.mxu0 %v6667_v0 }
  0x53   : > { %5605 = vmatpush3.bf16.msra.mxu1 (!%p4939_p12), %v6333_v49  ;;  %v6381_v49 = vld [vmem:[#allocation5 + $0x1a8] sm:$0xff] (!%p4939_p12)  }
  0x54   : > { %5606 = vmatprep.subr.bf16.mxu1 (!%p4939_p12), %v6669_v46 }
  0x55   : > { %5583 = vmatpush3.bf16.msra.mxu0 %v6328_v19  ;;  %v6360_v19 = vld [vmem:[#allocation5 + $0xf8] sm:$0xff] (!%p4939_p12)  }
  0x56   : > { %5584 = vmatprep.subr.bf16.mxu0 %v6667_v0 }
  0x57   : > { %5607 = vmatpush3.bf16.msra.mxu1 (!%p4939_p12), %v6335_v51  ;;  %v6383_v51 = vld [vmem:[#allocation5 + $0x1b0] sm:$0xff] (!%p4939_p12)  }
  0x58   : > { %5608 = vmatprep.subr.bf16.mxu1 (!%p4939_p12), %v6669_v46 }
  0x59   : > { %5585 = vmatpush3.bf16.msra.mxu0 %v6329_v20  ;;  %v6361_v20 = vld [vmem:[#allocation5 + $0x78] sm:$0xff] (!%p4939_p12)  }
  0x5a   : > { %5590 = vmatprep.subr.bf16.mxu0 (!%p4939_p12), %v6669_v46 }
  0x5b   : > { %5609 = vmatpush3.bf16.msra.mxu1 (!%p4939_p12), %v6337_v54 }
  0x5c   : > { %5587 = vmatmul.mubr.msk.bf16.vlgmr.msra.gmra.mrb[4].mxu0 %vm279_vm2, %v290_v23  ;;  %5626 = vmatprep.subr.bf16.mxu1 (!%p4939_p12), %v6669_v46  ;;  %v6362_v23 = vld [vmem:[#allocation5 + $0x100] sm:$0xff] (!%p4939_p12)  }
  0x5d   : > { %5591 = vmatpush3.bf16.msra.mxu0 (!%p4939_p12), %v6330_v45  ;;  %5598 = vmatprep.mubr.msk.bf16.mxu0 (!%p4939_p12), %vm6670_vm3, %v6669_v46  ;;  %v6378_v45 = vld [vmem:[#allocation5 + $0x180] sm:$0xff] (!%p4939_p12)  }
  0x5e   : > { %5592 = vmatprep.subr.bf16.mxu0 (!%p4939_p12), %v6669_v46 }
  0x61   : > { %5593 = vmatpush3.bf16.msra.mxu0 (!%p4939_p12), %v6332_v48  ;;  %v6380_v48 = vld [vmem:[#allocation5 + $0x188] sm:$0xff] (!%p4939_p12)  }
  0x62   : > { %5594 = vmatprep.subr.bf16.mxu0 (!%p4939_p12), %v6669_v46 }
  0x65   : > { %5595 = vmatpush3.bf16.msra.mxu0 (!%p4939_p12), %v6334_v50  ;;  %v6382_v50 = vld [vmem:[#allocation5 + $0x190] sm:$0xff] (!%p4939_p12)  }
  0x66   : > { %5596 = vmatprep.subr.bf16.mxu0 (!%p4939_p12), %v6669_v46 }
  0x69   : > { %5597 = vmatpush3.bf16.msra.mxu0 (!%p4939_p12), %v6336_v53  ;;  %v6385_v53 = vld [vmem:[#allocation5 + $0x1b8] sm:$0xff] (!%p4939_p12)  }
  0x6a   : > { %5614 = vmatprep.subr.bf16.mxu0 (!%p4939_p12), %v6669_v46 }
 0x11f   : > { %v369_v24 = vpop.f32.mrb[0].mxu0 }
 0x120   : > { %v437_v25 = vpop.f32.mrb[0].mxu1  ;;  %v5564_v26 = vpop.f32.mrb[1].mxu0 }
 0x121   : > { %v438_v27 = vadd.f32 %v437_v25, %v369_v24  ;;  %v5576_v28 = vpop.f32.mrb[1].mxu1  ;;  %v372_v29 = vpop.f32.mrb[2].mxu0  ;;  %v6363_v24 = vld [vmem:[#allocation5 + $0x120] sm:$0xff] (!%p4939_p12)   ;;  %v6364_v25 = vld [vmem:[#allocation5 + $0x108] sm:$0xff] (!%p4939_p12)  }
 0x122   : > { %v440_v30 = vpop.f32.mrb[2].mxu1  ;;  %v5565_v31 = vpop.f32.mrb[3].mxu0  ;;  %v6365_v26 = vld [vmem:[#allocation5 + $0x128] sm:$0xff] (!%p4939_p12)   ;;  %v6367_v28 = vld [vmem:[#allocation5 + $0x130] sm:$0xff] (!%p4939_p12)  }
 0x123   : > { %v441_v32 = vadd.f32 %v440_v30, %v372_v29  ;;  %v5577_v33 = vpop.f32.mrb[3].mxu1  ;;  %v6368_v29 = vld [vmem:[#allocation5 + $0x118] sm:$0xff] (!%p4939_p12)  }
 0x124   : > { %v6369_v31 = vld [vmem:[#allocation5 + $0x138] sm:$0xff] (!%p4939_p12)   ;;  %v6370_v33 = vld [vmem:[#allocation5 + $0x140] sm:$0xff] (!%p4939_p12)  }
 0x12f   : > { %v514_v34 = vpop.f32.mrb[4].mxu0 }
 0x130   : > { %v521_v36 = vadd.f32 %v514_v34, %v438_v27  ;;  %v5588_v37 = vpop.f32.mrb[5].mxu0  ;;  %537 = sbr.rel (%p4939_p12) target bundleno = 647 (0x287), region = 48  ;;  %v6366_v27 = vld [vmem:[#allocation5 + $0x110] sm:$0xff] (!%p4939_p12)   ;;  %v6371_v34 = vld [vmem:[#allocation5 + $0x160] sm:$0xff] (!%p4939_p12)  }
 0x131   : > { %v517_v38 = vpop.f32.mrb[6].mxu0  ;;  %v6374_v37 = vld [vmem:[#allocation5 + $0x150] sm:$0xff] (!%p4939_p12)  }
 0x132   : > { %v530_v39 = vadd.f32 %v4938_v35, %v521_v36  ;;  %v522_v40 = vadd.f32 %v517_v38, %v441_v32  ;;  %v5589_v41 = vpop.f32.mrb[7].mxu0  ;;  %v6373_v36 = vld [vmem:[#allocation5 + $0x168] sm:$0xff] (!%p4939_p12)   ;;  %v6375_v38 = vld [vmem:[#allocation5 + $0x170] sm:$0xff] (!%p4939_p12)  }
 0x134   : > { %v6908_v42 = vmax.f32 %v530_v39, 0.0  ;;  %v531_v43 = vadd.f32 %v4938_v35, %v522_v40  ;;  %v6372_v35 = vld [vmem:[#allocation5 + $0x148] sm:$0xff] (!%p4939_p12)   ;;  %v6376_v39 = vld [vmem:[#allocation5 + $0x158] sm:$0xff] (!%p4939_p12)  }
 0x135   : > { %v6377_v40 = vld [vmem:[#allocation5 + $0x178] sm:$0xff] (!%p4939_p12)  }
 0x136   : > { %v6910_v44 = vmax.f32 %v531_v43, 0.0  ;;  %v6929_v52 = vpack.c.bf16 (!%p4939_p12), %v6908_v42, %v6908_v42 }
 0x138   : > { %v584_v55 = vrot.slane %v6929_v52, 2  ;;  %5611 = vmatmul.mubr.msk.bf16.vlgmr.msra.gmra.mrb[0].mxu1 %vm279_vm2, %v6929_v52  ;;  %v6948_v62 = vshrl.u32 %v6929_v52, 16  ;;  %v874_v11 = vrot.slane %v6929_v52, 3  ;;  %v942_v12 = vrot.slane %v6929_v52, 1  ;;  %v6384_v52 = vld [vmem:[#allocation5 + $0x198] sm:$0xff]  }
 0x139   : > { %5627 = vmatpush3.bf16.msra.mxu1 %v6339_v57  ;;  %5634 = vmatprep.mubr.msk.bf16.mxu1 %vm6670_vm3, %v6669_v46  ;;  %v7000_v30 = vpack.c.bf16 %v6910_v44, %v6910_v44  ;;  %v6387_v57 = vld [vmem:[#allocation5 + $0x1e0] sm:$0xff]  }
 0x13a   : > { %5599 = vmatmul.mubr.msk.bf16.vlgmr.msra.gmra.mrb[0].mxu0 %vm279_vm2, %v584_v55  ;;  %5628 = vmatprep.subr.bf16.mxu1 %v6669_v46  ;;  %v730_v2 = vrot.slane %v6948_v62, 2  ;;  %v1019_v21 = vrot.slane %v6948_v62, 3  ;;  %v1087_v22 = vrot.slane %v6948_v62, 1 }
 0x13b   : > { %5615 = vmatpush3.bf16.msra.mxu0 %v6338_v56  ;;  %5622 = vmatprep.mubr.msk.bf16.mxu0 %vm6670_vm3, %v6669_v46  ;;  %v7005_v32 = vshrl.u32 %v7000_v30, 16  ;;  %v1322_v41 = vrot.slane %v7000_v30, 1  ;;  %v1478_v54 = vrot.slane %v7000_v30, 2  ;;  %v6386_v56 = vld [vmem:[#allocation5 + $0x1c0] sm:$0xff]  }
 0x13c   : > { %5616 = vmatprep.subr.bf16.mxu0 %v6669_v46 }
 0x13d   : > { %5629 = vmatpush3.bf16.msra.mxu1 %v6341_v59  ;;  %v1400_v43 = vrot.slane %v7005_v32, 1  ;;  %v1556_v55 = vrot.slane %v7005_v32, 2  ;;  %v6389_v59 = vld [vmem:[#allocation5 + $0x1e8] sm:$0xff]  }
 0x13e   : > { %5630 = vmatprep.subr.bf16.mxu1 %v6669_v46 }
 0x13f   : > { %5617 = vmatpush3.bf16.msra.mxu0 %v6340_v58  ;;  %v6388_v58 = vld [vmem:[#allocation5 + $0x1c8] sm:$0xff]  }
 0x140   : > { %5618 = vmatprep.subr.bf16.mxu0 %v6669_v46 }
 0x141   : > { %5631 = vmatpush3.bf16.msra.mxu1 %v6343_v61  ;;  %v6391_v61 = vld [vmem:[#allocation5 + $0x1f0] sm:$0xff]  }
 0x142   : > { %5632 = vmatprep.subr.bf16.mxu1 %v6669_v46 }
 0x143   : > { %5619 = vmatpush3.bf16.msra.mxu0 %v6342_v60  ;;  %v6390_v60 = vld [vmem:[#allocation5 + $0x1d0] sm:$0xff]  }
 0x144   : > { %5620 = vmatprep.subr.bf16.mxu0 %v6669_v46 }
 0x145   : > { %5633 = vmatpush3.bf16.msra.mxu1 %v6345_v1  ;;  %v1634_v1 = vrot.slane %v7000_v30, 3 }
 0x146   : > { %5650 = vmatprep.subr.bf16.mxu1 %v6669_v46 }
 0x147   : > { %5621 = vmatpush3.bf16.msra.mxu0 %v6344_v63  ;;  %v6393_v63 = vld [vmem:[#allocation5 + $0x1f8] sm:$0xff]  }
 0x148   : > { %5638 = vmatprep.subr.bf16.mxu0 %v6669_v46  ;;  %5635 = vmatmul.mubr.msk.bf16.vlgmr.msra.gmra.mrb[4].mxu1 %vm279_vm2, %v6948_v62  ;;  %v6392_v62 = vld [vmem:[#allocation5 + $0x1d8] sm:$0xff]  }
 0x149   : > { %5651 = vmatpush3.bf16.msra.mxu1 %v6347_v4  ;;  %5658 = vmatprep.mubr.msk.bf16.mxu1 %vm6670_vm3, %v6669_v46 }
 0x14a   : > { %5623 = vmatmul.mubr.msk.bf16.vlgmr.msra.gmra.mrb[4].mxu0 %vm279_vm2, %v730_v2  ;;  %5652 = vmatprep.subr.bf16.mxu1 %v6669_v46  ;;  %v1712_v2 = vrot.slane %v7005_v32, 3 }
 0x14b   : > { %5639 = vmatpush3.bf16.msra.mxu0 %v6346_v3  ;;  %5646 = vmatprep.mubr.msk.bf16.mxu0 %vm6670_vm3, %v6669_v46 }
 0x14c   : > { %5640 = vmatprep.subr.bf16.mxu0 %v6669_v46 }
 0x14d   : > { %5653 = vmatpush3.bf16.msra.mxu1 %v6349_v6 }
 0x14e   : > { %5654 = vmatprep.subr.bf16.mxu1 %v6669_v46 }
 0x14f   : > { %5641 = vmatpush3.bf16.msra.mxu0 %v6348_v5 }
 0x150   : > { %5642 = vmatprep.subr.bf16.mxu0 %v6669_v46 }
 0x151   : > { %5655 = vmatpush3.bf16.msra.mxu1 %v6351_v8 }
 0x152   : > { %5656 = vmatprep.subr.bf16.mxu1 %v6669_v46 }
 0x153   : > { %5643 = vmatpush3.bf16.msra.mxu0 %v6350_v7 }
 0x154   : > { %5644 = vmatprep.subr.bf16.mxu0 %v6669_v46 }
 0x155   : > { %5657 = vmatpush3.bf16.msra.mxu1 %v6353_v10 }
 0x156   : > { %5674 = vmatprep.subr.bf16.mxu1 %v6669_v46 }
 0x157   : > { %5645 = vmatpush3.bf16.msra.mxu0 %v6352_v9 }
 0x158   : > { %5662 = vmatprep.subr.bf16.mxu0 %v6669_v46  ;;  %5659 = vmatmul.mubr.msk.bf16.vlgmr.msra.gmra.mrb[8].mxu1 %vm279_vm2, %v942_v12 }
 0x159   : > { %5675 = vmatpush3.bf16.msra.mxu1 %v6355_v14  ;;  %5682 = vmatprep.mubr.msk.bf16.mxu1 %vm6670_vm3, %v6669_v46 }
 0x15a   : > { %5647 = vmatmul.mubr.msk.bf16.vlgmr.msra.gmra.mrb[8].mxu0 %vm279_vm2, %v874_v11  ;;  %5676 = vmatprep.subr.bf16.mxu1 %v6669_v46 }
 0x15b   : > { %5663 = vmatpush3.bf16.msra.mxu0 %v6354_v13  ;;  %5670 = vmatprep.mubr.msk.bf16.mxu0 %vm6670_vm3, %v6669_v46 }
 0x15c   : > { %5664 = vmatprep.subr.bf16.mxu0 %v6669_v46 }
 0x15d   : > { %5677 = vmatpush3.bf16.msra.mxu1 %v6357_v16 }
 0x15e   : > { %5678 = vmatprep.subr.bf16.mxu1 %v6669_v46 }
 0x15f   : > { %5665 = vmatpush3.bf16.msra.mxu0 %v6356_v15 }
 0x160   : > { %5666 = vmatprep.subr.bf16.mxu0 %v6669_v46 }
 0x161   : > { %5679 = vmatpush3.bf16.msra.mxu1 %v6359_v18 }
 0x162   : > { %5680 = vmatprep.subr.bf16.mxu1 %v6669_v46 }
 0x163   : > { %5667 = vmatpush3.bf16.msra.mxu0 %v6358_v17 }
 0x164   : > { %5668 = vmatprep.subr.bf16.mxu0 %v6669_v46 }
 0x165   : > { %5681 = vmatpush3.bf16.msra.mxu1 %v6361_v20 }
 0x166   : > { %5698 = vmatprep.subr.bf16.mxu1 %v6669_v46 }
 0x167   : > { %5669 = vmatpush3.bf16.msra.mxu0 %v6360_v19 }
 0x168   : > { %5686 = vmatprep.subr.bf16.mxu0 %v6669_v46  ;;  %5683 = vmatmul.mubr.msk.bf16.vlgmr.msra.gmra.mrb[12].mxu1 %vm279_vm2, %v1087_v22 }
 0x169   : > { %5699 = vmatpush3.bf16.msra.mxu1 %v6363_v24  ;;  %5706 = vmatprep.mubr.msk.bf16.mxu1 %vm6670_vm3, %v6669_v46 }
 0x16a   : > { %5671 = vmatmul.mubr.msk.bf16.vlgmr.msra.gmra.mrb[12].mxu0 %vm279_vm2, %v1019_v21  ;;  %5700 = vmatprep.subr.bf16.mxu1 %v6669_v46 }
 0x16b   : > { %5687 = vmatpush3.bf16.msra.mxu0 %v6362_v23  ;;  %5694 = vmatprep.mubr.msk.bf16.mxu0 %vm6670_vm3, %v6669_v46 }
 0x16c   : > { %5688 = vmatprep.subr.bf16.mxu0 %v6669_v46 }
 0x16d   : > { %5701 = vmatpush3.bf16.msra.mxu1 %v6365_v26 }
 0x16e   : > { %5702 = vmatprep.subr.bf16.mxu1 %v6669_v46 }
 0x16f   : > { %5689 = vmatpush3.bf16.msra.mxu0 %v6364_v25 }
 0x170   : > { %5690 = vmatprep.subr.bf16.mxu0 %v6669_v46 }
 0x171   : > { %5703 = vmatpush3.bf16.msra.mxu1 %v6367_v28 }
 0x172   : > { %5704 = vmatprep.subr.bf16.mxu1 %v6669_v46 }
 0x173   : > { %5691 = vmatpush3.bf16.msra.mxu0 %v6366_v27 }
 0x174   : > { %5692 = vmatprep.subr.bf16.mxu0 %v6669_v46 }
 0x175   : > { %5705 = vmatpush3.bf16.msra.mxu1 %v6369_v31 }
 0x176   : > { %5722 = vmatprep.subr.bf16.mxu1 %v6669_v46 }
 0x177   : > { %5693 = vmatpush3.bf16.msra.mxu0 %v6368_v29 }
 0x178   : > { %5710 = vmatprep.subr.bf16.mxu0 %v6669_v46  ;;  %5707 = vmatmul.mubr.msk.bf16.vlgmr.msra.gmra.mrb[16].mxu1 %vm279_vm2, %v7005_v32 }
 0x179   : > { %5723 = vmatpush3.bf16.msra.mxu1 %v6371_v34  ;;  %5730 = vmatprep.mubr.msk.bf16.mxu1 %vm6670_vm3, %v6669_v46 }
 0x17a   : > { %5695 = vmatmul.mubr.msk.bf16.vlgmr.msra.gmra.mrb[16].mxu0 %vm279_vm2, %v7000_v30  ;;  %5724 = vmatprep.subr.bf16.mxu1 %v6669_v46 }
 0x17b   : > { %5711 = vmatpush3.bf16.msra.mxu0 %v6370_v33  ;;  %5718 = vmatprep.mubr.msk.bf16.mxu0 %vm6670_vm3, %v6669_v46 }
 0x17c   : > { %5712 = vmatprep.subr.bf16.mxu0 %v6669_v46 }
 0x17d   : > { %5725 = vmatpush3.bf16.msra.mxu1 %v6373_v36 }
 0x17e   : > { %5726 = vmatprep.subr.bf16.mxu1 %v6669_v46 }
 0x17f   : > { %5713 = vmatpush3.bf16.msra.mxu0 %v6372_v35 }
 0x180   : > { %5714 = vmatprep.subr.bf16.mxu0 %v6669_v46 }
 0x181   : > { %5727 = vmatpush3.bf16.msra.mxu1 %v6375_v38 }
 0x182   : > { %5728 = vmatprep.subr.bf16.mxu1 %v6669_v46 }
 0x183   : > { %5715 = vmatpush3.bf16.msra.mxu0 %v6374_v37 }
 0x184   : > { %5716 = vmatprep.subr.bf16.mxu0 %v6669_v46 }
 0x185   : > { %5729 = vmatpush3.bf16.msra.mxu1 %v6377_v40 }
 0x186   : > { %5746 = vmatprep.subr.bf16.mxu1 %v6669_v46 }
 0x187   : > { %5717 = vmatpush3.bf16.msra.mxu0 %v6376_v39 }
 0x188   : > { %5734 = vmatprep.subr.bf16.mxu0 %v6669_v46  ;;  %5731 = vmatmul.mubr.msk.bf16.vlgmr.msra.gmra.mrb[20].mxu1 %vm279_vm2, %v1400_v43 }
 0x189   : > { %5747 = vmatpush3.bf16.msra.mxu1 %v6379_v47  ;;  %5754 = vmatprep.mubr.msk.bf16.mxu1 %vm6670_vm3, %v6669_v46 }
 0x18a   : > { %5719 = vmatmul.mubr.msk.bf16.vlgmr.msra.gmra.mrb[20].mxu0 %vm279_vm2, %v1322_v41  ;;  %5748 = vmatprep.subr.bf16.mxu1 %v6669_v46 }
 0x18b   : > { %5735 = vmatpush3.bf16.msra.mxu0 %v6378_v45  ;;  %5742 = vmatprep.mubr.msk.bf16.mxu0 %vm6670_vm3, %v6669_v46 }
 0x18c   : > { %5736 = vmatprep.subr.bf16.mxu0 %v6669_v46 }
 0x18d   : > { %5749 = vmatpush3.bf16.msra.mxu1 %v6381_v49 }
 0x18e   : > { %5750 = vmatprep.subr.bf16.mxu1 %v6669_v46 }
 0x18f   : > { %5737 = vmatpush3.bf16.msra.mxu0 %v6380_v48 }
 0x190   : > { %5738 = vmatprep.subr.bf16.mxu0 %v6669_v46 }
 0x191   : > { %5751 = vmatpush3.bf16.msra.mxu1 %v6383_v51 }
 0x192   : > { %5752 = vmatprep.subr.bf16.mxu1 %v6669_v46 }
 0x193   : > { %5739 = vmatpush3.bf16.msra.mxu0 %v6382_v50 }
 0x194   : > { %5740 = vmatprep.subr.bf16.mxu0 %v6669_v46 }
 0x195   : > { %5753 = vmatpush3.bf16.msra.mxu1 %v6385_v53 }
 0x196   : > { %5770 = vmatprep.subr.bf16.mxu1 %v6669_v46 }
 0x197   : > { %5741 = vmatpush3.bf16.msra.mxu0 %v6384_v52 }
 0x198   : > { %5758 = vmatprep.subr.bf16.mxu0 %v6669_v46  ;;  %5755 = vmatmul.mubr.msk.bf16.vlgmr.msra.gmra.mrb[24].mxu1 %vm279_vm2, %v1556_v55 }
 0x199   : > { %5771 = vmatpush3.bf16.msra.mxu1 %v6387_v57  ;;  %5778 = vmatprep.mubr.msk.bf16.mxu1 %vm6670_vm3, %v6669_v46 }
 0x19a   : > { %5743 = vmatmul.mubr.msk.bf16.vlgmr.msra.gmra.mrb[24].mxu0 %vm279_vm2, %v1478_v54  ;;  %5772 = vmatprep.subr.bf16.mxu1 %v6669_v46 }
 0x19b   : > { %5759 = vmatpush3.bf16.msra.mxu0 %v6386_v56  ;;  %5766 = vmatprep.mubr.msk.bf16.mxu0 %vm6670_vm3, %v6669_v46 }
 0x19c   : > { %5760 = vmatprep.subr.bf16.mxu0 %v6669_v46 }
 0x19d   : > { %5773 = vmatpush3.bf16.msra.mxu1 %v6389_v59 }
 0x19e   : > { %5774 = vmatprep.subr.bf16.mxu1 %v6669_v46 }
 0x19f   : > { %5761 = vmatpush3.bf16.msra.mxu0 %v6388_v58 }
 0x1a0   : > { %5762 = vmatprep.subr.bf16.mxu0 %v6669_v46 }
 0x1a1   : > { %5775 = vmatpush3.bf16.msra.mxu1 %v6391_v61 }
 0x1a2   : > { %5776 = vmatprep.subr.bf16.mxu1 %v6669_v46 }
 0x1a3   : > { %5763 = vmatpush3.bf16.msra.mxu0 %v6390_v60 }
 0x1a4   : > { %5764 = vmatprep.subr.bf16.mxu0 %v6669_v46 }
 0x1a5   : > { %5777 = vmatpush3.bf16.msra.mxu1 %v6393_v63 }
 0x1a7   : > { %5765 = vmatpush3.bf16.msra.mxu0 %v6392_v62 }
 0x1a8   : > { %5779 = vmatmul.mubr.msk.bf16.vlgmr.msra.gmra.mrb[28].mxu1 %vm279_vm2, %v1712_v2 }
 0x1aa   : > { %5767 = vmatmul.mubr.msk.bf16.vlgmr.msra.gmra.mrb[28].mxu0 %vm279_vm2, %v1634_v1 }
 0x20b   : > { %v713_v4 = vpop.f32.mrb[0].mxu1 }
 0x20c   : > { %v5612_v7 = vpop.f32.mrb[1].mxu1 }
 0x20d   : > { %v646_v3 = vpop.f32.mrb[0].mxu0  ;;  %v716_v9 = vpop.f32.mrb[2].mxu1 }
 0x20e   : > { %v5600_v5 = vpop.f32.mrb[1].mxu0  ;;  %v714_v6 = vadd.f32 %v713_v4, %v646_v3  ;;  %v5613_v11 = vpop.f32.mrb[3].mxu1 }
 0x20f   : > { %v649_v8 = vpop.f32.mrb[2].mxu0 }
 0x210   : > { %v5601_v10 = vpop.f32.mrb[3].mxu0 }
 0x21b   : > { %v859_v12 = vpop.f32.mrb[4].mxu1 }
 0x21c   : > { %v5636_v15 = vpop.f32.mrb[5].mxu1 }
 0x21d   : > { %v792_v46 = vpop.f32.mrb[4].mxu0  ;;  %v862_v17 = vpop.f32.mrb[6].mxu1 }
 0x21e   : > { %v5624_v13 = vpop.f32.mrb[5].mxu0  ;;  %v860_v14 = vadd.f32 %v859_v12, %v792_v46  ;;  %v5637_v19 = vpop.f32.mrb[7].mxu1 }
 0x21f   : > { %v795_v16 = vpop.f32.mrb[6].mxu0 }
 0x220   : > { %v5625_v18 = vpop.f32.mrb[7].mxu0 }
 0x221   : > { %v1784_v18 = vld [vmem:[%s6860_s15] sm:$0x1] }
 0x22b   : > { %v1004_v21 = vpop.f32.mrb[8].mxu1 }
 0x22c   : > { %v5660_v24 = vpop.f32.mrb[9].mxu1 }
 0x22d   : > { %v936_v20 = vpop.f32.mrb[8].mxu0  ;;  %v1007_v26 = vpop.f32.mrb[10].mxu1 }
 0x22e   : > { %v5648_v22 = vpop.f32.mrb[9].mxu0  ;;  %v1005_v23 = vadd.f32 %v1004_v21, %v936_v20  ;;  %v5661_v28 = vpop.f32.mrb[11].mxu1 }
 0x22f   : > { %v939_v25 = vpop.f32.mrb[10].mxu0 }
 0x230   : > { %v5649_v27 = vpop.f32.mrb[11].mxu0 }
 0x23b   : > { %v1149_v30 = vpop.f32.mrb[12].mxu1 }
 0x23c   : > { %v5684_v33 = vpop.f32.mrb[13].mxu1 }
 0x23d   : > { %v1081_v29 = vpop.f32.mrb[12].mxu0  ;;  %v1152_v35 = vpop.f32.mrb[14].mxu1 }
 0x23e   : > { %v5672_v31 = vpop.f32.mrb[13].mxu0  ;;  %v1150_v32 = vadd.f32 %v1149_v30, %v1081_v29  ;;  %v5685_v37 = vpop.f32.mrb[15].mxu1 }
 0x23f   : > { %v1084_v34 = vpop.f32.mrb[14].mxu0 }
 0x240   : > { %v5673_v36 = vpop.f32.mrb[15].mxu0 }
 0x24b   : > { %v1305_v40 = vpop.f32.mrb[16].mxu1 }
 0x24c   : > { %v1311_v43 = vadd.f32 %v1305_v40, %v860_v14  ;;  %v5708_v45 = vpop.f32.mrb[17].mxu1 }
 0x24d   : > { %v1226_v38 = vpop.f32.mrb[16].mxu0  ;;  %v1308_v48 = vpop.f32.mrb[18].mxu1 }
 0x24e   : > { %v1232_v39 = vadd.f32 %v1226_v38, %v714_v6  ;;  %v5696_v41 = vpop.f32.mrb[17].mxu0  ;;  %v5709_v50 = vpop.f32.mrb[19].mxu1 }
 0x24f   : > { %v1229_v47 = vpop.f32.mrb[18].mxu0 }
 0x250   : > { %v5697_v49 = vpop.f32.mrb[19].mxu0 }
 0x25b   : > { %v1462_v53 = vpop.f32.mrb[20].mxu1 }
 0x25c   : > { %v1468_v55 = vadd.f32 %v1462_v53, %v1150_v32  ;;  %v5732_v56 = vpop.f32.mrb[21].mxu1 }
 0x25d   : > { %v1384_v51 = vpop.f32.mrb[20].mxu0  ;;  %v1465_v58 = vpop.f32.mrb[22].mxu1 }
 0x25e   : > { %v1390_v52 = vadd.f32 %v1384_v51, %v1005_v23  ;;  %v5720_v54 = vpop.f32.mrb[21].mxu0  ;;  %v5733_v60 = vpop.f32.mrb[23].mxu1 }
 0x25f   : > { %v1387_v57 = vpop.f32.mrb[22].mxu0 }
 0x260   : > { %v5721_v59 = vpop.f32.mrb[23].mxu0 }
 0x26b   : > { %v1618_v63 = vpop.f32.mrb[24].mxu1 }
 0x26c   : > { %v1624_v2 = vadd.f32 %v1618_v63, %v1311_v43  ;;  %v5756_v3 = vpop.f32.mrb[25].mxu1 }
 0x26d   : > { %v1540_v61 = vpop.f32.mrb[24].mxu0  ;;  %v1621_v5 = vpop.f32.mrb[26].mxu1 }
 0x26e   : > { %v1546_v62 = vadd.f32 %v1540_v61, %v1232_v39  ;;  %v5744_v1 = vpop.f32.mrb[25].mxu0  ;;  %v5757_v8 = vpop.f32.mrb[27].mxu1 }
 0x26f   : > { %v1543_v4 = vpop.f32.mrb[26].mxu0 }
 0x270   : > { %v5745_v6 = vpop.f32.mrb[27].mxu0  ;;  %v1781_v7 = vadd.f32 %v1624_v2, %v1546_v62 }
 0x27b   : > { %v1774_v11 = vpop.f32.mrb[28].mxu1 }
 0x27c   : > { %v1780_v12 = vadd.f32 %v1774_v11, %v1468_v55  ;;  %v5780_v13 = vpop.f32.mrb[29].mxu1 }
 0x27d   : > { %v1696_v9 = vpop.f32.mrb[28].mxu0  ;;  %v1777_v16 = vpop.f32.mrb[30].mxu1 }
 0x27e   : > { %v1702_v10 = vadd.f32 %v1696_v9, %v1390_v52  ;;  %v5768_v46 = vpop.f32.mrb[29].mxu0  ;;  %v5781_v19 = vpop.f32.mrb[31].mxu1 }
 0x27f   : > { %v1699_v14 = vpop.f32.mrb[30].mxu0 }
 0x280   : > { %v1782_v15 = vadd.f32 %v1781_v7, %v1702_v10  ;;  %v5769_v17 = vpop.f32.mrb[31].mxu0 }
 0x282   : > { %v1783_v20 = vadd.f32 %v1782_v15, %v1780_v12 }
 0x284   : > { %v1785_v21 = vadd.f32 %v1784_v18, %v1783_v20 }
 0x286   : > { %1786 = vst [vmem:[%s6914_s14] sm:$0x1] %v1785_v21 }
 0x287 PF: > { %5782 = vmatprep.subr.bf16.mxu0 %v6667_v0  ;;  %5794 = vmatprep.subr.bf16.mxu1 %v6667_v0  ;;  %v6394_v22 = vld [vmem:[%s7535_s2 + $0x80] sm:$0xff]   ;;  %1787 = vst.msk [vmem:[#allocation2 + $0x1] sm:$0xff] %vm279_vm2, %v6908_v42  ;;  %1788 = vst.msk [vmem:[#allocation2 + $0x9] sm:$0xff] %vm279_vm2, %v6910_v44  ;;  %v6396_v24 = vld [vmem:[%s7535_s2 + $0x88] sm:$0xff]   ;;  %p5061_p0 = scmp.ne.s32.totalorder %s6831_s22, 1 }
 0x288   : > { %v6395_v23 = vld [vmem:[%s7535_s2 + $0x60] sm:$0xff]   ;;  %5790 = vmatprep.mubr.msk.bf16.mxu0 %vm6668_vm1, %v6667_v0  ;;  %5802 = vmatprep.mubr.msk.bf16.mxu1 %vm6668_vm1, %v6667_v0  ;;  %v6397_v42 = vld [vmem:[%s7535_s2 + $0x68] sm:$0xff]   ;;  %v6398_v44 = vld [vmem:[%s7535_s2 + $0x90] sm:$0xff]   ;;  %v6671_v3 = vmov (!%p5061_p0), 0.0   ;;  %vm6672_vm4 = vmmov (!%p5061_p0), 0  }
 0x289   : > { %5783 = vmatpush3.bf16.msra.mxu0 %v6394_v22  ;;  %5795 = vmatpush3.bf16.msra.mxu1 %v6395_v23  ;;  %v6399_v25 = vld [vmem:[%s7535_s2 + $0x70] sm:$0xff]   ;;  %v6400_v26 = vld [vmem:[%s7535_s2 + $0x98] sm:$0xff]   ;;  %v6402_v34 = vld [vmem:[%s7535_s2 + $0xa0] sm:$0xff]  }
 0x28a   : > { %5784 = vmatprep.subr.bf16.mxu0 %v6667_v0  ;;  %5796 = vmatprep.subr.bf16.mxu1 %v6667_v0  ;;  %v6401_v28 = vld [vmem:[%s7535_s2 + $0x78] sm:$0xff]   ;;  %v6403_v35 = vld [vmem:[%s7535_s2 + $0xa8] sm:$0xff]   ;;  %v6404_v36 = vld [vmem:[%s7535_s2 + $0xb0] sm:$0xff]  }
 0x28b   : > { %v6405_v37 = vld [vmem:[%s7535_s2 + $0xb8] sm:$0xff]   ;;  %v5060_v55 = vld [vmem:[%s7536_s3 + $0x1] ss:$0 sm:$0xff]  ;;  %v6410_v7 = vld [vmem:[#allocation5 + $0x90] sm:$0xff] (!%p5061_p0)  }
 0x28c   : > { %v6406_v2 = vld [vmem:[#allocation5 + $0x80] sm:$0xff] (!%p5061_p0)   ;;  %v6408_v5 = vld [vmem:[#allocation5 + $0x88] sm:$0xff] (!%p5061_p0)   ;;  %v6411_v8 = vld [vmem:[#allocation5 + $0x10] sm:$0xff] (!%p5061_p0)  }
 0x28d   : > { %5785 = vmatpush3.bf16.msra.mxu0 %v6396_v24  ;;  %5797 = vmatpush3.bf16.msra.mxu1 %v6397_v42  ;;  %v6407_v4 = vld [vmem:[#allocation5] sm:$0xff] (!%p5061_p0)   ;;  %v6409_v6 = vld [vmem:[#allocation5 + $0x8] sm:$0xff] (!%p5061_p0)   ;;  %v6412_v10 = vld [vmem:[#allocation5 + $0x98] sm:$0xff] (!%p5061_p0)  }
 0x28e   : > { %5786 = vmatprep.subr.bf16.mxu0 %v6667_v0  ;;  %5798 = vmatprep.subr.bf16.mxu1 %v6667_v0  ;;  %v1792_v27 = vld [vmem:[#allocation2 + $0x1] sm:$0xff]  ;;  %v1793_v29 = vld [vmem:[#allocation2 + $0x9] sm:$0xff]  ;;  %v6414_v12 = vld [vmem:[#allocation5 + $0xa0] sm:$0xff] (!%p5061_p0)  }
 0x28f   : > { %v1789_v30 = vld [vmem:[#allocation2] sm:$0xff]  ;;  %v1790_v31 = vld [vmem:[#allocation2 + $0x8] sm:$0xff]  ;;  %v1794_v32 = vpack.c.bf16 %v1793_v29, %v1792_v27  ;;  %v6413_v11 = vld [vmem:[#allocation5 + $0x18] sm:$0xff] (!%p5061_p0)  }
 0x290   : > { %v1791_v33 = vpack.c.bf16 %v1790_v31, %v1789_v30  ;;  %v1795_v38 = vld [vmem:[#allocation2 + $0x2] sm:$0xff]  ;;  %v1796_v39 = vld [vmem:[#allocation2 + $0xa] sm:$0xff]  ;;  %v6415_v13 = vld [vmem:[#allocation5 + $0x20] sm:$0xff] (!%p5061_p0)  }
 0x291   : > { %5787 = vmatpush3.bf16.msra.mxu0 %v6398_v44  ;;  %5799 = vmatpush3.bf16.msra.mxu1 %v6399_v25  ;;  %v1797_v40 = vpack.c.bf16 %v1796_v39, %v1795_v38  ;;  %v6416_v14 = vld [vmem:[#allocation5 + $0xa8] sm:$0xff] (!%p5061_p0)   ;;  %v6418_v16 = vld [vmem:[#allocation5 + $0xb0] sm:$0xff] (!%p5061_p0)   ;;  %v6420_v19 = vld [vmem:[#allocation5 + $0xb8] sm:$0xff] (!%p5061_p0)  }
 0x292   : > { %5788 = vmatprep.subr.bf16.mxu0 %v6667_v0  ;;  %5800 = vmatprep.subr.bf16.mxu1 %v6667_v0  ;;  %v6417_v15 = vld [vmem:[#allocation5 + $0x28] sm:$0xff] (!%p5061_p0)   ;;  %v6419_v17 = vld [vmem:[#allocation5 + $0x30] sm:$0xff] (!%p5061_p0)   ;;  %v6421_v20 = vld [vmem:[#allocation5 + $0x38] sm:$0xff] (!%p5061_p0)  }
 0x293   : > { %v6422_v22 = vld [vmem:[#allocation5 + $0xc0] sm:$0xff] (!%p5061_p0)   ;;  %v6424_v24 = vld [vmem:[#allocation5 + $0xc8] sm:$0xff] (!%p5061_p0)   ;;  %v6426_v44 = vld [vmem:[#allocation5 + $0xd0] sm:$0xff] (!%p5061_p0)  }
 0x294   : > { %v6423_v23 = vld [vmem:[#allocation5 + $0x40] sm:$0xff] (!%p5061_p0)   ;;  %v6425_v42 = vld [vmem:[#allocation5 + $0x48] sm:$0xff] (!%p5061_p0)   ;;  %v6427_v25 = vld [vmem:[#allocation5 + $0x50] sm:$0xff] (!%p5061_p0)  }
 0x295   : > { %5789 = vmatpush3.bf16.msra.mxu0 %v6400_v26  ;;  %5801 = vmatpush3.bf16.msra.mxu1 %v6401_v28  ;;  %v6428_v26 = vld [vmem:[#allocation5 + $0xd8] sm:$0xff] (!%p5061_p0)   ;;  %v6430_v30 = vld [vmem:[#allocation5 + $0xe0] sm:$0xff] (!%p5061_p0)  }
 0x296   : > { %5806 = vmatprep.subr.bf16.mxu0 %v6667_v0  ;;  %5830 = vmatprep.subr.bf16.mxu1 (!%p5061_p0), %v6671_v3  ;;  %v6429_v27 = vld [vmem:[#allocation5 + $0x58] sm:$0xff] (!%p5061_p0)   ;;  %v6431_v31 = vld [vmem:[#allocation5 + $0x60] sm:$0xff] (!%p5061_p0)  }
 0x298   : > { %5791 = vmatmul.mubr.msk.bf16.vlgmr.msra.gmra.mrb[0].mxu0 %vm279_vm2, %v1794_v32  ;;  %5803 = vmatmul.mubr.msk.bf16.vlgmr.msra.gmra.mrb[0].mxu1 %vm279_vm2, %v1791_v33  ;;  %v6432_v32 = vld [vmem:[#allocation5 + $0xe8] sm:$0xff] (!%p5061_p0)  }
 0x299   : > { %5807 = vmatpush3.bf16.msra.mxu0 %v6402_v34  ;;  %5814 = vmatprep.mubr.msk.bf16.mxu0 %vm6668_vm1, %v6667_v0  ;;  %v6433_v33 = vld [vmem:[#allocation5 + $0x68] sm:$0xff] (!%p5061_p0)   ;;  %v6434_v34 = vld [vmem:[#allocation5 + $0xf0] sm:$0xff] (!%p5061_p0)  }
 0x29a   : > { %5808 = vmatprep.subr.bf16.mxu0 %v6667_v0  ;;  %5831 = vmatpush3.bf16.msra.mxu1 (!%p5061_p0), %v6407_v4  ;;  %v6455_v4 = vld [vmem:[#allocation5 + $0x1a0] sm:$0xff] (!%p5061_p0)  }
 0x29b   : > { %5832 = vmatprep.subr.bf16.mxu1 (!%p5061_p0), %v6671_v3  ;;  %5838 = vmatprep.mubr.msk.bf16.mxu1 (!%p5061_p0), %vm6672_vm4, %v6671_v3 }
 0x29d   : > { %5809 = vmatpush3.bf16.msra.mxu0 %v6403_v35  ;;  %v6435_v35 = vld [vmem:[#allocation5 + $0x70] sm:$0xff] (!%p5061_p0)  }
 0x29e   : > { %5810 = vmatprep.subr.bf16.mxu0 %v6667_v0  ;;  %5833 = vmatpush3.bf16.msra.mxu1 (!%p5061_p0), %v6409_v6  ;;  %v6457_v6 = vld [vmem:[#allocation5 + $0x1a8] sm:$0xff] (!%p5061_p0)  }
 0x29f   : > { %5834 = vmatprep.subr.bf16.mxu1 (!%p5061_p0), %v6671_v3 }
 0x2a1   : > { %5811 = vmatpush3.bf16.msra.mxu0 %v6404_v36  ;;  %v6436_v36 = vld [vmem:[#allocation5 + $0xf8] sm:$0xff] (!%p5061_p0)  }
 0x2a2   : > { %5812 = vmatprep.subr.bf16.mxu0 %v6667_v0  ;;  %5835 = vmatpush3.bf16.msra.mxu1 (!%p5061_p0), %v6411_v8  ;;  %v6459_v8 = vld [vmem:[#allocation5 + $0x1b0] sm:$0xff] (!%p5061_p0)  }
 0x2a3   : > { %5836 = vmatprep.subr.bf16.mxu1 (!%p5061_p0), %v6671_v3 }
 0x2a5   : > { %5813 = vmatpush3.bf16.msra.mxu0 %v6405_v37  ;;  %v6437_v37 = vld [vmem:[#allocation5 + $0x78] sm:$0xff] (!%p5061_p0)  }
 0x2a6   : > { %5818 = vmatprep.subr.bf16.mxu0 (!%p5061_p0), %v6671_v3  ;;  %5837 = vmatpush3.bf16.msra.mxu1 (!%p5061_p0), %v6413_v11 }
 0x2a7   : > { %5854 = vmatprep.subr.bf16.mxu1 (!%p5061_p0), %v6671_v3 }
 0x2a8   : > { %5815 = vmatmul.mubr.msk.bf16.vlgmr.msra.gmra.mrb[4].mxu0 %vm279_vm2, %v1797_v40  ;;  %v6438_v40 = vld [vmem:[#allocation5 + $0x100] sm:$0xff] (!%p5061_p0)  }
 0x2a9   : > { %5819 = vmatpush3.bf16.msra.mxu0 (!%p5061_p0), %v6406_v2  ;;  %5826 = vmatprep.mubr.msk.bf16.mxu0 (!%p5061_p0), %vm6672_vm4, %v6671_v3  ;;  %v6454_v2 = vld [vmem:[#allocation5 + $0x180] sm:$0xff] (!%p5061_p0)  }
 0x2aa   : > { %5820 = vmatprep.subr.bf16.mxu0 (!%p5061_p0), %v6671_v3 }
 0x2ad   : > { %5821 = vmatpush3.bf16.msra.mxu0 (!%p5061_p0), %v6408_v5  ;;  %v6456_v5 = vld [vmem:[#allocation5 + $0x188] sm:$0xff] (!%p5061_p0)  }
 0x2ae   : > { %5822 = vmatprep.subr.bf16.mxu0 (!%p5061_p0), %v6671_v3 }
 0x2b1   : > { %5823 = vmatpush3.bf16.msra.mxu0 (!%p5061_p0), %v6410_v7  ;;  %v6458_v7 = vld [vmem:[#allocation5 + $0x190] sm:$0xff] (!%p5061_p0)  }
 0x2b2   : > { %5824 = vmatprep.subr.bf16.mxu0 (!%p5061_p0), %v6671_v3 }
 0x2b5   : > { %5825 = vmatpush3.bf16.msra.mxu0 (!%p5061_p0), %v6412_v10  ;;  %v6461_v10 = vld [vmem:[#allocation5 + $0x1b8] sm:$0xff] (!%p5061_p0)  }
 0x2b6   : > { %5842 = vmatprep.subr.bf16.mxu0 (!%p5061_p0), %v6671_v3 }
 0x36b   : > { %v1877_v41 = vpop.f32.mrb[0].mxu0  ;;  %v1945_v43 = vpop.f32.mrb[0].mxu1 }
 0x36c   : > { %v5792_v45 = vpop.f32.mrb[1].mxu0  ;;  %v1946_v47 = vadd.f32 %v1945_v43, %v1877_v41  ;;  %v5804_v48 = vpop.f32.mrb[1].mxu1  ;;  %v6439_v41 = vld [vmem:[#allocation5 + $0x120] sm:$0xff] (!%p5061_p0)   ;;  %v6440_v43 = vld [vmem:[#allocation5 + $0x108] sm:$0xff] (!%p5061_p0)  }
 0x36d   : > { %v1880_v49 = vpop.f32.mrb[2].mxu0  ;;  %v1948_v50 = vpop.f32.mrb[2].mxu1  ;;  %v6441_v45 = vld [vmem:[#allocation5 + $0x128] sm:$0xff] (!%p5061_p0)   ;;  %v6443_v48 = vld [vmem:[#allocation5 + $0x130] sm:$0xff] (!%p5061_p0)  }
 0x36e   : > { %v5793_v51 = vpop.f32.mrb[3].mxu0  ;;  %v1949_v52 = vadd.f32 %v1948_v50, %v1880_v49  ;;  %v5805_v53 = vpop.f32.mrb[3].mxu1  ;;  %v6444_v49 = vld [vmem:[#allocation5 + $0x118] sm:$0xff] (!%p5061_p0)  }
 0x36f   : > { %v6445_v51 = vld [vmem:[#allocation5 + $0x138] sm:$0xff] (!%p5061_p0)   ;;  %v6446_v53 = vld [vmem:[#allocation5 + $0x140] sm:$0xff] (!%p5061_p0)  }
 0x37b   : > { %v2022_v54 = vpop.f32.mrb[4].mxu0 }
 0x37c   : > { %v2029_v56 = vadd.f32 %v2022_v54, %v1946_v47  ;;  %v5816_v57 = vpop.f32.mrb[5].mxu0  ;;  %2046 = sbr.rel (%p5061_p0) target bundleno = 1235 (0x4d3), region = 52  ;;  %v6442_v47 = vld [vmem:[#allocation5 + $0x110] sm:$0xff] (!%p5061_p0)   ;;  %v6447_v54 = vld [vmem:[#allocation5 + $0x160] sm:$0xff] (!%p5061_p0)  }
 0x37d   : > { %v2025_v58 = vpop.f32.mrb[6].mxu0  ;;  %v6450_v57 = vld [vmem:[#allocation5 + $0x150] sm:$0xff] (!%p5061_p0)  }
 0x37e   : > { %v2039_v59 = vadd.f32 %v5060_v55, %v2029_v56  ;;  %v2030_v60 = vadd.f32 %v2025_v58, %v1949_v52  ;;  %v5817_v61 = vpop.f32.mrb[7].mxu0  ;;  %v6449_v56 = vld [vmem:[#allocation5 + $0x168] sm:$0xff] (!%p5061_p0)   ;;  %v6451_v58 = vld [vmem:[#allocation5 + $0x170] sm:$0xff] (!%p5061_p0)  }
 0x380   : > { %v7125_v62 = vmax.f32 %v2039_v59, 0.0  ;;  %v2040_v63 = vadd.f32 %v5060_v55, %v2030_v60  ;;  %v6448_v55 = vld [vmem:[#allocation5 + $0x148] sm:$0xff] (!%p5061_p0)   ;;  %v6452_v59 = vld [vmem:[#allocation5 + $0x158] sm:$0xff] (!%p5061_p0)  }
 0x381   : > { %v6453_v60 = vld [vmem:[#allocation5 + $0x178] sm:$0xff] (!%p5061_p0)  }
 0x382   : > { %v7127_v1 = vmax.f32 %v2040_v63, 0.0  ;;  %v7142_v9 = vpack.c.bf16 (!%p5061_p0), %v7125_v62, %v7125_v62 }
 0x384   : > { %v2093_v46 = vrot.slane %v7142_v9, 2  ;;  %5839 = vmatmul.mubr.msk.bf16.vlgmr.msra.gmra.mrb[0].mxu1 %vm279_vm2, %v7142_v9  ;;  %v7161_v18 = vshrl.u32 %v7142_v9, 16  ;;  %v2383_v28 = vrot.slane %v7142_v9, 3  ;;  %v2451_v29 = vrot.slane %v7142_v9, 1  ;;  %v6460_v9 = vld [vmem:[#allocation5 + $0x198] sm:$0xff]  }
 0x385   : > { %5855 = vmatpush3.bf16.msra.mxu1 %v6415_v13  ;;  %5862 = vmatprep.mubr.msk.bf16.mxu1 %vm6672_vm4, %v6671_v3  ;;  %v7213_v50 = vpack.c.bf16 %v7127_v1, %v7127_v1  ;;  %v6463_v13 = vld [vmem:[#allocation5 + $0x1e0] sm:$0xff]  }
 0x386   : > { %5827 = vmatmul.mubr.msk.bf16.vlgmr.msra.gmra.mrb[0].mxu0 %vm279_vm2, %v2093_v46  ;;  %5856 = vmatprep.subr.bf16.mxu1 %v6671_v3  ;;  %v2239_v21 = vrot.slane %v7161_v18, 2  ;;  %v2528_v38 = vrot.slane %v7161_v18, 3  ;;  %v2596_v39 = vrot.slane %v7161_v18, 1 }
 0x387   : > { %5843 = vmatpush3.bf16.msra.mxu0 %v6414_v12  ;;  %5850 = vmatprep.mubr.msk.bf16.mxu0 %vm6672_vm4, %v6671_v3  ;;  %v7218_v52 = vshrl.u32 %v7213_v50, 16  ;;  %v2831_v61 = vrot.slane %v7213_v50, 1  ;;  %v2987_v11 = vrot.slane %v7213_v50, 2  ;;  %v6462_v12 = vld [vmem:[#allocation5 + $0x1c0] sm:$0xff]  }
 0x388   : > { %5844 = vmatprep.subr.bf16.mxu0 %v6671_v3 }
 0x389   : > { %5857 = vmatpush3.bf16.msra.mxu1 %v6417_v15  ;;  %v2909_v63 = vrot.slane %v7218_v52, 1  ;;  %v3065_v46 = vrot.slane %v7218_v52, 2  ;;  %v6465_v15 = vld [vmem:[#allocation5 + $0x1e8] sm:$0xff]  }
 0x38a   : > { %5858 = vmatprep.subr.bf16.mxu1 %v6671_v3 }
 0x38b   : > { %5845 = vmatpush3.bf16.msra.mxu0 %v6416_v14  ;;  %v6464_v14 = vld [vmem:[#allocation5 + $0x1c8] sm:$0xff]  }
 0x38c   : > { %5846 = vmatprep.subr.bf16.mxu0 %v6671_v3 }
 0x38d   : > { %5859 = vmatpush3.bf16.msra.mxu1 %v6419_v17  ;;  %v6467_v17 = vld [vmem:[#allocation5 + $0x1f0] sm:$0xff]  }
 0x38e   : > { %5860 = vmatprep.subr.bf16.mxu1 %v6671_v3 }
 0x38f   : > { %5847 = vmatpush3.bf16.msra.mxu0 %v6418_v16  ;;  %v6466_v16 = vld [vmem:[#allocation5 + $0x1d0] sm:$0xff]  }
 0x390   : > { %5848 = vmatprep.subr.bf16.mxu0 %v6671_v3 }
 0x391   : > { %5861 = vmatpush3.bf16.msra.mxu1 %v6421_v20  ;;  %v3143_v20 = vrot.slane %v7213_v50, 3 }
 0x392   : > { %5878 = vmatprep.subr.bf16.mxu1 %v6671_v3 }
 0x393   : > { %5849 = vmatpush3.bf16.msra.mxu0 %v6420_v19  ;;  %v6469_v19 = vld [vmem:[#allocation5 + $0x1f8] sm:$0xff]  }
 0x394   : > { %5866 = vmatprep.subr.bf16.mxu0 %v6671_v3  ;;  %5863 = vmatmul.mubr.msk.bf16.vlgmr.msra.gmra.mrb[4].mxu1 %vm279_vm2, %v7161_v18  ;;  %v6468_v18 = vld [vmem:[#allocation5 + $0x1d8] sm:$0xff]  }
 0x395   : > { %5879 = vmatpush3.bf16.msra.mxu1 %v6423_v23  ;;  %5886 = vmatprep.mubr.msk.bf16.mxu1 %vm6672_vm4, %v6671_v3 }
 0x396   : > { %5851 = vmatmul.mubr.msk.bf16.vlgmr.msra.gmra.mrb[4].mxu0 %vm279_vm2, %v2239_v21  ;;  %5880 = vmatprep.subr.bf16.mxu1 %v6671_v3  ;;  %v3221_v21 = vrot.slane %v7218_v52, 3 }
 0x397   : > { %5867 = vmatpush3.bf16.msra.mxu0 %v6422_v22  ;;  %5874 = vmatprep.mubr.msk.bf16.mxu0 %vm6672_vm4, %v6671_v3 }
 0x398   : > { %5868 = vmatprep.subr.bf16.mxu0 %v6671_v3 }
 0x399   : > { %5881 = vmatpush3.bf16.msra.mxu1 %v6425_v42 }
 0x39a   : > { %5882 = vmatprep.subr.bf16.mxu1 %v6671_v3 }
 0x39b   : > { %5869 = vmatpush3.bf16.msra.mxu0 %v6424_v24 }
 0x39c   : > { %5870 = vmatprep.subr.bf16.mxu0 %v6671_v3 }
 0x39d   : > { %5883 = vmatpush3.bf16.msra.mxu1 %v6427_v25 }
 0x39e   : > { %5884 = vmatprep.subr.bf16.mxu1 %v6671_v3 }
 0x39f   : > { %5871 = vmatpush3.bf16.msra.mxu0 %v6426_v44 }
 0x3a0   : > { %5872 = vmatprep.subr.bf16.mxu0 %v6671_v3 }
 0x3a1   : > { %5885 = vmatpush3.bf16.msra.mxu1 %v6429_v27 }
 0x3a2   : > { %5902 = vmatprep.subr.bf16.mxu1 %v6671_v3 }
 0x3a3   : > { %5873 = vmatpush3.bf16.msra.mxu0 %v6428_v26 }
 0x3a4   : > { %5890 = vmatprep.subr.bf16.mxu0 %v6671_v3  ;;  %5887 = vmatmul.mubr.msk.bf16.vlgmr.msra.gmra.mrb[8].mxu1 %vm279_vm2, %v2451_v29 }
 0x3a5   : > { %5903 = vmatpush3.bf16.msra.mxu1 %v6431_v31  ;;  %5910 = vmatprep.mubr.msk.bf16.mxu1 %vm6672_vm4, %v6671_v3 }
 0x3a6   : > { %5875 = vmatmul.mubr.msk.bf16.vlgmr.msra.gmra.mrb[8].mxu0 %vm279_vm2, %v2383_v28  ;;  %5904 = vmatprep.subr.bf16.mxu1 %v6671_v3 }
 0x3a7   : > { %5891 = vmatpush3.bf16.msra.mxu0 %v6430_v30  ;;  %5898 = vmatprep.mubr.msk.bf16.mxu0 %vm6672_vm4, %v6671_v3 }
 0x3a8   : > { %5892 = vmatprep.subr.bf16.mxu0 %v6671_v3 }
 0x3a9   : > { %5905 = vmatpush3.bf16.msra.mxu1 %v6433_v33 }
 0x3aa   : > { %5906 = vmatprep.subr.bf16.mxu1 %v6671_v3 }
 0x3ab   : > { %5893 = vmatpush3.bf16.msra.mxu0 %v6432_v32 }
 0x3ac   : > { %5894 = vmatprep.subr.bf16.mxu0 %v6671_v3 }
 0x3ad   : > { %5907 = vmatpush3.bf16.msra.mxu1 %v6435_v35 }
 0x3ae   : > { %5908 = vmatprep.subr.bf16.mxu1 %v6671_v3 }
 0x3af   : > { %5895 = vmatpush3.bf16.msra.mxu0 %v6434_v34 }
 0x3b0   : > { %5896 = vmatprep.subr.bf16.mxu0 %v6671_v3 }
 0x3b1   : > { %5909 = vmatpush3.bf16.msra.mxu1 %v6437_v37 }
 0x3b2   : > { %5926 = vmatprep.subr.bf16.mxu1 %v6671_v3 }
 0x3b3   : > { %5897 = vmatpush3.bf16.msra.mxu0 %v6436_v36 }
 0x3b4   : > { %5914 = vmatprep.subr.bf16.mxu0 %v6671_v3  ;;  %5911 = vmatmul.mubr.msk.bf16.vlgmr.msra.gmra.mrb[12].mxu1 %vm279_vm2, %v2596_v39 }
 0x3b5   : > { %5927 = vmatpush3.bf16.msra.mxu1 %v6439_v41  ;;  %5934 = vmatprep.mubr.msk.bf16.mxu1 %vm6672_vm4, %v6671_v3 }
 0x3b6   : > { %5899 = vmatmul.mubr.msk.bf16.vlgmr.msra.gmra.mrb[12].mxu0 %vm279_vm2, %v2528_v38  ;;  %5928 = vmatprep.subr.bf16.mxu1 %v6671_v3 }
 0x3b7   : > { %5915 = vmatpush3.bf16.msra.mxu0 %v6438_v40  ;;  %5922 = vmatprep.mubr.msk.bf16.mxu0 %vm6672_vm4, %v6671_v3 }
 0x3b8   : > { %5916 = vmatprep.subr.bf16.mxu0 %v6671_v3 }
 0x3b9   : > { %5929 = vmatpush3.bf16.msra.mxu1 %v6441_v45 }
 0x3ba   : > { %5930 = vmatprep.subr.bf16.mxu1 %v6671_v3 }
 0x3bb   : > { %5917 = vmatpush3.bf16.msra.mxu0 %v6440_v43 }
 0x3bc   : > { %5918 = vmatprep.subr.bf16.mxu0 %v6671_v3 }
 0x3bd   : > { %5931 = vmatpush3.bf16.msra.mxu1 %v6443_v48 }
 0x3be   : > { %5932 = vmatprep.subr.bf16.mxu1 %v6671_v3 }
 0x3bf   : > { %5919 = vmatpush3.bf16.msra.mxu0 %v6442_v47 }
 0x3c0   : > { %5920 = vmatprep.subr.bf16.mxu0 %v6671_v3 }
 0x3c1   : > { %5933 = vmatpush3.bf16.msra.mxu1 %v6445_v51 }
 0x3c2   : > { %5950 = vmatprep.subr.bf16.mxu1 %v6671_v3 }
 0x3c3   : > { %5921 = vmatpush3.bf16.msra.mxu0 %v6444_v49 }
 0x3c4   : > { %5938 = vmatprep.subr.bf16.mxu0 %v6671_v3  ;;  %5935 = vmatmul.mubr.msk.bf16.vlgmr.msra.gmra.mrb[16].mxu1 %vm279_vm2, %v7218_v52 }
 0x3c5   : > { %5951 = vmatpush3.bf16.msra.mxu1 %v6447_v54  ;;  %5958 = vmatprep.mubr.msk.bf16.mxu1 %vm6672_vm4, %v6671_v3 }
 0x3c6   : > { %5923 = vmatmul.mubr.msk.bf16.vlgmr.msra.gmra.mrb[16].mxu0 %vm279_vm2, %v7213_v50  ;;  %5952 = vmatprep.subr.bf16.mxu1 %v6671_v3 }
 0x3c7   : > { %5939 = vmatpush3.bf16.msra.mxu0 %v6446_v53  ;;  %5946 = vmatprep.mubr.msk.bf16.mxu0 %vm6672_vm4, %v6671_v3 }
 0x3c8   : > { %5940 = vmatprep.subr.bf16.mxu0 %v6671_v3 }
 0x3c9   : > { %5953 = vmatpush3.bf16.msra.mxu1 %v6449_v56 }
 0x3ca   : > { %5954 = vmatprep.subr.bf16.mxu1 %v6671_v3 }
 0x3cb   : > { %5941 = vmatpush3.bf16.msra.mxu0 %v6448_v55 }
 0x3cc   : > { %5942 = vmatprep.subr.bf16.mxu0 %v6671_v3 }
 0x3cd   : > { %5955 = vmatpush3.bf16.msra.mxu1 %v6451_v58 }
 0x3ce   : > { %5956 = vmatprep.subr.bf16.mxu1 %v6671_v3 }
 0x3cf   : > { %5943 = vmatpush3.bf16.msra.mxu0 %v6450_v57 }
 0x3d0   : > { %5944 = vmatprep.subr.bf16.mxu0 %v6671_v3 }
 0x3d1   : > { %5957 = vmatpush3.bf16.msra.mxu1 %v6453_v60 }
 0x3d2   : > { %5974 = vmatprep.subr.bf16.mxu1 %v6671_v3 }
 0x3d3   : > { %5945 = vmatpush3.bf16.msra.mxu0 %v6452_v59 }
 0x3d4   : > { %5962 = vmatprep.subr.bf16.mxu0 %v6671_v3  ;;  %5959 = vmatmul.mubr.msk.bf16.vlgmr.msra.gmra.mrb[20].mxu1 %vm279_vm2, %v2909_v63 }
 0x3d5   : > { %5975 = vmatpush3.bf16.msra.mxu1 %v6455_v4  ;;  %5982 = vmatprep.mubr.msk.bf16.mxu1 %vm6672_vm4, %v6671_v3 }
 0x3d6   : > { %5947 = vmatmul.mubr.msk.bf16.vlgmr.msra.gmra.mrb[20].mxu0 %vm279_vm2, %v2831_v61  ;;  %5976 = vmatprep.subr.bf16.mxu1 %v6671_v3 }
 0x3d7   : > { %5963 = vmatpush3.bf16.msra.mxu0 %v6454_v2  ;;  %5970 = vmatprep.mubr.msk.bf16.mxu0 %vm6672_vm4, %v6671_v3 }
 0x3d8   : > { %5964 = vmatprep.subr.bf16.mxu0 %v6671_v3 }
 0x3d9   : > { %5977 = vmatpush3.bf16.msra.mxu1 %v6457_v6 }
 0x3da   : > { %5978 = vmatprep.subr.bf16.mxu1 %v6671_v3 }
 0x3db   : > { %5965 = vmatpush3.bf16.msra.mxu0 %v6456_v5 }
 0x3dc   : > { %5966 = vmatprep.subr.bf16.mxu0 %v6671_v3 }
 0x3dd   : > { %5979 = vmatpush3.bf16.msra.mxu1 %v6459_v8 }
 0x3de   : > { %5980 = vmatprep.subr.bf16.mxu1 %v6671_v3 }
 0x3df   : > { %5967 = vmatpush3.bf16.msra.mxu0 %v6458_v7 }
 0x3e0   : > { %5968 = vmatprep.subr.bf16.mxu0 %v6671_v3 }
 0x3e1   : > { %5981 = vmatpush3.bf16.msra.mxu1 %v6461_v10 }
 0x3e2   : > { %5998 = vmatprep.subr.bf16.mxu1 %v6671_v3 }
 0x3e3   : > { %5969 = vmatpush3.bf16.msra.mxu0 %v6460_v9 }
 0x3e4   : > { %5986 = vmatprep.subr.bf16.mxu0 %v6671_v3  ;;  %5983 = vmatmul.mubr.msk.bf16.vlgmr.msra.gmra.mrb[24].mxu1 %vm279_vm2, %v3065_v46 }
 0x3e5   : > { %5999 = vmatpush3.bf16.msra.mxu1 %v6463_v13  ;;  %6006 = vmatprep.mubr.msk.bf16.mxu1 %vm6672_vm4, %v6671_v3 }
 0x3e6   : > { %5971 = vmatmul.mubr.msk.bf16.vlgmr.msra.gmra.mrb[24].mxu0 %vm279_vm2, %v2987_v11  ;;  %6000 = vmatprep.subr.bf16.mxu1 %v6671_v3 }
 0x3e7   : > { %5987 = vmatpush3.bf16.msra.mxu0 %v6462_v12  ;;  %5994 = vmatprep.mubr.msk.bf16.mxu0 %vm6672_vm4, %v6671_v3 }
 0x3e8   : > { %5988 = vmatprep.subr.bf16.mxu0 %v6671_v3 }
 0x3e9   : > { %6001 = vmatpush3.bf16.msra.mxu1 %v6465_v15 }
 0x3ea   : > { %6002 = vmatprep.subr.bf16.mxu1 %v6671_v3 }
 0x3eb   : > { %5989 = vmatpush3.bf16.msra.mxu0 %v6464_v14 }
 0x3ec   : > { %5990 = vmatprep.subr.bf16.mxu0 %v6671_v3 }
 0x3ed   : > { %6003 = vmatpush3.bf16.msra.mxu1 %v6467_v17 }
 0x3ee   : > { %6004 = vmatprep.subr.bf16.mxu1 %v6671_v3 }
 0x3ef   : > { %5991 = vmatpush3.bf16.msra.mxu0 %v6466_v16 }
 0x3f0   : > { %5992 = vmatprep.subr.bf16.mxu0 %v6671_v3 }
 0x3f1   : > { %6005 = vmatpush3.bf16.msra.mxu1 %v6469_v19 }
 0x3f3   : > { %5993 = vmatpush3.bf16.msra.mxu0 %v6468_v18 }
 0x3f4   : > { %6007 = vmatmul.mubr.msk.bf16.vlgmr.msra.gmra.mrb[28].mxu1 %vm279_vm2, %v3221_v21 }
 0x3f6   : > { %5995 = vmatmul.mubr.msk.bf16.vlgmr.msra.gmra.mrb[28].mxu0 %vm279_vm2, %v3143_v20 }
 0x457   : > { %v2222_v23 = vpop.f32.mrb[0].mxu1 }
 0x458   : > { %v5840_v44 = vpop.f32.mrb[1].mxu1 }
 0x459   : > { %v2155_v22 = vpop.f32.mrb[0].mxu0  ;;  %v2225_v26 = vpop.f32.mrb[2].mxu1 }
 0x45a   : > { %v5828_v24 = vpop.f32.mrb[1].mxu0  ;;  %v2223_v42 = vadd.f32 %v2222_v23, %v2155_v22  ;;  %v5841_v28 = vpop.f32.mrb[3].mxu1 }
 0x45b   : > { %v2158_v25 = vpop.f32.mrb[2].mxu0 }
 0x45c   : > { %v5829_v27 = vpop.f32.mrb[3].mxu0 }
 0x467   : > { %v2368_v29 = vpop.f32.mrb[4].mxu1 }
 0x468   : > { %v5864_v32 = vpop.f32.mrb[5].mxu1 }
 0x469   : > { %v2301_v3 = vpop.f32.mrb[4].mxu0  ;;  %v2371_v34 = vpop.f32.mrb[6].mxu1 }
 0x46a   : > { %v5852_v30 = vpop.f32.mrb[5].mxu0  ;;  %v2369_v31 = vadd.f32 %v2368_v29, %v2301_v3  ;;  %v5865_v36 = vpop.f32.mrb[7].mxu1 }
 0x46b   : > { %v2304_v33 = vpop.f32.mrb[6].mxu0 }
 0x46c   : > { %v5853_v35 = vpop.f32.mrb[7].mxu0 }
 0x46d   : > { %v3293_v35 = vld [vmem:[%s6860_s15] sm:$0x1] }
 0x477   : > { %v2513_v38 = vpop.f32.mrb[8].mxu1 }
 0x478   : > { %v5888_v41 = vpop.f32.mrb[9].mxu1 }
 0x479   : > { %v2445_v37 = vpop.f32.mrb[8].mxu0  ;;  %v2516_v45 = vpop.f32.mrb[10].mxu1 }
 0x47a   : > { %v5876_v39 = vpop.f32.mrb[9].mxu0  ;;  %v2514_v40 = vadd.f32 %v2513_v38, %v2445_v37  ;;  %v5889_v48 = vpop.f32.mrb[11].mxu1 }
 0x47b   : > { %v2448_v43 = vpop.f32.mrb[10].mxu0 }
 0x47c   : > { %v5877_v47 = vpop.f32.mrb[11].mxu0 }
 0x487   : > { %v2658_v50 = vpop.f32.mrb[12].mxu1 }
 0x488   : > { %v5912_v53 = vpop.f32.mrb[13].mxu1 }
 0x489   : > { %v2590_v49 = vpop.f32.mrb[12].mxu0  ;;  %v2661_v55 = vpop.f32.mrb[14].mxu1 }
 0x48a   : > { %v5900_v51 = vpop.f32.mrb[13].mxu0  ;;  %v2659_v52 = vadd.f32 %v2658_v50, %v2590_v49  ;;  %v5913_v57 = vpop.f32.mrb[15].mxu1 }
 0x48b   : > { %v2593_v54 = vpop.f32.mrb[14].mxu0 }
 0x48c   : > { %v5901_v56 = vpop.f32.mrb[15].mxu0 }
 0x497   : > { %v2814_v60 = vpop.f32.mrb[16].mxu1 }
 0x498   : > { %v2820_v63 = vadd.f32 %v2814_v60, %v2369_v31  ;;  %v5936_v2 = vpop.f32.mrb[17].mxu1 }
 0x499   : > { %v2735_v58 = vpop.f32.mrb[16].mxu0  ;;  %v2817_v5 = vpop.f32.mrb[18].mxu1 }
 0x49a   : > { %v2741_v59 = vadd.f32 %v2735_v58, %v2223_v42  ;;  %v5924_v61 = vpop.f32.mrb[17].mxu0  ;;  %v5937_v7 = vpop.f32.mrb[19].mxu1 }
 0x49b   : > { %v2738_v4 = vpop.f32.mrb[18].mxu0 }
 0x49c   : > { %v5925_v6 = vpop.f32.mrb[19].mxu0 }
 0x4a7   : > { %v2971_v10 = vpop.f32.mrb[20].mxu1 }
 0x4a8   : > { %v2977_v46 = vadd.f32 %v2971_v10, %v2659_v52  ;;  %v5960_v12 = vpop.f32.mrb[21].mxu1 }
 0x4a9   : > { %v2893_v8 = vpop.f32.mrb[20].mxu0  ;;  %v2974_v14 = vpop.f32.mrb[22].mxu1 }
 0x4aa   : > { %v2899_v9 = vadd.f32 %v2893_v8, %v2514_v40  ;;  %v5948_v11 = vpop.f32.mrb[21].mxu0  ;;  %v5961_v16 = vpop.f32.mrb[23].mxu1 }
 0x4ab   : > { %v2896_v13 = vpop.f32.mrb[22].mxu0 }
 0x4ac   : > { %v5949_v15 = vpop.f32.mrb[23].mxu0 }
 0x4b7   : > { %v3127_v19 = vpop.f32.mrb[24].mxu1 }
 0x4b8   : > { %v3133_v21 = vadd.f32 %v3127_v19, %v2820_v63  ;;  %v5984_v22 = vpop.f32.mrb[25].mxu1 }
 0x4b9   : > { %v3049_v17 = vpop.f32.mrb[24].mxu0  ;;  %v3130_v24 = vpop.f32.mrb[26].mxu1 }
 0x4ba   : > { %v3055_v18 = vadd.f32 %v3049_v17, %v2741_v59  ;;  %v5972_v20 = vpop.f32.mrb[25].mxu0  ;;  %v5985_v25 = vpop.f32.mrb[27].mxu1 }
 0x4bb   : > { %v3052_v23 = vpop.f32.mrb[26].mxu0 }
 0x4bc   : > { %v5973_v42 = vpop.f32.mrb[27].mxu0  ;;  %v3290_v44 = vadd.f32 %v3133_v21, %v3055_v18 }
 0x4c7   : > { %v3283_v28 = vpop.f32.mrb[28].mxu1 }
 0x4c8   : > { %v3289_v29 = vadd.f32 %v3283_v28, %v2977_v46  ;;  %v6008_v30 = vpop.f32.mrb[29].mxu1 }
 0x4c9   : > { %v3205_v26 = vpop.f32.mrb[28].mxu0  ;;  %v3286_v33 = vpop.f32.mrb[30].mxu1 }
 0x4ca   : > { %v3211_v27 = vadd.f32 %v3205_v26, %v2899_v9  ;;  %v5996_v3 = vpop.f32.mrb[29].mxu0  ;;  %v6009_v36 = vpop.f32.mrb[31].mxu1 }
 0x4cb   : > { %v3208_v31 = vpop.f32.mrb[30].mxu0 }
 0x4cc   : > { %v3291_v32 = vadd.f32 %v3290_v44, %v3211_v27  ;;  %v5997_v34 = vpop.f32.mrb[31].mxu0 }
 0x4ce   : > { %v3292_v37 = vadd.f32 %v3291_v32, %v3289_v29 }
 0x4d0   : > { %v3294_v38 = vadd.f32 %v3293_v35, %v3292_v37 }
 0x4d2   : > { %3295 = vst [vmem:[%s6914_s14] sm:$0x1] %v3294_v38 }
 0x4d3 PF: > { %6010 = vmatprep.subr.bf16.mxu0 %v6667_v0  ;;  %6022 = vmatprep.subr.bf16.mxu1 %v6667_v0  ;;  %v6470_v39 = vld [vmem:[%s7535_s2 + $0xe0] sm:$0xff]   ;;  %3296 = vst.msk [vmem:[#allocation2 + $0x1] sm:$0xff] %vm279_vm2, %v7125_v62  ;;  %3297 = vst.msk [vmem:[#allocation2 + $0x9] sm:$0xff] %vm279_vm2, %v7127_v1  ;;  %v6472_v41 = vld [vmem:[%s7535_s2 + $0xe8] sm:$0xff]   ;;  %p5183_p2 = scmp.ne.s32.totalorder %s6831_s22, 2 }
 0x4d4   : > { %v6471_v40 = vld [vmem:[%s7535_s2 + $0xc0] sm:$0xff]   ;;  %6018 = vmatprep.mubr.msk.bf16.mxu0 %vm6668_vm1, %v6667_v0  ;;  %6030 = vmatprep.mubr.msk.bf16.mxu1 %vm6668_vm1, %v6667_v0  ;;  %v6473_v62 = vld [vmem:[%s7535_s2 + $0xc8] sm:$0xff]   ;;  %v6474_v1 = vld [vmem:[%s7535_s2 + $0xf0] sm:$0xff]   ;;  %v6673_v21 = vmov (!%p5183_p2), 0.0   ;;  %vm6674_vm5 = vmmov (!%p5183_p2), 0  }
 0x4d5   : > { %6011 = vmatpush3.bf16.msra.mxu0 %v6470_v39  ;;  %6023 = vmatpush3.bf16.msra.mxu1 %v6471_v40  ;;  %v6475_v43 = vld [vmem:[%s7535_s2 + $0xd0] sm:$0xff]   ;;  %v6476_v45 = vld [vmem:[%s7535_s2 + $0xf8] sm:$0xff]   ;;  %v6478_v54 = vld [vmem:[%s7535_s2 + $0x100] sm:$0xff]  }
 0x4d6   : > { %6012 = vmatprep.subr.bf16.mxu0 %v6667_v0  ;;  %6024 = vmatprep.subr.bf16.mxu1 %v6667_v0  ;;  %v6477_v48 = vld [vmem:[%s7535_s2 + $0xd8] sm:$0xff]   ;;  %v6479_v55 = vld [vmem:[%s7535_s2 + $0x108] sm:$0xff]   ;;  %v6480_v56 = vld [vmem:[%s7535_s2 + $0x110] sm:$0xff]  }
 0x4d7   : > { %v6481_v57 = vld [vmem:[%s7535_s2 + $0x118] sm:$0xff]   ;;  %v5182_v46 = vld [vmem:[%s7536_s3 + $0x2] ss:$0 sm:$0xff]  ;;  %v6486_v42 = vld [vmem:[#allocation5 + $0x90] sm:$0xff] (!%p5183_p2)  }
 0x4d8   : > { %v6482_v20 = vld [vmem:[#allocation5 + $0x80] sm:$0xff] (!%p5183_p2)   ;;  %v6484_v23 = vld [vmem:[#allocation5 + $0x88] sm:$0xff] (!%p5183_p2)   ;;  %v6487_v44 = vld [vmem:[#allocation5 + $0x10] sm:$0xff] (!%p5183_p2)  }
 0x4d9   : > { %6013 = vmatpush3.bf16.msra.mxu0 %v6472_v41  ;;  %6025 = vmatpush3.bf16.msra.mxu1 %v6473_v62  ;;  %v6483_v22 = vld [vmem:[#allocation5] sm:$0xff] (!%p5183_p2)   ;;  %v6485_v24 = vld [vmem:[#allocation5 + $0x8] sm:$0xff] (!%p5183_p2)   ;;  %v6488_v26 = vld [vmem:[#allocation5 + $0x98] sm:$0xff] (!%p5183_p2)  }
 0x4da   : > { %6014 = vmatprep.subr.bf16.mxu0 %v6667_v0  ;;  %6026 = vmatprep.subr.bf16.mxu1 %v6667_v0  ;;  %v3301_v47 = vld [vmem:[#allocation2 + $0x1] sm:$0xff]  ;;  %v3302_v49 = vld [vmem:[#allocation2 + $0x9] sm:$0xff]  ;;  %v6490_v3 = vld [vmem:[#allocation5 + $0xa0] sm:$0xff] (!%p5183_p2)  }
 0x4db   : > { %v3298_v50 = vld [vmem:[#allocation2] sm:$0xff]  ;;  %v3299_v51 = vld [vmem:[#allocation2 + $0x8] sm:$0xff]  ;;  %v3303_v52 = vpack.c.bf16 %v3302_v49, %v3301_v47  ;;  %v6489_v27 = vld [vmem:[#allocation5 + $0x18] sm:$0xff] (!%p5183_p2)  }
 0x4dc   : > { %v3300_v53 = vpack.c.bf16 %v3299_v51, %v3298_v50  ;;  %v3304_v58 = vld [vmem:[#allocation2 + $0x2] sm:$0xff]  ;;  %v3305_v59 = vld [vmem:[#allocation2 + $0xa] sm:$0xff]  ;;  %v6491_v29 = vld [vmem:[#allocation5 + $0x20] sm:$0xff] (!%p5183_p2)  }
 0x4dd   : > { %6015 = vmatpush3.bf16.msra.mxu0 %v6474_v1  ;;  %6027 = vmatpush3.bf16.msra.mxu1 %v6475_v43  ;;  %v3306_v60 = vpack.c.bf16 %v3305_v59, %v3304_v58  ;;  %v6492_v30 = vld [vmem:[#allocation5 + $0xa8] sm:$0xff] (!%p5183_p2)   ;;  %v6494_v32 = vld [vmem:[#allocation5 + $0xb0] sm:$0xff] (!%p5183_p2)   ;;  %v6496_v35 = vld [vmem:[#allocation5 + $0xb8] sm:$0xff] (!%p5183_p2)  }
 0x4de   : > { %6016 = vmatprep.subr.bf16.mxu0 %v6667_v0  ;;  %6028 = vmatprep.subr.bf16.mxu1 %v6667_v0  ;;  %v6493_v31 = vld [vmem:[#allocation5 + $0x28] sm:$0xff] (!%p5183_p2)   ;;  %v6495_v33 = vld [vmem:[#allocation5 + $0x30] sm:$0xff] (!%p5183_p2)   ;;  %v6497_v36 = vld [vmem:[#allocation5 + $0x38] sm:$0xff] (!%p5183_p2)  }
 0x4df   : > { %v6498_v38 = vld [vmem:[#allocation5 + $0xc0] sm:$0xff] (!%p5183_p2)   ;;  %v6500_v40 = vld [vmem:[#allocation5 + $0xc8] sm:$0xff] (!%p5183_p2)   ;;  %v6502_v62 = vld [vmem:[#allocation5 + $0xd0] sm:$0xff] (!%p5183_p2)  }
 0x4e0   : > { %v6499_v39 = vld [vmem:[#allocation5 + $0x40] sm:$0xff] (!%p5183_p2)   ;;  %v6501_v41 = vld [vmem:[#allocation5 + $0x48] sm:$0xff] (!%p5183_p2)   ;;  %v6503_v1 = vld [vmem:[#allocation5 + $0x50] sm:$0xff] (!%p5183_p2)  }
 0x4e1   : > { %6017 = vmatpush3.bf16.msra.mxu0 %v6476_v45  ;;  %6029 = vmatpush3.bf16.msra.mxu1 %v6477_v48  ;;  %v6504_v43 = vld [vmem:[#allocation5 + $0xd8] sm:$0xff] (!%p5183_p2)   ;;  %v6506_v49 = vld [vmem:[#allocation5 + $0xe0] sm:$0xff] (!%p5183_p2)   ;;  %v6508_v51 = vld [vmem:[#allocation5 + $0xe8] sm:$0xff] (!%p5183_p2)  }
 0x4e2   : > { %6034 = vmatprep.subr.bf16.mxu0 %v6667_v0  ;;  %6058 = vmatprep.subr.bf16.mxu1 (!%p5183_p2), %v6673_v21  ;;  %v6505_v45 = vld [vmem:[#allocation5 + $0x58] sm:$0xff] (!%p5183_p2)   ;;  %v6507_v50 = vld [vmem:[#allocation5 + $0x60] sm:$0xff] (!%p5183_p2)  }
 0x4e3   : > { %v6514_v59 = vld [vmem:[#allocation5 + $0x100] sm:$0xff] (!%p5183_p2)  }
 0x4e4   : > { %6019 = vmatmul.mubr.msk.bf16.vlgmr.msra.gmra.mrb[0].mxu0 %vm279_vm2, %v3303_v52  ;;  %6031 = vmatmul.mubr.msk.bf16.vlgmr.msra.gmra.mrb[0].mxu1 %vm279_vm2, %v3300_v53  ;;  %v6509_v52 = vld [vmem:[#allocation5 + $0x68] sm:$0xff] (!%p5183_p2)   ;;  %v6510_v53 = vld [vmem:[#allocation5 + $0xf0] sm:$0xff] (!%p5183_p2)  }
 0x4e5   : > { %6035 = vmatpush3.bf16.msra.mxu0 %v6478_v54  ;;  %6042 = vmatprep.mubr.msk.bf16.mxu0 %vm6668_vm1, %v6667_v0  ;;  %v6511_v54 = vld [vmem:[#allocation5 + $0x70] sm:$0xff] (!%p5183_p2)  }
 0x4e6   : > { %6036 = vmatprep.subr.bf16.mxu0 %v6667_v0  ;;  %6059 = vmatpush3.bf16.msra.mxu1 (!%p5183_p2), %v6483_v22  ;;  %v6534_v22 = vld [vmem:[#allocation5 + $0x190] sm:$0xff] (!%p5183_p2)  }
 0x4e7   : > { %6060 = vmatprep.subr.bf16.mxu1 (!%p5183_p2), %v6673_v21  ;;  %6066 = vmatprep.mubr.msk.bf16.mxu1 (!%p5183_p2), %vm6674_vm5, %v6673_v21 }
 0x4e9   : > { %6037 = vmatpush3.bf16.msra.mxu0 %v6479_v55  ;;  %v6512_v55 = vld [vmem:[#allocation5 + $0xf8] sm:$0xff] (!%p5183_p2)  }
 0x4ea   : > { %6038 = vmatprep.subr.bf16.mxu0 %v6667_v0  ;;  %6061 = vmatpush3.bf16.msra.mxu1 (!%p5183_p2), %v6485_v24  ;;  %v6536_v24 = vld [vmem:[#allocation5 + $0x198] sm:$0xff] (!%p5183_p2)  }
 0x4eb   : > { %6062 = vmatprep.subr.bf16.mxu1 (!%p5183_p2), %v6673_v21 }
 0x4ed   : > { %6039 = vmatpush3.bf16.msra.mxu0 %v6480_v56  ;;  %v6513_v56 = vld [vmem:[#allocation5 + $0x78] sm:$0xff] (!%p5183_p2)  }
 0x4ee   : > { %6040 = vmatprep.subr.bf16.mxu0 %v6667_v0  ;;  %6063 = vmatpush3.bf16.msra.mxu1 (!%p5183_p2), %v6487_v44 }
 0x4ef   : > { %6064 = vmatprep.subr.bf16.mxu1 (!%p5183_p2), %v6673_v21 }
 0x4f1   : > { %6041 = vmatpush3.bf16.msra.mxu0 %v6481_v57 }
 0x4f2   : > { %6046 = vmatprep.subr.bf16.mxu0 (!%p5183_p2), %v6673_v21  ;;  %6065 = vmatpush3.bf16.msra.mxu1 (!%p5183_p2), %v6489_v27  ;;  %v6539_v27 = vld [vmem:[#allocation5 + $0x1e0] sm:$0xff] (!%p5183_p2)  }
 0x4f3   : > { %6082 = vmatprep.subr.bf16.mxu1 (!%p5183_p2), %v6673_v21 }
 0x4f4   : > { %6043 = vmatmul.mubr.msk.bf16.vlgmr.msra.gmra.mrb[4].mxu0 %vm279_vm2, %v3306_v60  ;;  %v6515_v60 = vld [vmem:[#allocation5 + $0x120] sm:$0xff] (!%p5183_p2)  }
 0x4f5   : > { %6047 = vmatpush3.bf16.msra.mxu0 (!%p5183_p2), %v6482_v20  ;;  %6054 = vmatprep.mubr.msk.bf16.mxu0 (!%p5183_p2), %vm6674_vm5, %v6673_v21  ;;  %v6533_v20 = vld [vmem:[#allocation5 + $0x1a8] sm:$0xff] (!%p5183_p2)  }
 0x4f6   : > { %6048 = vmatprep.subr.bf16.mxu0 (!%p5183_p2), %v6673_v21 }
 0x4f9   : > { %6049 = vmatpush3.bf16.msra.mxu0 (!%p5183_p2), %v6484_v23  ;;  %v6535_v23 = vld [vmem:[#allocation5 + $0x1b0] sm:$0xff] (!%p5183_p2)  }
 0x4fa   : > { %6050 = vmatprep.subr.bf16.mxu0 (!%p5183_p2), %v6673_v21 }
 0x4fd   : > { %6051 = vmatpush3.bf16.msra.mxu0 (!%p5183_p2), %v6486_v42  ;;  %v6537_v42 = vld [vmem:[#allocation5 + $0x1b8] sm:$0xff] (!%p5183_p2)  }
 0x4fe   : > { %6052 = vmatprep.subr.bf16.mxu0 (!%p5183_p2), %v6673_v21 }
 0x501   : > { %6053 = vmatpush3.bf16.msra.mxu0 (!%p5183_p2), %v6488_v26  ;;  %v6538_v26 = vld [vmem:[#allocation5 + $0x1c0] sm:$0xff] (!%p5183_p2)  }
 0x502   : > { %6070 = vmatprep.subr.bf16.mxu0 (!%p5183_p2), %v6673_v21 }
 0x5b7   : > { %v3386_v61 = vpop.f32.mrb[0].mxu0  ;;  %v3454_v63 = vpop.f32.mrb[0].mxu1 }
 0x5b8   : > { %v6020_v2 = vpop.f32.mrb[1].mxu0  ;;  %v3455_v4 = vadd.f32 %v3454_v63, %v3386_v61  ;;  %v6032_v5 = vpop.f32.mrb[1].mxu1  ;;  %v6516_v61 = vld [vmem:[#allocation5 + $0x108] sm:$0xff] (!%p5183_p2)  }
 0x5b9   : > { %v3389_v6 = vpop.f32.mrb[2].mxu0  ;;  %v3457_v7 = vpop.f32.mrb[2].mxu1  ;;  %v6517_v63 = vld [vmem:[#allocation5 + $0x128] sm:$0xff] (!%p5183_p2)   ;;  %v6518_v2 = vld [vmem:[#allocation5 + $0x110] sm:$0xff] (!%p5183_p2)   ;;  %v6520_v5 = vld [vmem:[#allocation5 + $0x118] sm:$0xff] (!%p5183_p2)  }
 0x5ba   : > { %v6021_v8 = vpop.f32.mrb[3].mxu0  ;;  %v3458_v9 = vadd.f32 %v3457_v7, %v3389_v6  ;;  %v6033_v10 = vpop.f32.mrb[3].mxu1  ;;  %v6521_v7 = vld [vmem:[#allocation5 + $0x138] sm:$0xff] (!%p5183_p2)  }
 0x5bb   : > { %v6523_v10 = vld [vmem:[#allocation5 + $0x160] sm:$0xff] (!%p5183_p2)  }
 0x5c7   : > { %v3531_v11 = vpop.f32.mrb[4].mxu0 }
 0x5c8   : > { %v3538_v0 = vadd.f32 %v3531_v11, %v3455_v4  ;;  %v6044_v12 = vpop.f32.mrb[5].mxu0  ;;  %3555 = sbr.rel (%p5183_p2) target bundleno = 1823 (0x71f), region = 56  ;;  %v6519_v4 = vld [vmem:[#allocation5 + $0x130] sm:$0xff] (!%p5183_p2)   ;;  %v6524_v11 = vld [vmem:[#allocation5 + $0x148] sm:$0xff] (!%p5183_p2)  }
 0x5c9   : > { %v3534_v13 = vpop.f32.mrb[6].mxu0  ;;  %v6527_v12 = vld [vmem:[#allocation5 + $0x170] sm:$0xff] (!%p5183_p2)  }
 0x5ca   : > { %v3548_v14 = vadd.f32 %v5182_v46, %v3538_v0  ;;  %v3539_v15 = vadd.f32 %v3534_v13, %v3458_v9  ;;  %v6045_v16 = vpop.f32.mrb[7].mxu0  ;;  %v6522_v9 = vld [vmem:[#allocation5 + $0x140] sm:$0xff] (!%p5183_p2)   ;;  %v6526_v0 = vld [vmem:[#allocation5 + $0x150] sm:$0xff] (!%p5183_p2)   ;;  %v6528_v13 = vld [vmem:[#allocation5 + $0x158] sm:$0xff] (!%p5183_p2)  }
 0x5cc   : > { %v3550_v17 = vmax.f32 %v3548_v14, 0.0  ;;  %v7338_v18 = vadd.f32 %v5182_v46, %v3539_v15  ;;  %v6525_v46 = vld [vmem:[#allocation5 + $0x168] sm:$0xff] (!%p5183_p2)   ;;  %v6529_v14 = vld [vmem:[#allocation5 + $0x178] sm:$0xff] (!%p5183_p2)  }
 0x5ce   : > { %v3551_v19 = vmax.f32 %v7338_v18, 0.0  ;;  %v7352_v25 = vpack.c.bf16 (!%p5183_p2), %v3550_v17, %v3550_v17  ;;  %v6530_v17 = vld [vmem:[#allocation5 + $0x180] sm:$0xff] (!%p5183_p2)  }
 0x5cf   : > { %v6531_v18 = vld [vmem:[#allocation5 + $0x1a0] sm:$0xff]  }
 0x5d0   : > { %v3602_v28 = vrot.slane %v7352_v25, 2  ;;  %6067 = vmatmul.mubr.msk.bf16.vlgmr.msra.gmra.mrb[0].mxu1 %vm279_vm2, %v7352_v25  ;;  %v7371_v34 = vshrl.u32 %v7352_v25, 16  ;;  %v3892_v47 = vrot.slane %v7352_v25, 3  ;;  %v3960_v48 = vrot.slane %v7352_v25, 1 }
 0x5d1   : > { %6083 = vmatpush3.bf16.msra.mxu1 %v6491_v29  ;;  %6090 = vmatprep.mubr.msk.bf16.mxu1 %vm6674_vm5, %v6673_v21  ;;  %v7424_v6 = vpack.c.bf16 %v3551_v19, %v3551_v19  ;;  %v6532_v19 = vld [vmem:[#allocation5 + $0x188] sm:$0xff]   ;;  %v6542_v29 = vld [vmem:[#allocation5 + $0x1d0] sm:$0xff]  }
 0x5d2   : > { %6055 = vmatmul.mubr.msk.bf16.vlgmr.msra.gmra.mrb[0].mxu0 %vm279_vm2, %v3602_v28  ;;  %6084 = vmatprep.subr.bf16.mxu1 %v6673_v21  ;;  %v3748_v37 = vrot.slane %v7371_v34, 2  ;;  %v4037_v57 = vrot.slane %v7371_v34, 3  ;;  %v4105_v58 = vrot.slane %v7371_v34, 1  ;;  %v6540_v28 = vld [vmem:[#allocation5 + $0x1c8] sm:$0xff]  }
 0x5d3   : > { %6071 = vmatpush3.bf16.msra.mxu0 %v6490_v3  ;;  %6078 = vmatprep.mubr.msk.bf16.mxu0 %vm6674_vm5, %v6673_v21  ;;  %v7429_v8 = vshrl.u32 %v7424_v6, 16  ;;  %v4340_v15 = vrot.slane %v7424_v6, 1  ;;  %v4496_v44 = vrot.slane %v7424_v6, 2  ;;  %v6541_v3 = vld [vmem:[#allocation5 + $0x1e8] sm:$0xff]  }
 0x5d4   : > { %6072 = vmatprep.subr.bf16.mxu0 %v6673_v21 }
 0x5d5   : > { %6085 = vmatpush3.bf16.msra.mxu1 %v6493_v31  ;;  %v4418_v16 = vrot.slane %v7429_v8, 1  ;;  %v4574_v25 = vrot.slane %v7429_v8, 2  ;;  %v6544_v31 = vld [vmem:[#allocation5 + $0x1d8] sm:$0xff]  }
 0x5d6   : > { %6086 = vmatprep.subr.bf16.mxu1 %v6673_v21 }
 0x5d7   : > { %6073 = vmatpush3.bf16.msra.mxu0 %v6492_v30  ;;  %v6543_v30 = vld [vmem:[#allocation5 + $0x1f0] sm:$0xff]  }
 0x5d8   : > { %6074 = vmatprep.subr.bf16.mxu0 %v6673_v21 }
 0x5d9   : > { %6087 = vmatpush3.bf16.msra.mxu1 %v6495_v33  ;;  %v4652_v33 = vrot.slane %v7424_v6, 3 }
 0x5da   : > { %6088 = vmatprep.subr.bf16.mxu1 %v6673_v21 }
 0x5db   : > { %6075 = vmatpush3.bf16.msra.mxu0 %v6494_v32  ;;  %v6545_v32 = vld [vmem:[#allocation5 + $0x1f8] sm:$0xff]  }
 0x5dc   : > { %6076 = vmatprep.subr.bf16.mxu0 %v6673_v21 }
 0x5dd   : > { %6089 = vmatpush3.bf16.msra.mxu1 %v6497_v36 }
 0x5de   : > { %6106 = vmatprep.subr.bf16.mxu1 %v6673_v21 }
 0x5df   : > { %6077 = vmatpush3.bf16.msra.mxu0 %v6496_v35 }
 0x5e0   : > { %6094 = vmatprep.subr.bf16.mxu0 %v6673_v21  ;;  %6091 = vmatmul.mubr.msk.bf16.vlgmr.msra.gmra.mrb[4].mxu1 %vm279_vm2, %v7371_v34  ;;  %v4730_v34 = vrot.slane %v7429_v8, 3 }
 0x5e1   : > { %6107 = vmatpush3.bf16.msra.mxu1 %v6499_v39  ;;  %6114 = vmatprep.mubr.msk.bf16.mxu1 %vm6674_vm5, %v6673_v21 }
 0x5e2   : > { %6079 = vmatmul.mubr.msk.bf16.vlgmr.msra.gmra.mrb[4].mxu0 %vm279_vm2, %v3748_v37  ;;  %6108 = vmatprep.subr.bf16.mxu1 %v6673_v21 }
 0x5e3   : > { %6095 = vmatpush3.bf16.msra.mxu0 %v6498_v38  ;;  %6102 = vmatprep.mubr.msk.bf16.mxu0 %vm6674_vm5, %v6673_v21 }
 0x5e4   : > { %6096 = vmatprep.subr.bf16.mxu0 %v6673_v21 }
 0x5e5   : > { %6109 = vmatpush3.bf16.msra.mxu1 %v6501_v41 }
 0x5e6   : > { %6110 = vmatprep.subr.bf16.mxu1 %v6673_v21 }
 0x5e7   : > { %6097 = vmatpush3.bf16.msra.mxu0 %v6500_v40 }
 0x5e8   : > { %6098 = vmatprep.subr.bf16.mxu0 %v6673_v21 }
 0x5e9   : > { %6111 = vmatpush3.bf16.msra.mxu1 %v6503_v1 }
 0x5ea   : > { %6112 = vmatprep.subr.bf16.mxu1 %v6673_v21 }
 0x5eb   : > { %6099 = vmatpush3.bf16.msra.mxu0 %v6502_v62 }
 0x5ec   : > { %6100 = vmatprep.subr.bf16.mxu0 %v6673_v21 }
 0x5ed   : > { %6113 = vmatpush3.bf16.msra.mxu1 %v6505_v45 }
 0x5ee   : > { %6130 = vmatprep.subr.bf16.mxu1 %v6673_v21 }
 0x5ef   : > { %6101 = vmatpush3.bf16.msra.mxu0 %v6504_v43 }
 0x5f0   : > { %6118 = vmatprep.subr.bf16.mxu0 %v6673_v21  ;;  %6115 = vmatmul.mubr.msk.bf16.vlgmr.msra.gmra.mrb[8].mxu1 %vm279_vm2, %v3960_v48 }
 0x5f1   : > { %6131 = vmatpush3.bf16.msra.mxu1 %v6507_v50  ;;  %6138 = vmatprep.mubr.msk.bf16.mxu1 %vm6674_vm5, %v6673_v21 }
 0x5f2   : > { %6103 = vmatmul.mubr.msk.bf16.vlgmr.msra.gmra.mrb[8].mxu0 %vm279_vm2, %v3892_v47  ;;  %6132 = vmatprep.subr.bf16.mxu1 %v6673_v21 }
 0x5f3   : > { %6119 = vmatpush3.bf16.msra.mxu0 %v6506_v49  ;;  %6126 = vmatprep.mubr.msk.bf16.mxu0 %vm6674_vm5, %v6673_v21 }
 0x5f4   : > { %6120 = vmatprep.subr.bf16.mxu0 %v6673_v21 }
 0x5f5   : > { %6133 = vmatpush3.bf16.msra.mxu1 %v6509_v52 }
 0x5f6   : > { %6134 = vmatprep.subr.bf16.mxu1 %v6673_v21 }
 0x5f7   : > { %6121 = vmatpush3.bf16.msra.mxu0 %v6508_v51 }
 0x5f8   : > { %6122 = vmatprep.subr.bf16.mxu0 %v6673_v21 }
 0x5f9   : > { %6135 = vmatpush3.bf16.msra.mxu1 %v6511_v54 }
 0x5fa   : > { %6136 = vmatprep.subr.bf16.mxu1 %v6673_v21 }
 0x5fb   : > { %6123 = vmatpush3.bf16.msra.mxu0 %v6510_v53 }
 0x5fc   : > { %6124 = vmatprep.subr.bf16.mxu0 %v6673_v21 }
 0x5fd   : > { %6137 = vmatpush3.bf16.msra.mxu1 %v6513_v56 }
 0x5fe   : > { %6154 = vmatprep.subr.bf16.mxu1 %v6673_v21 }
 0x5ff   : > { %6125 = vmatpush3.bf16.msra.mxu0 %v6512_v55 }
 0x600   : > { %6142 = vmatprep.subr.bf16.mxu0 %v6673_v21  ;;  %6139 = vmatmul.mubr.msk.bf16.vlgmr.msra.gmra.mrb[12].mxu1 %vm279_vm2, %v4105_v58 }
 0x601   : > { %6155 = vmatpush3.bf16.msra.mxu1 %v6515_v60  ;;  %6162 = vmatprep.mubr.msk.bf16.mxu1 %vm6674_vm5, %v6673_v21 }
 0x602   : > { %6127 = vmatmul.mubr.msk.bf16.vlgmr.msra.gmra.mrb[12].mxu0 %vm279_vm2, %v4037_v57  ;;  %6156 = vmatprep.subr.bf16.mxu1 %v6673_v21 }
 0x603   : > { %6143 = vmatpush3.bf16.msra.mxu0 %v6514_v59  ;;  %6150 = vmatprep.mubr.msk.bf16.mxu0 %vm6674_vm5, %v6673_v21 }
 0x604   : > { %6144 = vmatprep.subr.bf16.mxu0 %v6673_v21 }
 0x605   : > { %6157 = vmatpush3.bf16.msra.mxu1 %v6517_v63 }
 0x606   : > { %6158 = vmatprep.subr.bf16.mxu1 %v6673_v21 }
 0x607   : > { %6145 = vmatpush3.bf16.msra.mxu0 %v6516_v61 }
 0x608   : > { %6146 = vmatprep.subr.bf16.mxu0 %v6673_v21 }
 0x609   : > { %6159 = vmatpush3.bf16.msra.mxu1 %v6519_v4 }
 0x60a   : > { %6160 = vmatprep.subr.bf16.mxu1 %v6673_v21 }
 0x60b   : > { %6147 = vmatpush3.bf16.msra.mxu0 %v6518_v2 }
 0x60c   : > { %6148 = vmatprep.subr.bf16.mxu0 %v6673_v21 }
 0x60d   : > { %6161 = vmatpush3.bf16.msra.mxu1 %v6521_v7 }
 0x60e   : > { %6178 = vmatprep.subr.bf16.mxu1 %v6673_v21 }
 0x60f   : > { %6149 = vmatpush3.bf16.msra.mxu0 %v6520_v5 }
 0x610   : > { %6166 = vmatprep.subr.bf16.mxu0 %v6673_v21  ;;  %6163 = vmatmul.mubr.msk.bf16.vlgmr.msra.gmra.mrb[16].mxu1 %vm279_vm2, %v7429_v8 }
 0x611   : > { %6179 = vmatpush3.bf16.msra.mxu1 %v6523_v10  ;;  %6186 = vmatprep.mubr.msk.bf16.mxu1 %vm6674_vm5, %v6673_v21 }
 0x612   : > { %6151 = vmatmul.mubr.msk.bf16.vlgmr.msra.gmra.mrb[16].mxu0 %vm279_vm2, %v7424_v6  ;;  %6180 = vmatprep.subr.bf16.mxu1 %v6673_v21 }
 0x613   : > { %6167 = vmatpush3.bf16.msra.mxu0 %v6522_v9  ;;  %6174 = vmatprep.mubr.msk.bf16.mxu0 %vm6674_vm5, %v6673_v21 }
 0x614   : > { %6168 = vmatprep.subr.bf16.mxu0 %v6673_v21 }
 0x615   : > { %6181 = vmatpush3.bf16.msra.mxu1 %v6525_v46 }
 0x616   : > { %6182 = vmatprep.subr.bf16.mxu1 %v6673_v21 }
 0x617   : > { %6169 = vmatpush3.bf16.msra.mxu0 %v6524_v11 }
 0x618   : > { %6170 = vmatprep.subr.bf16.mxu0 %v6673_v21 }
 0x619   : > { %6183 = vmatpush3.bf16.msra.mxu1 %v6527_v12 }
 0x61a   : > { %6184 = vmatprep.subr.bf16.mxu1 %v6673_v21 }
 0x61b   : > { %6171 = vmatpush3.bf16.msra.mxu0 %v6526_v0 }
 0x61c   : > { %6172 = vmatprep.subr.bf16.mxu0 %v6673_v21 }
 0x61d   : > { %6185 = vmatpush3.bf16.msra.mxu1 %v6529_v14 }
 0x61e   : > { %6202 = vmatprep.subr.bf16.mxu1 %v6673_v21 }
 0x61f   : > { %6173 = vmatpush3.bf16.msra.mxu0 %v6528_v13 }
 0x620   : > { %6190 = vmatprep.subr.bf16.mxu0 %v6673_v21  ;;  %6187 = vmatmul.mubr.msk.bf16.vlgmr.msra.gmra.mrb[20].mxu1 %vm279_vm2, %v4418_v16 }
 0x621   : > { %6203 = vmatpush3.bf16.msra.mxu1 %v6531_v18  ;;  %6210 = vmatprep.mubr.msk.bf16.mxu1 %vm6674_vm5, %v6673_v21 }
 0x622   : > { %6175 = vmatmul.mubr.msk.bf16.vlgmr.msra.gmra.mrb[20].mxu0 %vm279_vm2, %v4340_v15  ;;  %6204 = vmatprep.subr.bf16.mxu1 %v6673_v21 }
 0x623   : > { %6191 = vmatpush3.bf16.msra.mxu0 %v6530_v17  ;;  %6198 = vmatprep.mubr.msk.bf16.mxu0 %vm6674_vm5, %v6673_v21 }
 0x624   : > { %6192 = vmatprep.subr.bf16.mxu0 %v6673_v21 }
 0x625   : > { %6205 = vmatpush3.bf16.msra.mxu1 %v6533_v20 }
 0x626   : > { %6206 = vmatprep.subr.bf16.mxu1 %v6673_v21 }
 0x627   : > { %6193 = vmatpush3.bf16.msra.mxu0 %v6532_v19 }
 0x628   : > { %6194 = vmatprep.subr.bf16.mxu0 %v6673_v21 }
 0x629   : > { %6207 = vmatpush3.bf16.msra.mxu1 %v6535_v23 }
 0x62a   : > { %6208 = vmatprep.subr.bf16.mxu1 %v6673_v21 }
 0x62b   : > { %6195 = vmatpush3.bf16.msra.mxu0 %v6534_v22 }
 0x62c   : > { %6196 = vmatprep.subr.bf16.mxu0 %v6673_v21 }
 0x62d   : > { %6209 = vmatpush3.bf16.msra.mxu1 %v6537_v42 }
 0x62e   : > { %6226 = vmatprep.subr.bf16.mxu1 %v6673_v21 }
 0x62f   : > { %6197 = vmatpush3.bf16.msra.mxu0 %v6536_v24 }
 0x630   : > { %6214 = vmatprep.subr.bf16.mxu0 %v6673_v21  ;;  %6211 = vmatmul.mubr.msk.bf16.vlgmr.msra.gmra.mrb[24].mxu1 %vm279_vm2, %v4574_v25 }
 0x631   : > { %6227 = vmatpush3.bf16.msra.mxu1 %v6539_v27  ;;  %6234 = vmatprep.mubr.msk.bf16.mxu1 %vm6674_vm5, %v6673_v21 }
 0x632   : > { %6199 = vmatmul.mubr.msk.bf16.vlgmr.msra.gmra.mrb[24].mxu0 %vm279_vm2, %v4496_v44  ;;  %6228 = vmatprep.subr.bf16.mxu1 %v6673_v21 }
 0x633   : > { %6215 = vmatpush3.bf16.msra.mxu0 %v6538_v26  ;;  %6222 = vmatprep.mubr.msk.bf16.mxu0 %vm6674_vm5, %v6673_v21 }
 0x634   : > { %6216 = vmatprep.subr.bf16.mxu0 %v6673_v21 }
 0x635   : > { %6229 = vmatpush3.bf16.msra.mxu1 %v6541_v3 }
 0x636   : > { %6230 = vmatprep.subr.bf16.mxu1 %v6673_v21 }
 0x637   : > { %6217 = vmatpush3.bf16.msra.mxu0 %v6540_v28 }
 0x638   : > { %6218 = vmatprep.subr.bf16.mxu0 %v6673_v21 }
 0x639   : > { %6231 = vmatpush3.bf16.msra.mxu1 %v6543_v30 }
 0x63a   : > { %6232 = vmatprep.subr.bf16.mxu1 %v6673_v21 }
 0x63b   : > { %6219 = vmatpush3.bf16.msra.mxu0 %v6542_v29 }
 0x63c   : > { %6220 = vmatprep.subr.bf16.mxu0 %v6673_v21 }
 0x63d   : > { %6233 = vmatpush3.bf16.msra.mxu1 %v6545_v32 }
 0x63f   : > { %6221 = vmatpush3.bf16.msra.mxu0 %v6544_v31 }
 0x640   : > { %6235 = vmatmul.mubr.msk.bf16.vlgmr.msra.gmra.mrb[28].mxu1 %vm279_vm2, %v4730_v34 }
 0x642   : > { %6223 = vmatmul.mubr.msk.bf16.vlgmr.msra.gmra.mrb[28].mxu0 %vm279_vm2, %v4652_v33 }
 0x6a3   : > { %v3731_v36 = vpop.f32.mrb[0].mxu1 }
 0x6a4   : > { %v6068_v39 = vpop.f32.mrb[1].mxu1 }
 0x6a5   : > { %v3664_v35 = vpop.f32.mrb[0].mxu0  ;;  %v3734_v41 = vpop.f32.mrb[2].mxu1 }
 0x6a6   : > { %v6056_v37 = vpop.f32.mrb[1].mxu0  ;;  %v3732_v38 = vadd.f32 %v3731_v36, %v3664_v35  ;;  %v6069_v1 = vpop.f32.mrb[3].mxu1 }
 0x6a7   : > { %v3667_v40 = vpop.f32.mrb[2].mxu0 }
 0x6a8   : > { %v6057_v62 = vpop.f32.mrb[3].mxu0 }
 0x6b3   : > { %v3877_v43 = vpop.f32.mrb[4].mxu1 }
 0x6b4   : > { %v6092_v48 = vpop.f32.mrb[5].mxu1 }
 0x6b5   : > { %v3810_v21 = vpop.f32.mrb[4].mxu0  ;;  %v3880_v50 = vpop.f32.mrb[6].mxu1  ;;  %v4802_v48 = vld [vmem:[%s6860_s15] sm:$0x1] }
 0x6b6   : > { %v6080_v45 = vpop.f32.mrb[5].mxu0  ;;  %v3878_v47 = vadd.f32 %v3877_v43, %v3810_v21  ;;  %v6093_v52 = vpop.f32.mrb[7].mxu1 }
 0x6b7   : > { %v3813_v49 = vpop.f32.mrb[6].mxu0 }
 0x6b8   : > { %v6081_v51 = vpop.f32.mrb[7].mxu0 }
 0x6c3   : > { %v4022_v54 = vpop.f32.mrb[8].mxu1 }
 0x6c4   : > { %v6116_v57 = vpop.f32.mrb[9].mxu1 }
 0x6c5   : > { %v3954_v53 = vpop.f32.mrb[8].mxu0  ;;  %v4025_v59 = vpop.f32.mrb[10].mxu1 }
 0x6c6   : > { %v6104_v55 = vpop.f32.mrb[9].mxu0  ;;  %v4023_v56 = vadd.f32 %v4022_v54, %v3954_v53  ;;  %v6117_v61 = vpop.f32.mrb[11].mxu1 }
 0x6c7   : > { %v3957_v58 = vpop.f32.mrb[10].mxu0 }
 0x6c8   : > { %v6105_v60 = vpop.f32.mrb[11].mxu0 }
 0x6d3   : > { %v4167_v2 = vpop.f32.mrb[12].mxu1 }
 0x6d4   : > { %v6140_v6 = vpop.f32.mrb[13].mxu1 }
 0x6d5   : > { %v4099_v63 = vpop.f32.mrb[12].mxu0  ;;  %v4170_v8 = vpop.f32.mrb[14].mxu1 }
 0x6d6   : > { %v6128_v4 = vpop.f32.mrb[13].mxu0  ;;  %v4168_v5 = vadd.f32 %v4167_v2, %v4099_v63  ;;  %v6141_v10 = vpop.f32.mrb[15].mxu1 }
 0x6d7   : > { %v4102_v7 = vpop.f32.mrb[14].mxu0 }
 0x6d8   : > { %v6129_v9 = vpop.f32.mrb[15].mxu0 }
 0x6e3   : > { %v4323_v0 = vpop.f32.mrb[16].mxu1 }
 0x6e4   : > { %v4329_v13 = vadd.f32 %v4323_v0, %v3878_v47  ;;  %v6164_v14 = vpop.f32.mrb[17].mxu1 }
 0x6e5   : > { %v4244_v11 = vpop.f32.mrb[16].mxu0  ;;  %v4326_v16 = vpop.f32.mrb[18].mxu1 }
 0x6e6   : > { %v4250_v46 = vadd.f32 %v4244_v11, %v3732_v38  ;;  %v6152_v12 = vpop.f32.mrb[17].mxu0  ;;  %v6165_v18 = vpop.f32.mrb[19].mxu1 }
 0x6e7   : > { %v4247_v15 = vpop.f32.mrb[18].mxu0 }
 0x6e8   : > { %v6153_v17 = vpop.f32.mrb[19].mxu0 }
 0x6f3   : > { %v4480_v22 = vpop.f32.mrb[20].mxu1 }
 0x6f4   : > { %v4486_v24 = vadd.f32 %v4480_v22, %v4168_v5  ;;  %v6188_v42 = vpop.f32.mrb[21].mxu1 }
 0x6f5   : > { %v4402_v19 = vpop.f32.mrb[20].mxu0  ;;  %v4483_v25 = vpop.f32.mrb[22].mxu1 }
 0x6f6   : > { %v4408_v20 = vadd.f32 %v4402_v19, %v4023_v56  ;;  %v6176_v23 = vpop.f32.mrb[21].mxu0  ;;  %v6189_v27 = vpop.f32.mrb[23].mxu1 }
 0x6f7   : > { %v4405_v44 = vpop.f32.mrb[22].mxu0 }
 0x6f8   : > { %v6177_v26 = vpop.f32.mrb[23].mxu0 }
 0x703   : > { %v4636_v29 = vpop.f32.mrb[24].mxu1 }
 0x704   : > { %v4642_v31 = vadd.f32 %v4636_v29, %v4329_v13  ;;  %v6212_v32 = vpop.f32.mrb[25].mxu1 }
 0x705   : > { %v4558_v28 = vpop.f32.mrb[24].mxu0  ;;  %v4639_v34 = vpop.f32.mrb[26].mxu1 }
 0x706   : > { %v4564_v3 = vadd.f32 %v4558_v28, %v4250_v46  ;;  %v6200_v30 = vpop.f32.mrb[25].mxu0  ;;  %v6213_v37 = vpop.f32.mrb[27].mxu1 }
 0x707   : > { %v4561_v33 = vpop.f32.mrb[26].mxu0 }
 0x708   : > { %v6201_v35 = vpop.f32.mrb[27].mxu0  ;;  %v4799_v36 = vadd.f32 %v4642_v31, %v4564_v3 }
 0x713   : > { %v4792_v40 = vpop.f32.mrb[28].mxu1 }
 0x714   : > { %v4798_v62 = vadd.f32 %v4792_v40, %v4486_v24  ;;  %v6236_v1 = vpop.f32.mrb[29].mxu1 }
 0x715   : > { %v4714_v38 = vpop.f32.mrb[28].mxu0  ;;  %v4795_v45 = vpop.f32.mrb[30].mxu1 }
 0x716   : > { %v4720_v39 = vadd.f32 %v4714_v38, %v4408_v20  ;;  %v6224_v41 = vpop.f32.mrb[29].mxu0  ;;  %v6237_v49 = vpop.f32.mrb[31].mxu1 }
 0x717   : > { %v4717_v21 = vpop.f32.mrb[30].mxu0 }
 0x718   : > { %v4800_v43 = vadd.f32 %v4799_v36, %v4720_v39  ;;  %v6225_v47 = vpop.f32.mrb[31].mxu0 }
 0x71a   : > { %v4801_v50 = vadd.f32 %v4800_v43, %v4798_v62 }
 0x71c   : > { %v4803_v51 = vadd.f32 %v4802_v48, %v4801_v50 }
 0x71e   : > { %4804 = vst [vmem:[%s6914_s14] sm:$0x1] %v4803_v51 }
 0x71f PF: > { %s5264_s22 = sshll.u32 %s6743_s0, 4  ;;  %s4818_s16 = sshll.u32 %s6914_s14, 4  ;;  %s4819_s16 = int_to_ptr.vmem [resolvable:$true] %s4818_s16 }
 0x720   : > { %s7489_s30 = scalar_lea.hbm %s7539_s6, %s5264_s22  ;;  %s4806_s18 = scalar_lea.sflag [#allocation7], %s259_s19 }
 0x721   : > { %s6576_s15 = scalar_lea.vmem %s4819_s16, 16  ;;  %p7551_p11 = scmp.ne.s32.totalorder %s7544_s11, 0 }
 0x722   : > { %p6577_p9 = scmp.ne.s32.totalorder %s4819_s16, %s6576_s15  ;;  %s6675_s13 = smov [#allocation8]  }
 0x723   : > { %s6580_s17 = sshll.u32 %s6675_s13, 4  ;;  %s6581_s17 = int_to_ptr.vmem [resolvable:$false] %s6580_s17 }
 0x724   : > { %p6578_p13 = pnand %p6577_p9, %p7551_p11  ;;  %s6582_s20 = scalar_lea.vmem %s6581_s17, 32 }
 0x725   : > { %p6583_p3 = scmp.lt.s32.totalorder %s4819_s16, %s6581_s17  ;;  %p6584_p5 = scmp.lt.s32.totalorder %s6582_s20, %s6576_s15 }
 0x726   : > { %p6579_p1 = pneg %p6578_p13 }
 0x727   : > { %p6585_p7 = por %p6584_p5, %p6583_p3 }
 0x729   : > { %p6586_p8 = pnand %p6585_p7, %p6579_p1 }
 0x72b   : > { %6589 = shalt.err (!%p6586_p8)
}
 0x72c   : > { %s6590_s0 = scalar_lea.hbm %s7489_s30, 16  ;;  %s6594_s21 = scalar_lea.hbm %s7539_s6, 32 }
 0x72d   : > { %p6591_p4 = scmp.ne.s32.totalorder %s7489_s30, %s6590_s0  ;;  %p6595_p12 = scmp.lt.u32.totalorder %s7489_s30, %s7539_s6 }
 0x72e   : > { %p6596_p0 = scmp.lt.u32.totalorder %s6594_s21, %s6590_s0  ;;  %p6598_p9 = scmp.lt.u32.totalorder %s6590_s0, %s7489_s30 }
 0x72f   : > { %p6592_p6 = pnand %p6591_p4, %p7551_p11 }
 0x730   : > { %p6597_p2 = por %p6596_p0, %p6595_p12 }
 0x731   : > { %p6593_p10 = pneg %p6592_p6 }
 0x732   : > { %p6599_p13 = por %p6598_p9, %p6597_p2 }
 0x734   : > { %p6600_p1 = pnand %p6599_p13, %p6593_p10 }
 0x736   : > { %6603 = shalt.err (!%p6600_p1)
}
 0x737   : > { %6240 = dma.vmem_to_hbm [thread:$0]  (%p7551_p11), %s4819_s16, 16, %s7489_s30, %s4806_s18  }
 0x738 PF: > { %p6250_p3 = scmp.ge.s32.totalorder %s6662_s28, 2  ;;  %s4830_s22 = sand.u32 1, %s6642_s23  }
 0x739   : > { %p7552_p5 = scmp.ne.s32.totalorder %s7545_s12, 0  ;;  %s4831_s9 = scalar_lea.sflag [#allocation7], %s4830_s22 }
 0x73b   : > { %p6247_p7 = pnand %p6250_p3, %p7552_p5 }
 0x73d   : > { %6637 = dma.done.wait (!%p6247_p7), %s4831_s9, 16  }
 0x73e   : > { %6639 = vsyncadd (!%p6247_p7), %s4831_s9, 4294967280  ;;  %p18_p8 = scmp.ge.s32.totalorder %s6746_s29, 4   ;;  %s7553_s23 = smov %s6646_s24 }
 0x73f   : > { %s7554_s24 = smov %s6650_s25  ;;  %s7555_s25 = smov %s6757_s10 }
 0x740   : > { %s7556_s26 = smov %s6658_s27  ;;  %s7528_s27 = smov 0  }
 0x741   : > { %s7557_s28 = smov %s6746_s29  ;;  %20 = sbr.rel (!%p18_p8) target bundleno = 7 (0x7), region = 151 }
 0x748   :  { %4835 = vsyncpa [#allocation6], 1 }
 0x749   :  { %4837 = vsyncpa [#allocation6 + $0x1], 1 }
 0x74a   :  { %4838 = vsyncpa [#allocation7], 1 }
 0x74b   :  { %4840 = vsyncpa [#allocation7 + $0x1], 1 }

</bundles_post_ra>
